<compile_context>
chip_gen: v7x
topology: tpu7x:2x2x1
jax: 0.10.0
libtpu: 0.0.40
codegen_flags: <defaults>
</compile_context>

<pallas_src>
import jax
import jax.numpy as jnp
from jax.experimental import pallas as pl
from jax.experimental.pallas import tpu as pltpu

IN_DIM = 32        # small input_dim for the example (module arg)
H1 = 2048          # hardcoded in the module
H2 = 1024          # hardcoded in the module
OUT_DIM = 2000     # module default output_dim
BATCH = 8
TK = 256           # H2 reduction tile (grid = H2 // TK = 4 steps)


def mlp_kernel(x_ref, w1_ref, b1_ref, w2_ref, b2_ref, w3_ref, b3_ref,
               o_ref, h1_ref, acc_ref):
    k = pl.program_id(0)

    # First grid step: compute h1 once and zero the output accumulator.
    @pl.when(k == 0)
    def _():
        h1 = jnp.dot(x_ref[...].astype(jnp.bfloat16), w1_ref[...],
                     preferred_element_type=jnp.float32)
        h1 = jnp.maximum(h1 + b1_ref[...], 0.0)
        h1_ref[...] = h1.astype(h1_ref.dtype)
        acc_ref[...] = jnp.zeros_like(acc_ref)

    # Layer 2 (tiled over H2): h2_k = relu(h1 @ W2[:, kTK:(k+1)TK] + b2_k)
    h2 = jnp.dot(h1_ref[...], w2_ref[...], preferred_element_type=jnp.float32)
    h2 = jnp.maximum(h2 + b2_ref[...], 0.0)

    # Layer 3 partial: acc += h2_k @ W3[kTK:(k+1)TK, :]
    acc_ref[...] += jnp.dot(h2.astype(w3_ref.dtype), w3_ref[...],
                            preferred_element_type=jnp.float32)

    # Last grid step: add output bias and store.
    @pl.when(k == pl.num_programs(0) - 1)
    def _():
        o_ref[...] = (acc_ref[...] + b3_ref[...]).astype(o_ref.dtype)


def mlp_pallas(x, w1, b1, w2, b2, w3, b3, *, tk=TK):
    B, in_dim = x.shape
    h1_dim = w1.shape[1]
    h2_dim = w2.shape[1]
    out_dim = w3.shape[1]
    out_pad = ((out_dim + 127) // 128) * 128   # 2000 -> 2048, lane-dense output
    assert h2_dim % tk == 0

    # bf16 weights: halves HBM traffic for this bandwidth-bound kernel.
    w1b = w1.astype(jnp.bfloat16)
    w2b = w2.astype(jnp.bfloat16)
    w3b = jnp.zeros((h2_dim, out_pad), jnp.bfloat16).at[:, :out_dim].set(
        w3.astype(jnp.bfloat16))
    b3p = jnp.zeros((1, out_pad), jnp.float32).at[:, :out_dim].set(b3)

    grid = (h2_dim // tk,)

    out = pl.pallas_call(
        mlp_kernel,
        out_shape=jax.ShapeDtypeStruct((B, out_pad), jnp.float32),
        grid_spec=pltpu.PrefetchScalarGridSpec(
            num_scalar_prefetch=0,
            grid=grid,
            in_specs=[
                pl.BlockSpec((B, in_dim), lambda k: (0, 0)),       # x (full)
                pl.BlockSpec((in_dim, h1_dim), lambda k: (0, 0)),  # W1 (full)
                pl.BlockSpec((1, h1_dim), lambda k: (0, 0)),       # b1 (full)
                pl.BlockSpec((h1_dim, tk), lambda k: (0, k)),      # W2 column tile
                pl.BlockSpec((1, tk), lambda k: (0, k)),           # b2 tile
                pl.BlockSpec((tk, out_pad), lambda k: (k, 0)),     # W3 row tile
                pl.BlockSpec((1, out_pad), lambda k: (0, 0)),      # b3 (full)
            ],
            out_specs=pl.BlockSpec((B, out_pad), lambda k: (0, 0)),
            scratch_shapes=[
                pltpu.VMEM((B, h1_dim), jnp.bfloat16),   # h1, computed once
                pltpu.VMEM((B, out_pad), jnp.float32),   # output accumulator
            ],
        ),
        # Reduction axis -> "arbitrary"; default double-buffering is plenty
        # (per-step tiles ~2 MB). If DMA is still exposed, sweep pl.Buffered(3)
        # on the W2/W3 specs.  Default scoped VMEM limit suffices on v5e/v6e/v7x.
        compiler_params=pltpu.CompilerParams(dimension_semantics=("arbitrary",)),
    )(x, w1b, b1, w2b, b2, w3b, b3p)

    return out[:, :out_dim]


def init_params(key):
    # Deterministic init mimicking torch.nn.Linear's uniform(-1/sqrt(fan_in), 1/sqrt(fan_in)).
    ks = jax.random.split(key, 6)

    def lin(kw, kb, fan_in, fan_out):
        bound = 1.0 / jnp.sqrt(fan_in)
        w = jax.random.uniform(kw, (fan_in, fan_out), jnp.float32, -bound, bound)
        b = jax.random.uniform(kb, (1, fan_out), jnp.float32, -bound, bound)
        return w, b

    w1, b1 = lin(ks[0], ks[1], IN_DIM, H1)
    w2, b2 = lin(ks[2], ks[3], H1, H2)
    w3, b3 = lin(ks[4], ks[5], H2, OUT_DIM)
    return w1, b1, w2, b2, w3, b3


def mlp_ref(x, w1, b1, w2, b2, w3, b3):
    # f32 reference using the same bf16-quantized weights the kernel sees,
    # so the comparison isolates the kernel math (bf16 intermediates, f32 acc).
    w1q = w1.astype(jnp.bfloat16).astype(jnp.float32)
    w2q = w2.astype(jnp.bfloat16).astype(jnp.float32)
    w3q = w3.astype(jnp.bfloat16).astype(jnp.float32)
    h1 = jnp.maximum(x @ w1q + b1, 0.0)
    h2 = jnp.maximum(h1 @ w2q + b2, 0.0)
    return h2 @ w3q + b3


if __name__ == "__main__":
    key = jax.random.PRNGKey(0)
    kx, kp = jax.random.split(key)
    x = jax.random.normal(kx, (BATCH, IN_DIM), jnp.float32)
    params = init_params(kp)

    out = mlp_pallas(x, *params)
    out = jax.block_until_ready(out)

    ref = mlp_ref(x, *params)
    assert out.shape == (BATCH, OUT_DIM), out.shape
    max_err = float(jnp.max(jnp.abs(out - ref)))
    assert jnp.allclose(out, ref, atol=2e-2, rtol=2e-2), max_err

    print("KERNEL_OK")
</pallas_src>

<mosaic_0001>
module attributes {stable_mosaic.version = 11 : i64} {
  func.func @mlp_kernel(%arg0: i32, %arg1: memref<8x32xf32, #tpu.memory_space<vmem>>, %arg2: memref<32x2048xbf16, #tpu.memory_space<vmem>>, %arg3: memref<1x2048xf32, #tpu.memory_space<vmem>>, %arg4: memref<2048x256xbf16, #tpu.memory_space<vmem>>, %arg5: memref<1x256xf32, #tpu.memory_space<vmem>>, %arg6: memref<256x2048xbf16, #tpu.memory_space<vmem>>, %arg7: memref<1x2048xf32, #tpu.memory_space<vmem>>, %arg8: memref<8x2048xf32, #tpu.memory_space<vmem>>, %arg9: memref<8x2048xbf16, #tpu.memory_space<vmem>>, %arg10: memref<8x2048xf32, #tpu.memory_space<vmem>>) attributes {dimension_semantics = [#tpu.dimension_semantics<arbitrary>], iteration_bounds = array<i64: 4>, scalar_prefetch = 0 : i64, scratch_operands = 2 : i64, tpu.core_type = #tpu.core_type<tc>, window_params = [{pipeline_mode = #tpu.pipeline_mode<synchronous>, transform_indices = @transform_0, window_bounds = array<i64: 8, 32>}, {pipeline_mode = #tpu.pipeline_mode<synchronous>, transform_indices = @transform_1, window_bounds = array<i64: 32, 2048>}, {pipeline_mode = #tpu.pipeline_mode<synchronous>, transform_indices = @transform_2, window_bounds = array<i64: 1, 2048>}, {transform_indices = @transform_3, window_bounds = array<i64: 2048, 256>}, {transform_indices = @transform_4, window_bounds = array<i64: 1, 256>}, {transform_indices = @transform_5, window_bounds = array<i64: 256, 2048>}, {pipeline_mode = #tpu.pipeline_mode<synchronous>, transform_indices = @transform_6, window_bounds = array<i64: 1, 2048>}, {pipeline_mode = #tpu.pipeline_mode<synchronous>, transform_indices = @transform_7, window_bounds = array<i64: 8, 2048>}]} {
    %c0_i32 = arith.constant 0 : i32
    %0 = arith.cmpi eq, %arg0, %c0_i32 : i32
    %1 = arith.extui %0 : i1 to i32
    %c0_i32_0 = arith.constant 0 : i32
    %2 = arith.cmpi ne, %1, %c0_i32_0 : i32
    scf.if %2 {
      %c0_15 = arith.constant 0 : index
      %c0_16 = arith.constant 0 : index
      %20 = vector.load %arg1[%c0_15, %c0_16] : memref<8x32xf32, #tpu.memory_space<vmem>>, vector<8x32xf32>
      %21 = arith.truncf %20 : vector<8x32xf32> to vector<8x32xbf16>
      %c0_17 = arith.constant 0 : index
      %c0_18 = arith.constant 0 : index
      %22 = vector.load %arg2[%c0_17, %c0_18] : memref<32x2048xbf16, #tpu.memory_space<vmem>>, vector<32x2048xbf16>
      %cst_19 = arith.constant dense<0.000000e+00> : vector<8x2048xf32>
      %23 = tpu.matmul %21, %22, %cst_19 {dimension_numbers = #tpu.dot_dimension_numbers<[1], [0], [0], [1], [0, 0, 1, 1], [], []>} : vector<8x32xbf16>, vector<32x2048xbf16>, vector<8x2048xf32> -> vector<8x2048xf32>
      %c0_20 = arith.constant 0 : index
      %c0_21 = arith.constant 0 : index
      %24 = vector.load %arg3[%c0_20, %c0_21] : memref<1x2048xf32, #tpu.memory_space<vmem>>, vector<1x2048xf32>
      %25 = vector.broadcast %24 : vector<1x2048xf32> to vector<8x2048xf32>
      %26 = arith.addf %23, %25 : vector<8x2048xf32>
      %cst_22 = arith.constant 0.000000e+00 : f32
      %27 = vector.broadcast %cst_22 : f32 to vector<8x2048xf32>
      %28 = arith.maximumf %26, %27 : vector<8x2048xf32>
      %29 = arith.truncf %28 : vector<8x2048xf32> to vector<8x2048xbf16>
      %c0_23 = arith.constant 0 : index
      %c0_24 = arith.constant 0 : index
      %30 = vector.load %arg9[%c0_23, %c0_24] : memref<8x2048xbf16, #tpu.memory_space<vmem>>, vector<8x2048xbf16>
      tpu.vector_store %arg9[%c0_23, %c0_24], %29 {strides = array<i32>} : memref<8x2048xbf16, #tpu.memory_space<vmem>>, vector<8x2048xbf16>,
      %cst_25 = arith.constant 0.000000e+00 : f32
      %31 = vector.broadcast %cst_25 : f32 to vector<8x2048xf32>
      %c0_26 = arith.constant 0 : index
      %c0_27 = arith.constant 0 : index
      %32 = vector.load %arg10[%c0_26, %c0_27] : memref<8x2048xf32, #tpu.memory_space<vmem>>, vector<8x2048xf32>
      tpu.vector_store %arg10[%c0_26, %c0_27], %31 {strides = array<i32>} : memref<8x2048xf32, #tpu.memory_space<vmem>>, vector<8x2048xf32>,
    } else {
    }
    %c0 = arith.constant 0 : index
    %c0_1 = arith.constant 0 : index
    %3 = vector.load %arg9[%c0, %c0_1] : memref<8x2048xbf16, #tpu.memory_space<vmem>>, vector<8x2048xbf16>
    %c0_2 = arith.constant 0 : index
    %c0_3 = arith.constant 0 : index
    %4 = vector.load %arg4[%c0_2, %c0_3] : memref<2048x256xbf16, #tpu.memory_space<vmem>>, vector<2048x256xbf16>
    %cst = arith.constant dense<0.000000e+00> : vector<8x256xf32>
    %5 = tpu.matmul %3, %4, %cst {dimension_numbers = #tpu.dot_dimension_numbers<[1], [0], [0], [1], [0, 0, 1, 1], [], []>} : vector<8x2048xbf16>, vector<2048x256xbf16>, vector<8x256xf32> -> vector<8x256xf32>
    %c0_4 = arith.constant 0 : index
    %c0_5 = arith.constant 0 : index
    %6 = vector.load %arg5[%c0_4, %c0_5] : memref<1x256xf32, #tpu.memory_space<vmem>>, vector<1x256xf32>
    %7 = vector.broadcast %6 : vector<1x256xf32> to vector<8x256xf32>
    %8 = arith.addf %5, %7 : vector<8x256xf32>
    %cst_6 = arith.constant 0.000000e+00 : f32
    %9 = vector.broadcast %cst_6 : f32 to vector<8x256xf32>
    %10 = arith.maximumf %8, %9 : vector<8x256xf32>
    %c0_7 = arith.constant 0 : index
    %c0_8 = arith.constant 0 : index
    %11 = vector.load %arg10[%c0_7, %c0_8] : memref<8x2048xf32, #tpu.memory_space<vmem>>, vector<8x2048xf32>
    %12 = arith.truncf %10 : vector<8x256xf32> to vector<8x256xbf16>
    %c0_9 = arith.constant 0 : index
    %c0_10 = arith.constant 0 : index
    %13 = vector.load %arg6[%c0_9, %c0_10] : memref<256x2048xbf16, #tpu.memory_space<vmem>>, vector<256x2048xbf16>
    %cst_11 = arith.constant dense<0.000000e+00> : vector<8x2048xf32>
    %14 = tpu.matmul %12, %13, %cst_11 {dimension_numbers = #tpu.dot_dimension_numbers<[1], [0], [0], [1], [0, 0, 1, 1], [], []>} : vector<8x256xbf16>, vector<256x2048xbf16>, vector<8x2048xf32> -> vector<8x2048xf32>
    %15 = arith.addf %11, %14 : vector<8x2048xf32>
    %c0_12 = arith.constant 0 : index
    %c0_13 = arith.constant 0 : index
    %16 = vector.load %arg10[%c0_12, %c0_13] : memref<8x2048xf32, #tpu.memory_space<vmem>>, vector<8x2048xf32>
    tpu.vector_store %arg10[%c0_12, %c0_13], %15 {strides = array<i32>} : memref<8x2048xf32, #tpu.memory_space<vmem>>, vector<8x2048xf32>,
    %c3_i32 = arith.constant 3 : i32
    %17 = arith.cmpi eq, %arg0, %c3_i32 : i32
    %18 = arith.extui %17 : i1 to i32
    %c0_i32_14 = arith.constant 0 : i32
    %19 = arith.cmpi ne, %18, %c0_i32_14 : i32
    scf.if %19 {
      %c0_15 = arith.constant 0 : index
      %c0_16 = arith.constant 0 : index
      %20 = vector.load %arg10[%c0_15, %c0_16] : memref<8x2048xf32, #tpu.memory_space<vmem>>, vector<8x2048xf32>
      %c0_17 = arith.constant 0 : index
      %c0_18 = arith.constant 0 : index
      %21 = vector.load %arg7[%c0_17, %c0_18] : memref<1x2048xf32, #tpu.memory_space<vmem>>, vector<1x2048xf32>
      %22 = vector.broadcast %21 : vector<1x2048xf32> to vector<8x2048xf32>
      %23 = arith.addf %20, %22 : vector<8x2048xf32>
      %c0_19 = arith.constant 0 : index
      %c0_20 = arith.constant 0 : index
      %24 = vector.load %arg8[%c0_19, %c0_20] : memref<8x2048xf32, #tpu.memory_space<vmem>>, vector<8x2048xf32>
      tpu.vector_store %arg8[%c0_19, %c0_20], %23 {strides = array<i32>} : memref<8x2048xf32, #tpu.memory_space<vmem>>, vector<8x2048xf32>,
    } else {
    }
    return
  }
  func.func @transform_0(%arg0: i32) -> (i32, i32) {
    %c0_i32 = arith.constant 0 : i32
    %c0_i32_0 = arith.constant 0 : i32
    %c0_i32_1 = arith.constant 0 : i32
    return %c0_i32, %c0_i32_0 : i32, i32
  }
  func.func @transform_1(%arg0: i32) -> (i32, i32) {
    %c0_i32 = arith.constant 0 : i32
    %c0_i32_0 = arith.constant 0 : i32
    %c0_i32_1 = arith.constant 0 : i32
    return %c0_i32, %c0_i32_0 : i32, i32
  }
  func.func @transform_2(%arg0: i32) -> (i32, i32) {
    %c0_i32 = arith.constant 0 : i32
    %c0_i32_0 = arith.constant 0 : i32
    %c0_i32_1 = arith.constant 0 : i32
    return %c0_i32, %c0_i32_0 : i32, i32
  }
  func.func @transform_3(%arg0: i32) -> (i32, i32) {
    %c0_i32 = arith.constant 0 : i32
    %c0_i32_0 = arith.constant 0 : i32
    return %c0_i32, %arg0 : i32, i32
  }
  func.func @transform_4(%arg0: i32) -> (i32, i32) {
    %c0_i32 = arith.constant 0 : i32
    %c0_i32_0 = arith.constant 0 : i32
    return %c0_i32, %arg0 : i32, i32
  }
  func.func @transform_5(%arg0: i32) -> (i32, i32) {
    %c0_i32 = arith.constant 0 : i32
    %c0_i32_0 = arith.constant 0 : i32
    return %arg0, %c0_i32 : i32, i32
  }
  func.func @transform_6(%arg0: i32) -> (i32, i32) {
    %c0_i32 = arith.constant 0 : i32
    %c0_i32_0 = arith.constant 0 : i32
    %c0_i32_1 = arith.constant 0 : i32
    return %c0_i32, %c0_i32_0 : i32, i32
  }
  func.func @transform_7(%arg0: i32) -> (i32, i32) {
    %c0_i32 = arith.constant 0 : i32
    %c0_i32_0 = arith.constant 0 : i32
    %c0_i32_1 = arith.constant 0 : i32
    return %c0_i32, %c0_i32_0 : i32, i32
  }
}

</mosaic_0001>

<bundles_post_ra>
// kernel: tpu_custom_call.1
= control target key start
LH: loop header
LB: loop body
LE: loop exit
PB: predicated region body
PF: predicated region fallthrough
CT: control target
= control target key end

     0   :  { %s7732_s0 = inlined_call_operand.hbm [shape: f32[8,32], index: 0, kind: input, shape index: {}]   ;;  %s7733_s1 = inlined_call_operand.hbm [shape: bf16[32,2048], index: 1, kind: input, shape index: {}]   ;;  %s7734_s2 = inlined_call_operand.hbm [shape: f32[1,2048], index: 2, kind: input, shape index: {}]   ;;  %s7735_s3 = inlined_call_operand.hbm [shape: bf16[2048,1024], index: 3, kind: input, shape index: {}]   ;;  %s7736_s4 = inlined_call_operand.hbm [shape: f32[1,1024], index: 4, kind: input, shape index: {}]   ;;  %s7737_s5 = inlined_call_operand.hbm [shape: bf16[1024,2048], index: 5, kind: input, shape index: {}]   ;;  %s7738_s6 = inlined_call_operand.hbm [shape: f32[1,2048], index: 6, kind: input, shape index: {}]   ;;  %s7739_s7 = inlined_call_operand.hbm [shape: f32[8,2048], index: 7, kind: output, shape index: {}]  }
   0x1   :  { %7756 = sst [smem:[#allocation25_spill]] %s7733_s1 }
   0x2   :  { %7757 = sst [smem:[#allocation26_spill]] %s7735_s3 }
   0x3   :  { %7758 = sst [smem:[#allocation27_spill]] %s7738_s6 }
   0x4   :  { %7759 = sst [smem:[#allocation28_spill]] %s7739_s7 }
   0x5   :  { %12 = vsyncpa [#allocation5], 0 }
   0x6   :  { %13 = vsyncpa [#allocation8], 0 }
   0x7   :  { %14 = vsyncpa [#allocation11], 0 }
   0x8   :  { %16 = vsyncpa [#allocation11 + $0x1], 0 }
   0x9   :  { %17 = vsyncpa [#allocation14], 0 }
   0xa   :  { %19 = vsyncpa [#allocation14 + $0x1], 0 }
   0xb   :  { %20 = vsyncpa [#allocation6], 0  ;;  %s6759_s24 = smov 0   ;;  %s6761_s25 = smov 0  }
   0xc   :  { %s6763_s26 = smov 0   ;;  %s6765_s27 = smov 0  }
   0xd LB: > { %s6778_s28 = sadd.s32 4294967295, %s6702_s27   ;;  %p109_p0 = scmp.ne.s32.totalorder %s6694_s25, %s6690_s24  ;;  %s6702_s27 = sphi %s6765_s27, %s7788_s27   ;;  %s6698_s26 = sphi %s6763_s26, %s7792_s26   ;;  %s6694_s25 = sphi %s6761_s25, %s7791_s25   ;;  %s6690_s24 = sphi %s6759_s24, %s7790_s24  }
   0xe   : > { %p7740_p1 = scmp.eq.s32.totalorder %s6778_s28, 0  ;;  %p5268_p2 = scmp.ge.s32.totalorder %s6702_s27, 1 }
   0xf   : > { %p214_p3 = scmp.lt.s32.totalorder %s6702_s27, 5  ;;  %s6704_s8 = smov [#allocation7]  }
  0x10   : > { %p6787_p5 = por %p7740_p1, %p109_p0  ;;  %s237_s9 = sshll.u32 %s6704_s8, 4  ;;  %s238_s9 = int_to_ptr.vmem [resolvable:$true] %s237_s9 }
  0x11   : > { %p6791_p6 = pnand %p5268_p2, %p214_p3  ;;  %s6705_s11 = smov [#allocation15]  }
  0x12   : > { %s7760_s29 = scalar_select %p6787_p5, 1, 0 }
  0x13   : > { %s7761_s30 = scalar_select %p6791_p6, 1, 0 }
  0x14   : > { %p5942_p7 = pneg %p6791_p6  ;;  %s262_s12 = sshll.u32 %s6705_s11, 4  ;;  %s6803_s12 = int_to_ptr.vmem [resolvable:$true] %s262_s12 }
  0x15   : > { %s7763_s1 = sld [smem:[#allocation25_spill]] }
  0x16   : > { %p6799_p8 = pnand %p5942_p7, %p7740_p1 }
  0x18   : > { %s7762_s10 = scalar_select %p6799_p8, 1, 0 }
  0x19   : > { %p6813_p10 = pneg %p6799_p8 }
  0x1b   : > { %s6420_s15 = scalar_lea.hbm %s7763_s1, 4096 }
  0x1c   : > { %p6421_p9 = scmp.ne.s32.totalorder %s7763_s1, %s6420_s15  ;;  %p6427_p13 = scmp.lt.u32.totalorder %s6420_s15, %s7763_s1 }
  0x1d   : > { %s7764_s18 = scalar_select %p6813_p10, 1, 0 }
  0x1e   : > { %p6423_p11 = pnand %p6813_p10, %p6421_p9 }
  0x20   : > { %p6424_p12 = pneg %p6423_p11 }
  0x22   : > { %p6429_p0 = pnand %p6427_p13, %p6424_p12 }
  0x24   : > { %6432 = shalt.err (!%p6429_p0)
}
  0x25   : > { %s6433_s21 = scalar_lea.vmem %s238_s9, 4096  ;;  %p6441_p4 = scmp.lt.s32.totalorder %s238_s9, %s238_s9 }
  0x26   : > { %p6434_p2 = scmp.ne.s32.totalorder %s238_s9, %s6433_s21  ;;  %p6442_p1 = scmp.lt.s32.totalorder %s6433_s21, %s6433_s21 }
  0x28   : > { %p6436_p3 = pnand %p6434_p2, %p6813_p10  ;;  %p6443_p5 = por %p6442_p1, %p6441_p4 }
  0x2a   : > { %p6437_p7 = pneg %p6436_p3 }
  0x2c   : > { %p6444_p6 = pnand %p6443_p5, %p6437_p7 }
  0x2e   : > { %6447 = shalt.err (!%p6444_p6)
}
  0x2f   : > { %s7743_s22 = smov 1024   ;;  %s7744_s23 = smov 64  }
  0x30   : > { %5948 = dma.hbm_to_vmem [thread:$0]  (!%p6799_p8), %s7763_s1, 4096, %s238_s9, [#allocation8], %s7743_s22, %s7743_s22, %s7744_s23  }
  0x31   : > { %s7765_s6 = sld [smem:[#allocation27_spill]] }
  0x37   : > { %s6448_s14 = scalar_lea.hbm %s7765_s6, 256 }
  0x38   : > { %p6449_p1 = scmp.ne.s32.totalorder %s7765_s6, %s6448_s14  ;;  %p6455_p6 = scmp.lt.u32.totalorder %s6448_s14, %s7765_s6 }
  0x3a   : > { %p6451_p4 = pnand %p6449_p1, %p6813_p10 }
  0x3c   : > { %p6452_p5 = pneg %p6451_p4 }
  0x3e   : > { %p6457_p9 = pnand %p6455_p6, %p6452_p5 }
  0x40   : > { %6460 = shalt.err (!%p6457_p9)
}
  0x41   : > { %s6461_s9 = scalar_lea.vmem %s6803_s12, 256  ;;  %p6469_p0 = scmp.lt.s32.totalorder %s6803_s12, %s6803_s12 }
  0x42   : > { %p6462_p11 = scmp.ne.s32.totalorder %s6803_s12, %s6461_s9  ;;  %p6470_p2 = scmp.lt.s32.totalorder %s6461_s9, %s6461_s9 }
  0x44   : > { %p6464_p12 = pnand %p6462_p11, %p6813_p10  ;;  %p6471_p3 = por %p6470_p2, %p6469_p0 }
  0x46   : > { %p6465_p13 = pneg %p6464_p12 }
  0x48   : > { %p6472_p7 = pnand %p6471_p3, %p6465_p13 }
  0x4a   : > { %6475 = shalt.err (!%p6472_p7)
}
  0x4b   : > { %5954 = dma.hbm_to_vmem [thread:$0]  (!%p6799_p8), %s7765_s6, 256, %s6803_s12, [#allocation14]  }
  0x4c   : > { %s6856_s24 = sadd.s32 1, %s6702_s27   ;;  %s96_s8 = sadd.s32 1, %s6698_s26 }
  0x4d   : > { %7766 = sst [smem:[#allocation23_spill]] %s6856_s24  ;;  %s93_s11 = ssub.s32 %s6702_s27, %s6856_s24 }
  0x4e   : > { %p103_p1 = scmp.ne.s32.totalorder %s6698_s26, %s6694_s25  ;;  %p94_p4 = scmp.eq.s32.totalorder %s93_s11, 0 }
  0x4f   : > { %p104_p5 = scmp.eq.s32.totalorder %s6702_s27, 0  ;;  %p5969_p6 = scmp.lt.s32.totalorder %s6702_s27, 4 }
  0x50   : > { %s7746_s13 = sand.u32 1, %s6702_s27   ;;  %s7745_s15 = sand.u32 1, %s6698_s26  }
  0x51   : > { %s6867_s14 = scalar_select %p94_p4, %s6698_s26, %s96_s8  }
  0x52   : > { %p105_p9 = por %p104_p5, %p103_p1  ;;  %s5874_s16 = sshll.u32 %s6702_s27, 7 }
  0x53   : > { %7767 = sst [smem:[#allocation24_spill]] %s6867_s14  ;;  %s6873_s17 = sshll.u32 %s7745_s15, 11 }
  0x54   : > { %s7768_s3 = sld [smem:[#allocation26_spill]]  ;;  %p6880_p11 = pnand %p5969_p6, %p105_p9 }
  0x55   : > { %s277_s21 = scalar_lea.vmem [#allocation10], %s6873_s17  ;;  %s6889_s11 = scalar_lea.sflag [#allocation11], %s7746_s13 }
  0x56   : > { %s7769_s20 = scalar_select %p6880_p11, 1, 0 }
  0x57   : > { %s284_s8 = sshll.u32 %s277_s21, 4  ;;  %p6895_p13 = pneg %p6880_p11  ;;  %s6885_s8 = int_to_ptr.vmem [resolvable:$true] %s284_s8 }
  0x5a   : > { %s6878_s9 = scalar_lea.hbm %s7768_s3, %s5874_s16  ;;  %s6481_s21 = scalar_lea.hbm %s7768_s3, 131072 }
  0x5b   : > { %s6476_s12 = scalar_lea.hbm %s6878_s9, 32768  ;;  %p6482_p3 = scmp.lt.u32.totalorder %s6878_s9, %s7768_s3 }
  0x5c   : > { %p6477_p12 = scmp.ne.s32.totalorder %s6878_s9, %s6476_s12  ;;  %p6483_p7 = scmp.lt.u32.totalorder %s6481_s21, %s6476_s12 }
  0x5d   : > { %p6485_p4 = scmp.lt.u32.totalorder %s6476_s12, %s6878_s9 }
  0x5e   : > { %p6479_p0 = pnand %p6895_p13, %p6477_p12  ;;  %p6484_p1 = por %p6483_p7, %p6482_p3 }
  0x60   : > { %p6480_p2 = pneg %p6479_p0  ;;  %p6486_p5 = por %p6485_p4, %p6484_p1 }
  0x62   : > { %p6487_p6 = pnand %p6486_p5, %p6480_p2 }
  0x64   : > { %6490 = shalt.err (!%p6487_p6)
}
  0x65   : > { %s6491_s13 = scalar_lea.vmem %s6885_s8, 32768  ;;  %s6708_s22 = smov [#allocation10]  }
  0x66   : > { %p6492_p9 = scmp.ne.s32.totalorder %s6885_s8, %s6491_s13  ;;  %s6496_s19 = sshll.u32 %s6708_s22, 4  ;;  %s6497_s19 = int_to_ptr.vmem [resolvable:$false] %s6496_s19 }
  0x67   : > { %s6498_s23 = scalar_lea.vmem %s6497_s19, 65536  ;;  %p6499_p8 = scmp.lt.s32.totalorder %s6885_s8, %s6497_s19 }
  0x68   : > { %p6494_p12 = pnand %p6492_p9, %p6895_p13  ;;  %p6500_p10 = scmp.lt.s32.totalorder %s6498_s23, %s6491_s13 }
  0x6a   : > { %p6495_p0 = pneg %p6494_p12  ;;  %p6501_p3 = por %p6500_p10, %p6499_p8 }
  0x6c   : > { %p6502_p7 = pnand %p6501_p3, %p6495_p0 }
  0x6e   : > { %6505 = shalt.err (!%p6502_p7)
}
  0x6f   : > { %s6709_s15 = smov 512   ;;  %s6710_s12 = smov 128  }
  0x70   : > { %s6711_s21 = smov 8   ;;  %s6712_s1 = smov [#allocation4]  }
  0x71   : > { %5958 = dma.hbm_to_vmem [thread:$0]  (!%p6880_p11), %s6878_s9, 32768, %s6885_s8, %s6889_s11, %s6709_s15, %s6710_s12, %s6711_s21  }
  0x72   : > { %s227_s3 = sshll.u32 %s6712_s1, 4  ;;  %s6713_s22 = smov [#allocation9]   ;;  %s228_s3 = int_to_ptr.vmem [resolvable:$true] %s227_s3 }
  0x73   : > { %s251_s6 = sshll.u32 %s6713_s22, 4  ;;  %s6506_s23 = scalar_lea.hbm %s7732_s0, 128  ;;  %s6919_s6 = int_to_ptr.vmem [resolvable:$true] %s251_s6 }
  0x74   : > { %p6507_p8 = scmp.ne.s32.totalorder %s7732_s0, %s6506_s23  ;;  %p7771_p10 = scmp.ne.s32.totalorder %s7764_s18, 0 }
  0x75   : > { %p6513_p4 = scmp.lt.u32.totalorder %s6506_s23, %s7732_s0 }
  0x76   : > { %p6509_p2 = pnand %p6507_p8, %p7771_p10 }
  0x78   : > { %p6510_p1 = pneg %p6509_p2 }
  0x7a   : > { %p6515_p5 = pnand %p6513_p4, %p6510_p1 }
  0x7c   : > { %6518 = shalt.err (!%p6515_p5)
}
  0x7d   : > { %s6519_s1 = scalar_lea.vmem %s228_s3, 128  ;;  %p6527_p0 = scmp.lt.s32.totalorder %s228_s3, %s228_s3 }
  0x7e   : > { %p6520_p6 = scmp.ne.s32.totalorder %s228_s3, %s6519_s1  ;;  %p6528_p3 = scmp.lt.s32.totalorder %s6519_s1, %s6519_s1 }
  0x80   : > { %p6522_p9 = pnand %p6520_p6, %p7771_p10  ;;  %p6529_p7 = por %p6528_p3, %p6527_p0 }
  0x82   : > { %p6523_p12 = pneg %p6522_p9 }
  0x84   : > { %p6530_p11 = pnand %p6529_p7, %p6523_p12 }
  0x86   : > { %6533 = shalt.err (!%p6530_p11)
}
  0x87   : > { %p7772_p8 = scmp.ne.s32.totalorder %s7762_s10, 0  ;;  %s6534_s15 = scalar_lea.hbm %s7734_s2, 256 }
  0x88   : > { %p6535_p2 = scmp.ne.s32.totalorder %s7734_s2, %s6534_s15  ;;  %p6541_p11 = scmp.lt.u32.totalorder %s6534_s15, %s7734_s2 }
  0x89   : > { %5945 = dma.hbm_to_vmem [thread:$0]  (!%p7772_p8), %s7732_s0, 128, %s228_s3, [#allocation5]  }
  0x8a   : > { %p6537_p1 = pnand %p6535_p2, %p7771_p10 }
  0x8c   : > { %p6538_p4 = pneg %p6537_p1 }
  0x8e   : > { %p6543_p5 = pnand %p6541_p11, %p6538_p4 }
  0x90   : > { %6546 = shalt.err (!%p6543_p5)
}
  0x91   : > { %s6547_s3 = scalar_lea.vmem %s6919_s6, 256  ;;  %p6555_p0 = scmp.lt.s32.totalorder %s6919_s6, %s6919_s6 }
  0x92   : > { %p6548_p6 = scmp.ne.s32.totalorder %s6919_s6, %s6547_s3  ;;  %p6556_p3 = scmp.lt.s32.totalorder %s6547_s3, %s6547_s3 }
  0x94   : > { %p6550_p9 = pnand %p6548_p6, %p7771_p10  ;;  %p6557_p7 = por %p6556_p3, %p6555_p0 }
  0x96   : > { %p6551_p12 = pneg %p6550_p9 }
  0x98   : > { %p6558_p2 = pnand %p6557_p7, %p6551_p12 }
  0x9a   : > { %6561 = shalt.err (!%p6558_p2)
}
  0x9b   : > { %5951 = dma.hbm_to_vmem [thread:$0]  (!%p7772_p8), %s7734_s2, 256, %s6919_s6, [#allocation8]  }
  0x9c   : > { %s7773_s9 = sand.u32 1, %s6698_s26   ;;  %s5875_s1 = sshll.u32 %s6702_s27, 5 }
  0x9d   : > { %s5277_s18 = sshll.u32 %s7773_s9, 1  ;;  %s6968_s7 = scalar_lea.hbm %s7736_s4, %s5875_s1 }
  0x9e   : > { %s298_s10 = scalar_lea.vmem [#allocation12], %s5277_s18  ;;  %s6562_s15 = scalar_lea.hbm %s6968_s7, 32 }
  0x9f   : > { %s306_s8 = sshll.u32 %s298_s10, 4  ;;  %p6563_p10 = scmp.ne.s32.totalorder %s6968_s7, %s6562_s15  ;;  %s307_s8 = int_to_ptr.vmem [resolvable:$true] %s306_s8 }
  0xa0   : > { %s6567_s21 = scalar_lea.hbm %s7736_s4, 128  ;;  %p6568_p4 = scmp.lt.u32.totalorder %s6968_s7, %s7736_s4 }
  0xa1   : > { %p6565_p1 = pnand %p6563_p10, %p6895_p13  ;;  %p6569_p11 = scmp.lt.u32.totalorder %s6567_s21, %s6562_s15 }
  0xa2   : > { %p6571_p6 = scmp.lt.u32.totalorder %s6562_s15, %s6968_s7 }
  0xa3   : > { %p6566_p8 = pneg %p6565_p1  ;;  %p6570_p5 = por %p6569_p11, %p6568_p4 }
  0xa5   : > { %p6572_p9 = por %p6571_p6, %p6570_p5 }
  0xa7   : > { %p6573_p12 = pnand %p6572_p9, %p6566_p8 }
  0xa9   : > { %6576 = shalt.err (!%p6573_p12)
}
  0xaa   : > { %s6577_s3 = scalar_lea.vmem %s307_s8, 32  ;;  %s6714_s19 = smov [#allocation12]  }
  0xab   : > { %p6578_p0 = scmp.ne.s32.totalorder %s307_s8, %s6577_s3  ;;  %s6582_s23 = sshll.u32 %s6714_s19, 4  ;;  %s6583_s23 = int_to_ptr.vmem [resolvable:$false] %s6582_s23 }
  0xac   : > { %s6584_s9 = scalar_lea.vmem %s6583_s23, 64  ;;  %p6585_p2 = scmp.lt.s32.totalorder %s307_s8, %s6583_s23 }
  0xad   : > { %p6580_p3 = pnand %p6578_p0, %p6895_p13  ;;  %p6586_p10 = scmp.lt.s32.totalorder %s6584_s9, %s6577_s3 }
  0xaf   : > { %p6581_p7 = pneg %p6580_p3  ;;  %p6587_p1 = por %p6586_p10, %p6585_p2 }
  0xb1   : > { %p6588_p4 = pnand %p6587_p1, %p6581_p7 }
  0xb3   : > { %6591 = shalt.err (!%p6588_p4)
}
  0xb4   : > { %p7774_p11 = scmp.ne.s32.totalorder %s7769_s20, 0  ;;  %s5877_s18 = sshll.u32 %s6702_s27, 15 }
  0xb5   : > { %s317_s1 = scalar_lea.vmem [#allocation13], %s6873_s17  ;;  %s6993_s15 = scalar_lea.hbm %s7737_s5, %s5877_s18 }
  0xb6   : > { %5961 = dma.hbm_to_vmem [thread:$0]  (!%p7774_p11), %s6968_s7, 32, %s307_s8, %s6889_s11  }
  0xb7   : > { %s325_s24 = sshll.u32 %s317_s1, 4  ;;  %s7775_s6 = sand.u32 1, %s6702_s27   ;;  %s6995_s24 = int_to_ptr.vmem [resolvable:$true] %s325_s24 }
  0xb8   : > { %s6999_s12 = scalar_lea.sflag [#allocation14], %s7775_s6  ;;  %s6592_s21 = scalar_lea.hbm %s6993_s15, 32768 }
  0xb9   : > { %p6593_p8 = scmp.ne.s32.totalorder %s6993_s15, %s6592_s21  ;;  %s6597_s7 = scalar_lea.hbm %s7737_s5, 131072 }
  0xba   : > { %p6598_p9 = scmp.lt.u32.totalorder %s6993_s15, %s7737_s5  ;;  %p6599_p12 = scmp.lt.u32.totalorder %s6597_s7, %s6592_s21 }
  0xbb   : > { %p6595_p5 = pnand %p6593_p8, %p6895_p13  ;;  %p6601_p3 = scmp.lt.u32.totalorder %s6592_s21, %s6993_s15 }
  0xbc   : > { %p6600_p0 = por %p6599_p12, %p6598_p9 }
  0xbd   : > { %p6596_p6 = pneg %p6595_p5 }
  0xbe   : > { %p6602_p7 = por %p6601_p3, %p6600_p0 }
  0xc0   : > { %p6603_p2 = pnand %p6602_p7, %p6596_p6 }
  0xc2   : > { %6606 = shalt.err (!%p6603_p2)
}
  0xc3   : > { %s6607_s27 = scalar_lea.vmem %s6995_s24, 32768  ;;  %s6715_s13 = smov [#allocation13]  }
  0xc4   : > { %p6608_p10 = scmp.ne.s32.totalorder %s6995_s24, %s6607_s27  ;;  %s6612_s3 = sshll.u32 %s6715_s13, 4  ;;  %s6613_s3 = int_to_ptr.vmem [resolvable:$false] %s6612_s3 }
  0xc5   : > { %s6614_s19 = scalar_lea.vmem %s6613_s3, 65536  ;;  %p6615_p8 = scmp.lt.s32.totalorder %s6995_s24, %s6613_s3 }
  0xc6   : > { %p6610_p1 = pnand %p6608_p10, %p6895_p13  ;;  %p6616_p5 = scmp.lt.s32.totalorder %s6614_s19, %s6607_s27 }
  0xc8   : > { %p6611_p4 = pneg %p6610_p1  ;;  %p6617_p9 = por %p6616_p5, %p6615_p8 }
  0xca   : > { %p6618_p12 = pnand %p6617_p9, %p6611_p4 }
  0xcc   : > { %6621 = shalt.err (!%p6618_p12)
}
  0xcd   : > { %s7776_s23 = smov 64   ;;  %s7777_s9 = smov 1024  }
  0xce   : > { %5964 = dma.hbm_to_vmem [thread:$0]  (!%p7774_p11), %s6993_s15, 32768, %s6995_s24, %s6999_s12, %s7777_s9, %s7777_s9, %s7776_s23  }
  0xcf   : > { %p7778_p13 = scmp.ne.s32.totalorder %s7761_s30, 0 }
  0xd0   : > { %p7779_p6 = scmp.eq.s32.totalorder (!%p7778_p13), %s6778_s28, 0 }
  0xd1   : > { %337 = sbr.rel (%p7778_p13) target bundleno = 1927 (0x787), region = 48 }
  0xd8   : > { %6665 = dma.done.wait (%p7779_p6), [#allocation5], 128   ;;  %p7780_p0 = pmov %p7779_p6 }
  0xda   : > { %6667 = vsyncadd (%p7780_p0), [#allocation5], 4294967168  ;;  %p7781_p3 = pmov %p7780_p0 }
  0xdb   : > { %p7782_p7 = pmov %p7780_p0 }
  0xdc   : > { %6669 = dma.done.wait (%p7781_p3), [#allocation8], 4352  }
  0xdd   : > { %6671 = vsyncadd (%p7782_p7), [#allocation8], 4294962944  ;;  %s351_s20 = sand.u32 1, %s6778_s28   ;;  %s353_s16 = sand.u32 1, %s6694_s25  }
  0xde   : > { %s5288_s18 = sshll.u32 %s353_s16, 11  ;;  %s352_s30 = scalar_lea.sflag [#allocation11], %s351_s20 }
  0xdf   : > { %s7038_s1 = scalar_lea.vmem [#allocation10], %s5288_s18  ;;  %p7783_p11 = scmp.ne.s32.totalorder %s7760_s29, 0 }
  0xe1   : > { %6673 = dma.done.wait (%p7783_p11), %s352_s30, 32800  }
  0xe2   : > { %6675 = vsyncadd (%p7783_p11), %s352_s30, 4294934496  ;;  %s7044_s24 = sshll.u32 %s353_s16, 1  ;;  %s370_s10 = scalar_lea.sflag [#allocation14], %s351_s20 }
  0xe3   : > { %s364_s14 = scalar_lea.vmem [#allocation12], %s7044_s24  ;;  %s7047_s15 = scalar_lea.vmem [#allocation13], %s5288_s18 }
  0xe4   : > { %6677 = dma.done.wait (%p7783_p11), %s370_s10, 32768  }
  0xe5   : > { %6679 = vsyncadd (%p7783_p11), %s370_s10, 4294934528  ;;  %p7784_p2 = pmov %p7780_p0 }
  0xe6   : > { %p7785_p10 = pmov %p7780_p0 }
  0xe7   : > { %6681 = dma.done.wait (%p7784_p2), [#allocation14], 256  }
  0xe8   : > { %6683 = vsyncadd (%p7785_p10), [#allocation14], 4294967040  ;;  %p7786_p1 = scmp.ne.s32.totalorder %s6778_s28, 0 }
  0xe9   : > { %v423_v0 = vld [vmem:[#allocation7] sm:$0xff] (!%p7786_p1)  ;;  %v424_v2 = vld [vmem:[#allocation7 + $0x8] sm:$0xff] (!%p7786_p1)  ;;  %v6716_v8 = vmov (!%p7786_p1), 0   ;;  %v425_v15 = vld [vmem:[#allocation7 + $0x10] sm:$0xff] (!%p7786_p1)  ;;  %vm699_vm0 = vcmask (!%p7786_p1), 261120  }
  0xea   : > { %420 = sbr.rel (%p7786_p1) target bundleno = 489 (0x1e9), region = 80  ;;  %v431_v1 = vld [vmem:[#allocation7 + $0x40] sm:$0xff] (!%p7786_p1)  ;;  %v432_v4 = vld [vmem:[#allocation7 + $0x48] sm:$0xff] (!%p7786_p1)  ;;  %735 = vmatprep.mubr.bf16.mxu0 (!%p7786_p1), %v6716_v8  ;;  %776 = vmatprep.mubr.bf16.mxu1 (!%p7786_p1), %v6716_v8  ;;  %v433_v16 = vld [vmem:[#allocation7 + $0x50] sm:$0xff] (!%p7786_p1) }
  0xeb   : > { %v5294_v3 = vcombine.high (!%p7786_p1), %v423_v0, %v431_v1  ;;  %v5293_v5 = vcombine.low (!%p7786_p1), %v423_v0, %v431_v1  ;;  %v439_v6 = vld [vmem:[#allocation7 + $0x80] sm:$0xff] (!%p7786_p1)  ;;  %v5296_v9 = vcombine.high (!%p7786_p1), %v424_v2, %v432_v4  ;;  %v5295_v10 = vcombine.low (!%p7786_p1), %v424_v2, %v432_v4  ;;  %v440_v12 = vld [vmem:[#allocation7 + $0x88] sm:$0xff] (!%p7786_p1)  ;;  %v426_v17 = vld [vmem:[#allocation7 + $0x18] sm:$0xff] (!%p7786_p1) }
  0xec   : > { %v447_v7 = vld [vmem:[#allocation7 + $0xc0] sm:$0xff] (!%p7786_p1)  ;;  %v448_v13 = vld [vmem:[#allocation7 + $0xc8] sm:$0xff] (!%p7786_p1)  ;;  %v421_v19 = vld [vmem:[#allocation4] sm:$0xff] (!%p7786_p1)  ;;  %v5298_v22 = vcombine.high (!%p7786_p1), %v425_v15, %v433_v16  ;;  %v5297_v29 = vcombine.low (!%p7786_p1), %v425_v15, %v433_v16  ;;  %v459_v4 = vlaneseq (!%p7786_p1) }
  0xed   : > { %v5310_v11 = vcombine.high (!%p7786_p1), %v439_v6, %v447_v7  ;;  %703 = vmatprep.subr.bf16.mxu0 (!%p7786_p1), %v5294_v3  ;;  %v5312_v14 = vcombine.high (!%p7786_p1), %v440_v12, %v448_v13  ;;  %744 = vmatprep.subr.bf16.mxu1 (!%p7786_p1), %v5296_v9  ;;  %v5309_v18 = vcombine.low (!%p7786_p1), %v439_v6, %v447_v7  ;;  %v434_v20 = vld [vmem:[#allocation7 + $0x58] sm:$0xff] (!%p7786_p1)  ;;  %v441_v24 = vld [vmem:[#allocation7 + $0x90] sm:$0xff] (!%p7786_p1)  ;;  %v427_v33 = vld [vmem:[#allocation7 + $0x20] sm:$0xff] (!%p7786_p1)  ;;  %v6717_v3 = vmov (!%p7786_p1), 0.0  }
  0xee   : > { %704 = vmatpush1.bf16.msra.mxu0 (!%p7786_p1), %v5293_v5  ;;  %745 = vmatpush1.bf16.msra.mxu1 (!%p7786_p1), %v5295_v10  ;;  %v5311_v21 = vcombine.low (!%p7786_p1), %v440_v12, %v448_v13  ;;  %v5300_v23 = vcombine.high (!%p7786_p1), %v426_v17, %v434_v20  ;;  %v449_v25 = vld [vmem:[#allocation7 + $0xd0] sm:$0xff] (!%p7786_p1)  ;;  %v7061_v26 = vpack.c.bf16 (!%p7786_p1), %v421_v19, %v421_v19  ;;  %v442_v27 = vld [vmem:[#allocation7 + $0x98] sm:$0xff] (!%p7786_p1)  ;;  %v435_v34 = vld [vmem:[#allocation7 + $0x60] sm:$0xff] (!%p7786_p1)  ;;  %v7085_v5 = vshrl.u32 (!%p7786_p1), %v459_v4, 7 }
  0xef   : > { %705 = vmatprep.subr.bf16.mxu0 (!%p7786_p1), %v5310_v11  ;;  %746 = vmatprep.subr.bf16.mxu1 (!%p7786_p1), %v5312_v14  ;;  %v450_v28 = vld [vmem:[#allocation7 + $0xd8] sm:$0xff] (!%p7786_p1)  ;;  %v5299_v30 = vcombine.low (!%p7786_p1), %v426_v17, %v434_v20  ;;  %v5314_v31 = vcombine.high (!%p7786_p1), %v441_v24, %v449_v25  ;;  %v428_v35 = vld [vmem:[#allocation7 + $0x28] sm:$0xff] (!%p7786_p1)  ;;  %v5313_v37 = vcombine.low (!%p7786_p1), %v441_v24, %v449_v25  ;;  %v443_v41 = vld [vmem:[#allocation7 + $0xa0] sm:$0xff] (!%p7786_p1) }
  0xf0   : > { %v5316_v32 = vcombine.high (!%p7786_p1), %v442_v27, %v450_v28  ;;  %v436_v36 = vld [vmem:[#allocation7 + $0x68] sm:$0xff] (!%p7786_p1)  ;;  %v5315_v38 = vcombine.low (!%p7786_p1), %v442_v27, %v450_v28  ;;  %v5302_v39 = vcombine.high (!%p7786_p1), %v427_v33, %v435_v34  ;;  %v451_v42 = vld [vmem:[#allocation7 + $0xe0] sm:$0xff] (!%p7786_p1)  ;;  %v5301_v45 = vcombine.low (!%p7786_p1), %v427_v33, %v435_v34  ;;  %v429_v49 = vld [vmem:[#allocation7 + $0x30] sm:$0xff] (!%p7786_p1)  ;;  %1119 = vst [vmem:[#allocation3] sm:$0xff] (!%p7786_p1), %v6717_v3 }
  0xf1   : > { %v5304_v40 = vcombine.high %v428_v35, %v436_v36  ;;  %v444_v43 = vld [vmem:[#allocation7 + $0xa8] sm:$0xff]  ;;  %v5303_v46 = vcombine.low %v428_v35, %v436_v36  ;;  %v5318_v47 = vcombine.high %v443_v41, %v451_v42  ;;  %v437_v50 = vld [vmem:[#allocation7 + $0x70] sm:$0xff]  ;;  %v430_v51 = vld [vmem:[#allocation7 + $0x38] sm:$0xff]  ;;  %v5317_v53 = vcombine.low %v443_v41, %v451_v42  ;;  %1120 = vst [vmem:[#allocation3 + $0x8] sm:$0xff] %v6717_v3 }
  0xf2   : > { %706 = vmatpush1.bf16.msra.mxu0 %v5309_v18  ;;  %747 = vmatpush1.bf16.msra.mxu1 %v5311_v21  ;;  %v452_v44 = vld [vmem:[#allocation7 + $0xe8] sm:$0xff]  ;;  %v438_v52 = vld [vmem:[#allocation7 + $0x78] sm:$0xff]  ;;  %v5306_v55 = vcombine.high %v429_v49, %v437_v50  ;;  %v445_v57 = vld [vmem:[#allocation7 + $0xb0] sm:$0xff]  ;;  %v5305_v61 = vcombine.low %v429_v49, %v437_v50  ;;  %1121 = vst [vmem:[#allocation3 + $0x10] sm:$0xff] %v6717_v3  ;;  %v461_v6 = vsub.s32 0, %v7085_v5  ;;  %v465_v9 = vsub.s32 1, %v7085_v5 }
  0xf3   : > { %785 = vmatprep.subr.bf16.mxu0 %v5298_v22  ;;  %826 = vmatprep.subr.bf16.mxu1 %v5300_v23  ;;  %v5320_v48 = vcombine.high %v444_v43, %v452_v44  ;;  %v5319_v54 = vcombine.low %v444_v43, %v452_v44  ;;  %v5308_v56 = vcombine.high %v430_v51, %v438_v52  ;;  %v453_v58 = vld [vmem:[#allocation7 + $0xf0] sm:$0xff]  ;;  %v446_v59 = vld [vmem:[#allocation7 + $0xb8] sm:$0xff]  ;;  %v455_v7 = vld [vmem:[#allocation9] sm:$0xff]  ;;  %v473_v10 = vsub.s32 3, %v7085_v5 }
  0xf4   : > { %v454_v60 = vld [vmem:[#allocation7 + $0xf8] sm:$0xff]  ;;  %v5307_v62 = vcombine.low %v430_v51, %v438_v52  ;;  %v5322_v63 = vcombine.high %v445_v57, %v453_v58  ;;  %v5321_v1 = vcombine.low %v445_v57, %v453_v58  ;;  %1122 = vst [vmem:[#allocation3 + $0x18] sm:$0xff] %v6717_v3  ;;  %1123 = vst [vmem:[#allocation3 + $0x20] sm:$0xff] %v6717_v3  ;;  %v477_v19 = vsub.s32 4, %v7085_v5  ;;  %v456_v49 = vld [vmem:[#allocation9 + $0x8] sm:$0xff] }
  0xf5   : > { %5325 = vmatmul.mubr.msk.bf16.vlgmr.msra.gmra.mrb[0].mxu0 %vm699_vm0, %v7061_v26  ;;  %5326 = vmatmul.mubr.msk.bf16.vlgmr.msra.gmra.mrb[0].mxu1 %vm699_vm0, %v7061_v26  ;;  %v5324_v0 = vcombine.high %v446_v59, %v454_v60  ;;  %v5323_v2 = vcombine.low %v446_v59, %v454_v60  ;;  %1124 = vst [vmem:[#allocation3 + $0x28] sm:$0xff] %v6717_v3  ;;  %1125 = vst [vmem:[#allocation3 + $0x30] sm:$0xff] %v6717_v3  ;;  %v485_v24 = vsub.s32 6, %v7085_v5 }
  0xf6   : > { %786 = vmatpush1.bf16.msra.mxu0 %v5297_v29  ;;  %827 = vmatpush1.bf16.msra.mxu1 %v5299_v30  ;;  %1126 = vst [vmem:[#allocation3 + $0x38] sm:$0xff] %v6717_v3  ;;  %1127 = vst [vmem:[#allocation3 + $0x40] sm:$0xff] %v6717_v3  ;;  %v462_v11 = vrot.slane %v455_v7, %v461_v6  ;;  %v466_v13 = vrot.slane %v455_v7, %v465_v9  ;;  %v481_v25 = vsub.s32 5, %v7085_v5 }
  0xf7   : > { %787 = vmatprep.subr.bf16.mxu0 %v5314_v31  ;;  %828 = vmatprep.subr.bf16.mxu1 %v5316_v32  ;;  %1128 = vst [vmem:[#allocation3 + $0x48] sm:$0xff] %v6717_v3  ;;  %1129 = vst [vmem:[#allocation3 + $0x50] sm:$0xff] %v6717_v3  ;;  %v474_v14 = vrot.slane %v455_v7, %v473_v10  ;;  %v489_v30 = vsub.s32 7, %v7085_v5  ;;  %v478_v35 = vrot.slane %v455_v7, %v477_v19 }
  0xf8   : > { %817 = vmatprep.mubr.bf16.mxu0 %v6716_v8  ;;  %858 = vmatprep.mubr.bf16.mxu1 %v6716_v8  ;;  %1130 = vst [vmem:[#allocation3 + $0x58] sm:$0xff] %v6717_v3  ;;  %1131 = vst [vmem:[#allocation3 + $0x60] sm:$0xff] %v6717_v3  ;;  %v494_v58 = vrot.slane %v456_v49, %v461_v6 }
  0xf9   : > { %1132 = vst [vmem:[#allocation3 + $0x68] sm:$0xff] %v6717_v3  ;;  %1133 = vst [vmem:[#allocation3 + $0x70] sm:$0xff] %v6717_v3 }
  0xfa   : > { %788 = vmatpush1.bf16.msra.mxu0 %v5313_v37  ;;  %829 = vmatpush1.bf16.msra.mxu1 %v5315_v38  ;;  %1134 = vst [vmem:[#allocation3 + $0x78] sm:$0xff] %v6717_v3  ;;  %v486_v37 = vrot.slane %v455_v7, %v485_v24  ;;  %v482_v38 = vrot.slane %v455_v7, %v481_v25 }
  0xfb   : > { %867 = vmatprep.subr.bf16.mxu0 %v5302_v39  ;;  %908 = vmatprep.subr.bf16.mxu1 %v5304_v40  ;;  %v490_v40 = vrot.slane %v455_v7, %v489_v30 }
  0xfd   : > { %5327 = vmatmul.mubr.msk.bf16.vlgmr.msra.gmra.mrb[4].mxu0 %vm699_vm0, %v7061_v26  ;;  %5328 = vmatmul.mubr.msk.bf16.vlgmr.msra.gmra.mrb[4].mxu1 %vm699_vm0, %v7061_v26 }
  0xfe   : > { %868 = vmatpush1.bf16.msra.mxu0 %v5301_v45  ;;  %909 = vmatpush1.bf16.msra.mxu1 %v5303_v46 }
  0xff   : > { %869 = vmatprep.subr.bf16.mxu0 %v5318_v47  ;;  %910 = vmatprep.subr.bf16.mxu1 %v5320_v48 }
 0x100   : > { %899 = vmatprep.mubr.bf16.mxu0 %v6716_v8  ;;  %940 = vmatprep.mubr.bf16.mxu1 %v6716_v8 }
 0x102   : > { %870 = vmatpush1.bf16.msra.mxu0 %v5317_v53  ;;  %911 = vmatpush1.bf16.msra.mxu1 %v5319_v54 }
 0x103   : > { %949 = vmatprep.subr.bf16.mxu0 %v5306_v55  ;;  %990 = vmatprep.subr.bf16.mxu1 %v5308_v56 }
 0x105   : > { %5329 = vmatmul.mubr.msk.bf16.vlgmr.msra.gmra.mrb[8].mxu0 %vm699_vm0, %v7061_v26  ;;  %5330 = vmatmul.mubr.msk.bf16.vlgmr.msra.gmra.mrb[8].mxu1 %vm699_vm0, %v7061_v26 }
 0x106   : > { %950 = vmatpush1.bf16.msra.mxu0 %v5305_v61  ;;  %991 = vmatpush1.bf16.msra.mxu1 %v5307_v62  ;;  %v498_v61 = vrot.slane %v456_v49, %v465_v9 }
 0x107   : > { %951 = vmatprep.subr.bf16.mxu0 %v5322_v63  ;;  %992 = vmatprep.subr.bf16.mxu1 %v5324_v0  ;;  %v506_v63 = vrot.slane %v456_v49, %v473_v10  ;;  %v510_v10 = vrot.slane %v456_v49, %v477_v19 }
 0x108   : > { %981 = vmatprep.mubr.bf16.mxu0 %v6716_v8  ;;  %1022 = vmatprep.mubr.bf16.mxu1 %v6716_v8  ;;  %v469_v8 = vsub.s32 2, %v7085_v5 }
 0x10a   : > { %952 = vmatpush1.bf16.msra.mxu0 %v5321_v1  ;;  %993 = vmatpush1.bf16.msra.mxu1 %v5323_v2  ;;  %v470_v12 = vrot.slane %v455_v7, %v469_v8  ;;  %v502_v60 = vrot.slane %v456_v49, %v469_v8 }
 0x10d   : > { %5331 = vmatmul.mubr.msk.bf16.vlgmr.msra.gmra.mrb[12].mxu0 %vm699_vm0, %v7061_v26  ;;  %5332 = vmatmul.mubr.msk.bf16.vlgmr.msra.gmra.mrb[12].mxu1 %vm699_vm0, %v7061_v26 }
 0x1c8   : > { %v737_v15 = vpop.f32.mrb[0].mxu0  ;;  %v778_v17 = vpop.f32.mrb[0].mxu1 }
 0x1c9   : > { %v738_v16 = vadd.f32 %v737_v15, %v462_v11  ;;  %v739_v18 = vpop.f32.mrb[1].mxu0  ;;  %v779_v20 = vadd.f32 %v778_v17, %v470_v12  ;;  %v780_v22 = vpop.f32.mrb[1].mxu1 }
 0x1ca   : > { %v740_v21 = vadd.f32 %v739_v18, %v466_v13  ;;  %v741_v23 = vpop.f32.mrb[2].mxu0  ;;  %v781_v27 = vadd.f32 %v780_v22, %v474_v14  ;;  %v782_v28 = vpop.f32.mrb[2].mxu1 }
 0x1cb   : > { %v1031_v26 = vmax.f32 %v738_v16, 0.0  ;;  %v742_v29 = vpop.f32.mrb[3].mxu0  ;;  %v1033_v31 = vmax.f32 %v779_v20, 0.0  ;;  %v783_v33 = vpop.f32.mrb[3].mxu1  ;;  %v518_v20 = vrot.slane %v456_v49, %v485_v24  ;;  %v522_v23 = vrot.slane %v456_v49, %v489_v30 }
 0x1cc   : > { %v1032_v32 = vmax.f32 %v740_v21, 0.0  ;;  %v1034_v34 = vmax.f32 %v781_v27, 0.0  ;;  %v514_v21 = vrot.slane %v456_v49, %v481_v25 }
 0x1ce   : > { %v5878_v36 = vpack.c.bf16 %v1032_v32, %v1031_v26  ;;  %v5879_v39 = vpack.c.bf16 %v1034_v34, %v1033_v31 }
 0x1d0   : > { %1111 = vst [vmem:[#allocation2] sm:$0xff] %v5878_v36  ;;  %v819_v41 = vpop.f32.mrb[4].mxu0  ;;  %1112 = vst [vmem:[#allocation2 + $0x8] sm:$0xff] %v5879_v39  ;;  %v860_v43 = vpop.f32.mrb[4].mxu1 }
 0x1d1   : > { %v820_v42 = vadd.f32 %v819_v41, %v478_v35  ;;  %v821_v44 = vpop.f32.mrb[5].mxu0  ;;  %v861_v45 = vadd.f32 %v860_v43, %v486_v37  ;;  %v862_v47 = vpop.f32.mrb[5].mxu1 }
 0x1d2   : > { %v822_v46 = vadd.f32 %v821_v44, %v482_v38  ;;  %v823_v48 = vpop.f32.mrb[6].mxu0  ;;  %v863_v51 = vadd.f32 %v862_v47, %v490_v40  ;;  %v864_v52 = vpop.f32.mrb[6].mxu1 }
 0x1d3   : > { %v1035_v50 = vmax.f32 %v820_v42, 0.0  ;;  %v824_v53 = vpop.f32.mrb[7].mxu0  ;;  %v1037_v54 = vmax.f32 %v861_v45, 0.0  ;;  %v865_v56 = vpop.f32.mrb[7].mxu1 }
 0x1d4   : > { %v1036_v55 = vmax.f32 %v822_v46, 0.0  ;;  %v1038_v57 = vmax.f32 %v863_v51, 0.0 }
 0x1d6   : > { %v5880_v59 = vpack.c.bf16 %v1036_v55, %v1035_v50  ;;  %v5881_v62 = vpack.c.bf16 %v1038_v57, %v1037_v54 }
 0x1d8   : > { %1113 = vst [vmem:[#allocation2 + $0x10] sm:$0xff] %v5880_v59  ;;  %v901_v0 = vpop.f32.mrb[8].mxu0  ;;  %1114 = vst [vmem:[#allocation2 + $0x18] sm:$0xff] %v5881_v62  ;;  %v942_v2 = vpop.f32.mrb[8].mxu1 }
 0x1d9   : > { %v902_v1 = vadd.f32 %v901_v0, %v494_v58  ;;  %v903_v3 = vpop.f32.mrb[9].mxu0  ;;  %v943_v4 = vadd.f32 %v942_v2, %v502_v60  ;;  %v944_v11 = vpop.f32.mrb[9].mxu1 }
 0x1da   : > { %v904_v7 = vadd.f32 %v903_v3, %v498_v61  ;;  %v905_v12 = vpop.f32.mrb[10].mxu0  ;;  %v945_v14 = vadd.f32 %v944_v11, %v506_v63  ;;  %v946_v15 = vpop.f32.mrb[10].mxu1 }
 0x1db   : > { %v1039_v13 = vmax.f32 %v902_v1, 0.0  ;;  %v906_v16 = vpop.f32.mrb[11].mxu0  ;;  %v1041_v6 = vmax.f32 %v943_v4, 0.0  ;;  %v947_v8 = vpop.f32.mrb[11].mxu1 }
 0x1dc   : > { %v1040_v17 = vmax.f32 %v904_v7, 0.0  ;;  %v1042_v9 = vmax.f32 %v945_v14, 0.0 }
 0x1de   : > { %v5882_v18 = vpack.c.bf16 %v1040_v17, %v1039_v13  ;;  %v5883_v22 = vpack.c.bf16 %v1042_v9, %v1041_v6 }
 0x1e0   : > { %1115 = vst [vmem:[#allocation2 + $0x20] sm:$0xff] %v5882_v18  ;;  %v983_v26 = vpop.f32.mrb[12].mxu0  ;;  %1116 = vst [vmem:[#allocation2 + $0x28] sm:$0xff] %v5883_v22  ;;  %v1024_v28 = vpop.f32.mrb[12].mxu1 }
 0x1e1   : > { %v984_v27 = vadd.f32 %v983_v26, %v510_v10  ;;  %v985_v29 = vpop.f32.mrb[13].mxu0  ;;  %v1025_v31 = vadd.f32 %v1024_v28, %v518_v20  ;;  %v1026_v33 = vpop.f32.mrb[13].mxu1 }
 0x1e2   : > { %v986_v32 = vadd.f32 %v985_v29, %v514_v21  ;;  %v987_v34 = vpop.f32.mrb[14].mxu0  ;;  %v1027_v36 = vadd.f32 %v1026_v33, %v522_v23  ;;  %v1028_v37 = vpop.f32.mrb[14].mxu1 }
 0x1e3   : > { %v1043_v35 = vmax.f32 %v984_v27, 0.0  ;;  %v988_v5 = vpop.f32.mrb[15].mxu0  ;;  %v1045_v19 = vmax.f32 %v1025_v31, 0.0  ;;  %v1029_v24 = vpop.f32.mrb[15].mxu1 }
 0x1e4   : > { %v1044_v38 = vmax.f32 %v986_v32, 0.0  ;;  %v1046_v25 = vmax.f32 %v1027_v36, 0.0 }
 0x1e6   : > { %v5884_v39 = vpack.c.bf16 %v1044_v38, %v1043_v35  ;;  %v5885_v30 = vpack.c.bf16 %v1046_v25, %v1045_v19 }
 0x1e8   : > { %1117 = vst [vmem:[#allocation2 + $0x30] sm:$0xff] %v5884_v39  ;;  %1118 = vst [vmem:[#allocation2 + $0x38] sm:$0xff] %v5885_v30 }
 0x1e9 PF: > { %v6020_v40 = vld [vmem:[%s7038_s1 + $0x4] ss:$8 sps:$4 sm:$0xff]   ;;  %v6022_v41 = vld [vmem:[%s7038_s1] ss:$8 sps:$4 sm:$0xff]   ;;  %v6023_v42 = vld [vmem:[%s7038_s1 + $0x14] ss:$8 sps:$4 sm:$0xff]  }
 0x1ea   : > { %2747 = vmatprep.subr.bf16.mxu0 %v6020_v40  ;;  %v6025_v43 = vld [vmem:[%s7038_s1 + $0x10] ss:$8 sps:$4 sm:$0xff]   ;;  %v6026_v44 = vld [vmem:[%s7038_s1 + $0x24] ss:$8 sps:$4 sm:$0xff]   ;;  %v6028_v45 = vld [vmem:[%s7038_s1 + $0x20] ss:$8 sps:$4 sm:$0xff]  }
 0x1eb   : > { %2748 = vmatpush1.bf16.msra.mxu0 %v6022_v41  ;;  %v6029_v46 = vld [vmem:[%s7038_s1 + $0x34] ss:$8 sps:$4 sm:$0xff]   ;;  %v6031_v47 = vld [vmem:[%s7038_s1 + $0x30] ss:$8 sps:$4 sm:$0xff]   ;;  %v6032_v48 = vld [vmem:[%s7038_s1 + $0x44] ss:$8 sps:$4 sm:$0xff]  }
 0x1ec   : > { %2749 = vmatprep.subr.bf16.mxu0 %v6023_v42  ;;  %v6034_v49 = vld [vmem:[%s7038_s1 + $0x40] ss:$8 sps:$4 sm:$0xff]   ;;  %v6035_v50 = vld [vmem:[%s7038_s1 + $0x54] ss:$8 sps:$4 sm:$0xff]   ;;  %v6037_v51 = vld [vmem:[%s7038_s1 + $0x50] ss:$8 sps:$4 sm:$0xff]  }
 0x1ed   : > { %v6038_v52 = vld [vmem:[%s7038_s1 + $0x64] ss:$8 sps:$4 sm:$0xff]   ;;  %v6040_v55 = vld [vmem:[%s7038_s1 + $0x60] ss:$8 sps:$4 sm:$0xff]   ;;  %v6041_v56 = vld [vmem:[%s7038_s1 + $0x74] ss:$8 sps:$4 sm:$0xff]  }
 0x1ee   : > { %v1135_v53 = vld [vmem:[#allocation2] sm:$0xff]  ;;  %v6043_v57 = vld [vmem:[%s7038_s1 + $0x70] ss:$8 sps:$4 sm:$0xff]   ;;  %v6047_v60 = vld [vmem:[%s7038_s1 + $0x94] ss:$8 sps:$4 sm:$0xff]   ;;  %p5869_p4 = scmp.ne.s32.totalorder %s6778_s28, 3 }
 0x1ef   : > { %2750 = vmatpush1.bf16.msra.mxu0 %v6025_v43  ;;  %v5342_v54 = vcombine.high %v1135_v53, %v1135_v53  ;;  %v6044_v58 = vld [vmem:[%s7038_s1 + $0x84] ss:$8 sps:$4 sm:$0xff]   ;;  %v6046_v59 = vld [vmem:[%s7038_s1 + $0x80] ss:$8 sps:$4 sm:$0xff]   ;;  %v6049_v61 = vld [vmem:[%s7038_s1 + $0x90] ss:$8 sps:$4 sm:$0xff]   ;;  %v5341_v6 = vcombine.low %v1135_v53, %v1135_v53 }
 0x1f0   : > { %2751 = vmatprep.subr.bf16.mxu0 %v6026_v44  ;;  %v6050_v62 = vld [vmem:[%s7038_s1 + $0xa4] ss:$8 sps:$4 sm:$0xff]   ;;  %v6052_v63 = vld [vmem:[%s7038_s1 + $0xa0] ss:$8 sps:$4 sm:$0xff]   ;;  %v6053_v0 = vld [vmem:[%s7038_s1 + $0xb4] ss:$8 sps:$4 sm:$0xff]  }
 0x1f1   : > { %2779 = vmatprep.mubr.bf16.mxu0 %v5342_v54  ;;  %v6055_v1 = vld [vmem:[%s7038_s1 + $0xb0] ss:$8 sps:$4 sm:$0xff]   ;;  %v6056_v2 = vld [vmem:[%s7038_s1 + $0xc4] ss:$8 sps:$4 sm:$0xff]   ;;  %v6058_v3 = vld [vmem:[%s7038_s1 + $0xc0] ss:$8 sps:$4 sm:$0xff]  }
 0x1f2   : > { %v6059_v4 = vld [vmem:[%s7038_s1 + $0xd4] ss:$8 sps:$4 sm:$0xff]   ;;  %v6061_v7 = vld [vmem:[%s7038_s1 + $0xd0] ss:$8 sps:$4 sm:$0xff]   ;;  %v6062_v11 = vld [vmem:[%s7038_s1 + $0xe4] ss:$8 sps:$4 sm:$0xff]  }
 0x1f3   : > { %2752 = vmatpush1.bf16.msra.mxu0 %v6028_v45  ;;  %v6064_v12 = vld [vmem:[%s7038_s1 + $0xe0] ss:$8 sps:$4 sm:$0xff]   ;;  %v6065_v13 = vld [vmem:[%s7038_s1 + $0xf4] ss:$8 sps:$4 sm:$0xff]   ;;  %v6067_v14 = vld [vmem:[%s7038_s1 + $0xf0] ss:$8 sps:$4 sm:$0xff]  }
 0x1f4   : > { %2753 = vmatprep.subr.bf16.mxu0 %v6029_v46  ;;  %v6072_v15 = vld [vmem:[%s7038_s1 + $0x104] ss:$8 sps:$4 sm:$0xff]   ;;  %v7132_v16 = vld [vmem:[#allocation2 + $0x8] sm:$0xff]  ;;  %v6070_v17 = vld [vmem:[%s7038_s1 + $0x100] ss:$8 sps:$4 sm:$0xff]  }
 0x1f5   : > { %v5344_v8 = vcombine.high %v7132_v16, %v7132_v16  ;;  %v6075_v9 = vld [vmem:[%s7038_s1 + $0x114] ss:$8 sps:$4 sm:$0xff]   ;;  %v6073_v10 = vld [vmem:[%s7038_s1 + $0x110] ss:$8 sps:$4 sm:$0xff]   ;;  %v6078_v18 = vld [vmem:[%s7038_s1 + $0x124] ss:$8 sps:$4 sm:$0xff]  }
 0x1f6   : > { %v6076_v20 = vld [vmem:[%s7038_s1 + $0x120] ss:$8 sps:$4 sm:$0xff]   ;;  %v6081_v21 = vld [vmem:[%s7038_s1 + $0x134] ss:$8 sps:$4 sm:$0xff]   ;;  %v6079_v22 = vld [vmem:[%s7038_s1 + $0x130] ss:$8 sps:$4 sm:$0xff]  }
 0x1f7   : > { %2754 = vmatpush1.bf16.msra.mxu0 %v6031_v47  ;;  %v6084_v23 = vld [vmem:[%s7038_s1 + $0x144] ss:$8 sps:$4 sm:$0xff]   ;;  %v6082_v26 = vld [vmem:[%s7038_s1 + $0x140] ss:$8 sps:$4 sm:$0xff]   ;;  %v6087_v27 = vld [vmem:[%s7038_s1 + $0x154] ss:$8 sps:$4 sm:$0xff]   ;;  %v5343_v47 = vcombine.low %v7132_v16, %v7132_v16 }
 0x1f8   : > { %2755 = vmatprep.subr.bf16.mxu0 %v6032_v48  ;;  %v6085_v28 = vld [vmem:[%s7038_s1 + $0x150] ss:$8 sps:$4 sm:$0xff]   ;;  %v6090_v29 = vld [vmem:[%s7038_s1 + $0x164] ss:$8 sps:$4 sm:$0xff]   ;;  %v6088_v31 = vld [vmem:[%s7038_s1 + $0x160] ss:$8 sps:$4 sm:$0xff]  }
 0x1f9   : > { %v6093_v32 = vld [vmem:[%s7038_s1 + $0x174] ss:$8 sps:$4 sm:$0xff]   ;;  %v6091_v33 = vld [vmem:[%s7038_s1 + $0x170] ss:$8 sps:$4 sm:$0xff]   ;;  %v6096_v34 = vld [vmem:[%s7038_s1 + $0x184] ss:$8 sps:$4 sm:$0xff]  }
 0x1fa   : > { %v6094_v35 = vld [vmem:[%s7038_s1 + $0x180] ss:$8 sps:$4 sm:$0xff]   ;;  %v6099_v36 = vld [vmem:[%s7038_s1 + $0x194] ss:$8 sps:$4 sm:$0xff]   ;;  %v6097_v37 = vld [vmem:[%s7038_s1 + $0x190] ss:$8 sps:$4 sm:$0xff]  }
 0x1fb   : > { %2756 = vmatpush1.bf16.msra.mxu0 %v6034_v49  ;;  %v6102_v5 = vld [vmem:[%s7038_s1 + $0x1a4] ss:$8 sps:$4 sm:$0xff]   ;;  %v6100_v19 = vld [vmem:[%s7038_s1 + $0x1a0] ss:$8 sps:$4 sm:$0xff]   ;;  %v6105_v38 = vld [vmem:[%s7038_s1 + $0x1b4] ss:$8 sps:$4 sm:$0xff]  }
 0x1fc   : > { %2757 = vmatprep.subr.bf16.mxu0 %v6035_v50  ;;  %v6103_v24 = vld [vmem:[%s7038_s1 + $0x1b0] ss:$8 sps:$4 sm:$0xff]   ;;  %v6108_v25 = vld [vmem:[%s7038_s1 + $0x1c4] ss:$8 sps:$4 sm:$0xff]   ;;  %v6106_v39 = vld [vmem:[%s7038_s1 + $0x1c0] ss:$8 sps:$4 sm:$0xff]  }
 0x1fd   : > { %v6111_v30 = vld [vmem:[%s7038_s1 + $0x1d4] ss:$8 sps:$4 sm:$0xff]   ;;  %v6109_v40 = vld [vmem:[%s7038_s1 + $0x1d0] ss:$8 sps:$4 sm:$0xff]   ;;  %v6114_v41 = vld [vmem:[%s7038_s1 + $0x1e4] ss:$8 sps:$4 sm:$0xff]  }
 0x1fe   : > { %v6112_v42 = vld [vmem:[%s7038_s1 + $0x1e0] ss:$8 sps:$4 sm:$0xff]   ;;  %v6117_v43 = vld [vmem:[%s7038_s1 + $0x1f4] ss:$8 sps:$4 sm:$0xff]   ;;  %v6115_v44 = vld [vmem:[%s7038_s1 + $0x1f0] ss:$8 sps:$4 sm:$0xff]  }
 0x1ff   : > { %2758 = vmatpush1.bf16.msra.mxu0 %v6037_v51  ;;  %v6122_v45 = vld [vmem:[%s7038_s1 + $0x204] ss:$8 sps:$4 sm:$0xff]   ;;  %v7168_v46 = vld [vmem:[#allocation2 + $0x10] sm:$0xff]  ;;  %v6120_v48 = vld [vmem:[%s7038_s1 + $0x200] ss:$8 sps:$4 sm:$0xff]  }
 0x200   : > { %2759 = vmatprep.subr.bf16.mxu0 %v6038_v52  ;;  %v6125_v49 = vld [vmem:[%s7038_s1 + $0x214] ss:$8 sps:$4 sm:$0xff]   ;;  %v5346_v50 = vcombine.high %v7168_v46, %v7168_v46  ;;  %v6123_v51 = vld [vmem:[%s7038_s1 + $0x210] ss:$8 sps:$4 sm:$0xff]   ;;  %v6128_v52 = vld [vmem:[%s7038_s1 + $0x224] ss:$8 sps:$4 sm:$0xff]  }
 0x201   : > { %v6126_v53 = vld [vmem:[%s7038_s1 + $0x220] ss:$8 sps:$4 sm:$0xff]   ;;  %v6131_v54 = vld [vmem:[%s7038_s1 + $0x234] ss:$8 sps:$4 sm:$0xff]   ;;  %v6159_v16 = vld [vmem:[%s7038_s1 + $0x2d0] ss:$8 sps:$4 sm:$0xff]  }
 0x203   : > { %2760 = vmatpush1.bf16.msra.mxu0 %v6040_v55  ;;  %v6129_v55 = vld [vmem:[%s7038_s1 + $0x230] ss:$8 sps:$4 sm:$0xff]  }
 0x204   : > { %2761 = vmatprep.subr.bf16.mxu0 %v6041_v56  ;;  %v6134_v56 = vld [vmem:[%s7038_s1 + $0x244] ss:$8 sps:$4 sm:$0xff]  }
 0x207   : > { %2762 = vmatpush1.bf16.msra.mxu0 %v6043_v57  ;;  %v6132_v57 = vld [vmem:[%s7038_s1 + $0x240] ss:$8 sps:$4 sm:$0xff]  }
 0x208   : > { %2763 = vmatprep.subr.bf16.mxu0 %v6044_v58  ;;  %v6137_v58 = vld [vmem:[%s7038_s1 + $0x254] ss:$8 sps:$4 sm:$0xff]  }
 0x20b   : > { %2764 = vmatpush1.bf16.msra.mxu0 %v6046_v59  ;;  %v6135_v59 = vld [vmem:[%s7038_s1 + $0x250] ss:$8 sps:$4 sm:$0xff]  }
 0x20c   : > { %2765 = vmatprep.subr.bf16.mxu0 %v6047_v60  ;;  %v6140_v60 = vld [vmem:[%s7038_s1 + $0x264] ss:$8 sps:$4 sm:$0xff]  }
 0x20f   : > { %2766 = vmatpush1.bf16.msra.mxu0 %v6049_v61  ;;  %v6138_v61 = vld [vmem:[%s7038_s1 + $0x260] ss:$8 sps:$4 sm:$0xff]  }
 0x210   : > { %2767 = vmatprep.subr.bf16.mxu0 %v6050_v62  ;;  %v6143_v62 = vld [vmem:[%s7038_s1 + $0x274] ss:$8 sps:$4 sm:$0xff]  }
 0x213   : > { %2768 = vmatpush1.bf16.msra.mxu0 %v6052_v63  ;;  %v6141_v63 = vld [vmem:[%s7038_s1 + $0x270] ss:$8 sps:$4 sm:$0xff]  }
 0x214   : > { %2769 = vmatprep.subr.bf16.mxu0 %v6053_v0  ;;  %v6146_v0 = vld [vmem:[%s7038_s1 + $0x284] ss:$8 sps:$4 sm:$0xff]  }
 0x217   : > { %2770 = vmatpush1.bf16.msra.mxu0 %v6055_v1  ;;  %v6144_v1 = vld [vmem:[%s7038_s1 + $0x280] ss:$8 sps:$4 sm:$0xff]  }
 0x218   : > { %2771 = vmatprep.subr.bf16.mxu0 %v6056_v2  ;;  %v6149_v2 = vld [vmem:[%s7038_s1 + $0x294] ss:$8 sps:$4 sm:$0xff]  }
 0x21b   : > { %2772 = vmatpush1.bf16.msra.mxu0 %v6058_v3  ;;  %v6147_v3 = vld [vmem:[%s7038_s1 + $0x290] ss:$8 sps:$4 sm:$0xff]  }
 0x21c   : > { %2773 = vmatprep.subr.bf16.mxu0 %v6059_v4  ;;  %v6152_v4 = vld [vmem:[%s7038_s1 + $0x2a4] ss:$8 sps:$4 sm:$0xff]  }
 0x21f   : > { %2774 = vmatpush1.bf16.msra.mxu0 %v6061_v7  ;;  %v6150_v7 = vld [vmem:[%s7038_s1 + $0x2a0] ss:$8 sps:$4 sm:$0xff]  }
 0x220   : > { %2775 = vmatprep.subr.bf16.mxu0 %v6062_v11  ;;  %v6155_v11 = vld [vmem:[%s7038_s1 + $0x2b4] ss:$8 sps:$4 sm:$0xff]  }
 0x223   : > { %2776 = vmatpush1.bf16.msra.mxu0 %v6064_v12  ;;  %v6153_v12 = vld [vmem:[%s7038_s1 + $0x2b0] ss:$8 sps:$4 sm:$0xff]  }
 0x224   : > { %2777 = vmatprep.subr.bf16.mxu0 %v6065_v13  ;;  %v6158_v13 = vld [vmem:[%s7038_s1 + $0x2c4] ss:$8 sps:$4 sm:$0xff]  }
 0x227   : > { %2778 = vmatpush1.bf16.msra.mxu0 %v6067_v14  ;;  %v6156_v14 = vld [vmem:[%s7038_s1 + $0x2c0] ss:$8 sps:$4 sm:$0xff]  }
 0x228   : > { %2788 = vmatprep.subr.bf16.mxu0 %v6072_v15  ;;  %v6161_v15 = vld [vmem:[%s7038_s1 + $0x2d4] ss:$8 sps:$4 sm:$0xff]  }
 0x22a   : > { %2780 = vmatmul.mubr.bf16.vlgmr.msra.gmra.mrb[0].mxu0 %v5341_v6  ;;  %v6164_v6 = vld [vmem:[%s7038_s1 + $0x2e4] ss:$8 sps:$4 sm:$0xff]  }
 0x22b   : > { %2789 = vmatpush1.bf16.msra.mxu0 %v6070_v17  ;;  %2820 = vmatprep.mubr.bf16.mxu0 %v5344_v8  ;;  %v6162_v17 = vld [vmem:[%s7038_s1 + $0x2e0] ss:$8 sps:$4 sm:$0xff]   ;;  %v6167_v8 = vld [vmem:[%s7038_s1 + $0x2f4] ss:$8 sps:$4 sm:$0xff]  }
 0x22c   : > { %2790 = vmatprep.subr.bf16.mxu0 %v6075_v9  ;;  %v6165_v9 = vld [vmem:[%s7038_s1 + $0x2f0] ss:$8 sps:$4 sm:$0xff]  }
 0x22f   : > { %2791 = vmatpush1.bf16.msra.mxu0 %v6073_v10  ;;  %v6172_v10 = vld [vmem:[%s7038_s1 + $0x304] ss:$8 sps:$4 sm:$0xff]  }
 0x230   : > { %2792 = vmatprep.subr.bf16.mxu0 %v6078_v18  ;;  %v7206_v18 = vld [vmem:[#allocation2 + $0x18] sm:$0xff] }
 0x233   : > { %2793 = vmatpush1.bf16.msra.mxu0 %v6076_v20  ;;  %v5345_v20 = vcombine.low %v7168_v46, %v7168_v46  ;;  %v6209_v46 = vld [vmem:[%s7038_s1 + $0x3d0] ss:$8 sps:$4 sm:$0xff]  }
 0x234   : > { %2794 = vmatprep.subr.bf16.mxu0 %v6081_v21  ;;  %v6170_v21 = vld [vmem:[%s7038_s1 + $0x300] ss:$8 sps:$4 sm:$0xff]  }
 0x237   : > { %2795 = vmatpush1.bf16.msra.mxu0 %v6079_v22  ;;  %v5348_v22 = vcombine.high %v7206_v18, %v7206_v18 }
 0x238   : > { %2796 = vmatprep.subr.bf16.mxu0 %v6084_v23  ;;  %v6175_v23 = vld [vmem:[%s7038_s1 + $0x314] ss:$8 sps:$4 sm:$0xff]  }
 0x23b   : > { %2797 = vmatpush1.bf16.msra.mxu0 %v6082_v26  ;;  %v6173_v26 = vld [vmem:[%s7038_s1 + $0x310] ss:$8 sps:$4 sm:$0xff]  }
 0x23c   : > { %2798 = vmatprep.subr.bf16.mxu0 %v6087_v27  ;;  %v6178_v27 = vld [vmem:[%s7038_s1 + $0x324] ss:$8 sps:$4 sm:$0xff]  }
 0x23f   : > { %2799 = vmatpush1.bf16.msra.mxu0 %v6085_v28  ;;  %v6176_v28 = vld [vmem:[%s7038_s1 + $0x320] ss:$8 sps:$4 sm:$0xff]  }
 0x240   : > { %2800 = vmatprep.subr.bf16.mxu0 %v6090_v29  ;;  %v6181_v29 = vld [vmem:[%s7038_s1 + $0x334] ss:$8 sps:$4 sm:$0xff]  }
 0x243   : > { %2801 = vmatpush1.bf16.msra.mxu0 %v6088_v31  ;;  %v6179_v31 = vld [vmem:[%s7038_s1 + $0x330] ss:$8 sps:$4 sm:$0xff]  }
 0x244   : > { %2802 = vmatprep.subr.bf16.mxu0 %v6093_v32  ;;  %v6184_v32 = vld [vmem:[%s7038_s1 + $0x344] ss:$8 sps:$4 sm:$0xff]  }
 0x247   : > { %2803 = vmatpush1.bf16.msra.mxu0 %v6091_v33  ;;  %v6182_v33 = vld [vmem:[%s7038_s1 + $0x340] ss:$8 sps:$4 sm:$0xff]  }
 0x248   : > { %2804 = vmatprep.subr.bf16.mxu0 %v6096_v34  ;;  %v6187_v34 = vld [vmem:[%s7038_s1 + $0x354] ss:$8 sps:$4 sm:$0xff]  }
 0x24b   : > { %2805 = vmatpush1.bf16.msra.mxu0 %v6094_v35  ;;  %v6185_v35 = vld [vmem:[%s7038_s1 + $0x350] ss:$8 sps:$4 sm:$0xff]  }
 0x24c   : > { %2806 = vmatprep.subr.bf16.mxu0 %v6099_v36  ;;  %v6190_v36 = vld [vmem:[%s7038_s1 + $0x364] ss:$8 sps:$4 sm:$0xff]  }
 0x24f   : > { %2807 = vmatpush1.bf16.msra.mxu0 %v6097_v37  ;;  %v6188_v37 = vld [vmem:[%s7038_s1 + $0x360] ss:$8 sps:$4 sm:$0xff]  }
 0x250   : > { %2808 = vmatprep.subr.bf16.mxu0 %v6102_v5  ;;  %v6193_v5 = vld [vmem:[%s7038_s1 + $0x374] ss:$8 sps:$4 sm:$0xff]  }
 0x253   : > { %2809 = vmatpush1.bf16.msra.mxu0 %v6100_v19  ;;  %v6191_v19 = vld [vmem:[%s7038_s1 + $0x370] ss:$8 sps:$4 sm:$0xff]  }
 0x254   : > { %2810 = vmatprep.subr.bf16.mxu0 %v6105_v38  ;;  %v6196_v38 = vld [vmem:[%s7038_s1 + $0x384] ss:$8 sps:$4 sm:$0xff]  }
 0x257   : > { %2811 = vmatpush1.bf16.msra.mxu0 %v6103_v24  ;;  %v6194_v24 = vld [vmem:[%s7038_s1 + $0x380] ss:$8 sps:$4 sm:$0xff]  }
 0x258   : > { %2812 = vmatprep.subr.bf16.mxu0 %v6108_v25  ;;  %v6199_v25 = vld [vmem:[%s7038_s1 + $0x394] ss:$8 sps:$4 sm:$0xff]  }
 0x25b   : > { %2813 = vmatpush1.bf16.msra.mxu0 %v6106_v39  ;;  %v6197_v39 = vld [vmem:[%s7038_s1 + $0x390] ss:$8 sps:$4 sm:$0xff]  }
 0x25c   : > { %2814 = vmatprep.subr.bf16.mxu0 %v6111_v30  ;;  %v6202_v30 = vld [vmem:[%s7038_s1 + $0x3a4] ss:$8 sps:$4 sm:$0xff]  }
 0x25f   : > { %2815 = vmatpush1.bf16.msra.mxu0 %v6109_v40  ;;  %v6200_v40 = vld [vmem:[%s7038_s1 + $0x3a0] ss:$8 sps:$4 sm:$0xff]  }
 0x260   : > { %2816 = vmatprep.subr.bf16.mxu0 %v6114_v41  ;;  %v6205_v41 = vld [vmem:[%s7038_s1 + $0x3b4] ss:$8 sps:$4 sm:$0xff]  }
 0x263   : > { %2817 = vmatpush1.bf16.msra.mxu0 %v6112_v42  ;;  %v6203_v42 = vld [vmem:[%s7038_s1 + $0x3b0] ss:$8 sps:$4 sm:$0xff]  }
 0x264   : > { %2818 = vmatprep.subr.bf16.mxu0 %v6117_v43  ;;  %v6208_v43 = vld [vmem:[%s7038_s1 + $0x3c4] ss:$8 sps:$4 sm:$0xff]  }
 0x267   : > { %2819 = vmatpush1.bf16.msra.mxu0 %v6115_v44  ;;  %v6206_v44 = vld [vmem:[%s7038_s1 + $0x3c0] ss:$8 sps:$4 sm:$0xff]  }
 0x268   : > { %2829 = vmatprep.subr.bf16.mxu0 %v6122_v45  ;;  %v6211_v45 = vld [vmem:[%s7038_s1 + $0x3d4] ss:$8 sps:$4 sm:$0xff]  }
 0x26a   : > { %2821 = vmatmul.mubr.bf16.vlgmr.msra.gmra.mrb[0].mxu0 %v5343_v47  ;;  %v6214_v47 = vld [vmem:[%s7038_s1 + $0x3e4] ss:$8 sps:$4 sm:$0xff]  }
 0x26b   : > { %2830 = vmatpush1.bf16.msra.mxu0 %v6120_v48  ;;  %2861 = vmatprep.mubr.bf16.mxu0 %v5346_v50  ;;  %v6212_v48 = vld [vmem:[%s7038_s1 + $0x3e0] ss:$8 sps:$4 sm:$0xff]   ;;  %v6215_v50 = vld [vmem:[%s7038_s1 + $0x3f0] ss:$8 sps:$4 sm:$0xff]  }
 0x26c   : > { %2831 = vmatprep.subr.bf16.mxu0 %v6125_v49  ;;  %v6217_v49 = vld [vmem:[%s7038_s1 + $0x3f4] ss:$8 sps:$4 sm:$0xff]  }
 0x26f   : > { %2832 = vmatpush1.bf16.msra.mxu0 %v6123_v51  ;;  %v6222_v51 = vld [vmem:[%s7038_s1 + $0x404] ss:$8 sps:$4 sm:$0xff]  }
 0x270   : > { %2833 = vmatprep.subr.bf16.mxu0 %v6128_v52  ;;  %v7244_v52 = vld [vmem:[#allocation2 + $0x20] sm:$0xff] }
 0x273   : > { %2834 = vmatpush1.bf16.msra.mxu0 %v6126_v53  ;;  %v5347_v53 = vcombine.low %v7206_v18, %v7206_v18  ;;  %v6259_v18 = vld [vmem:[%s7038_s1 + $0x4d0] ss:$8 sps:$4 sm:$0xff]  }
 0x274   : > { %2835 = vmatprep.subr.bf16.mxu0 %v6131_v54  ;;  %v6220_v54 = vld [vmem:[%s7038_s1 + $0x400] ss:$8 sps:$4 sm:$0xff]  }
 0x277   : > { %2836 = vmatpush1.bf16.msra.mxu0 %v6129_v55  ;;  %v5350_v55 = vcombine.high %v7244_v52, %v7244_v52 }
 0x278   : > { %2837 = vmatprep.subr.bf16.mxu0 %v6134_v56  ;;  %v6225_v56 = vld [vmem:[%s7038_s1 + $0x414] ss:$8 sps:$4 sm:$0xff]  }
 0x27b   : > { %2838 = vmatpush1.bf16.msra.mxu0 %v6132_v57  ;;  %v6223_v57 = vld [vmem:[%s7038_s1 + $0x410] ss:$8 sps:$4 sm:$0xff]  }
 0x27c   : > { %2839 = vmatprep.subr.bf16.mxu0 %v6137_v58  ;;  %v6228_v58 = vld [vmem:[%s7038_s1 + $0x424] ss:$8 sps:$4 sm:$0xff]  }
 0x27f   : > { %2840 = vmatpush1.bf16.msra.mxu0 %v6135_v59  ;;  %v6226_v59 = vld [vmem:[%s7038_s1 + $0x420] ss:$8 sps:$4 sm:$0xff]  }
 0x280   : > { %2841 = vmatprep.subr.bf16.mxu0 %v6140_v60  ;;  %v6231_v60 = vld [vmem:[%s7038_s1 + $0x434] ss:$8 sps:$4 sm:$0xff]  }
 0x283   : > { %2842 = vmatpush1.bf16.msra.mxu0 %v6138_v61  ;;  %v6229_v61 = vld [vmem:[%s7038_s1 + $0x430] ss:$8 sps:$4 sm:$0xff]  }
 0x284   : > { %2843 = vmatprep.subr.bf16.mxu0 %v6143_v62  ;;  %v6234_v62 = vld [vmem:[%s7038_s1 + $0x444] ss:$8 sps:$4 sm:$0xff]  }
 0x287   : > { %2844 = vmatpush1.bf16.msra.mxu0 %v6141_v63  ;;  %v6232_v63 = vld [vmem:[%s7038_s1 + $0x440] ss:$8 sps:$4 sm:$0xff]  }
 0x288   : > { %2845 = vmatprep.subr.bf16.mxu0 %v6146_v0  ;;  %v6237_v0 = vld [vmem:[%s7038_s1 + $0x454] ss:$8 sps:$4 sm:$0xff]  }
 0x28b   : > { %2846 = vmatpush1.bf16.msra.mxu0 %v6144_v1  ;;  %v6235_v1 = vld [vmem:[%s7038_s1 + $0x450] ss:$8 sps:$4 sm:$0xff]  }
 0x28c   : > { %2847 = vmatprep.subr.bf16.mxu0 %v6149_v2  ;;  %v6240_v2 = vld [vmem:[%s7038_s1 + $0x464] ss:$8 sps:$4 sm:$0xff]  }
 0x28f   : > { %2848 = vmatpush1.bf16.msra.mxu0 %v6147_v3  ;;  %v6238_v3 = vld [vmem:[%s7038_s1 + $0x460] ss:$8 sps:$4 sm:$0xff]  }
 0x290   : > { %2849 = vmatprep.subr.bf16.mxu0 %v6152_v4  ;;  %v6243_v4 = vld [vmem:[%s7038_s1 + $0x474] ss:$8 sps:$4 sm:$0xff]  }
 0x293   : > { %2850 = vmatpush1.bf16.msra.mxu0 %v6150_v7  ;;  %v6241_v7 = vld [vmem:[%s7038_s1 + $0x470] ss:$8 sps:$4 sm:$0xff]  }
 0x294   : > { %2851 = vmatprep.subr.bf16.mxu0 %v6155_v11  ;;  %v6246_v11 = vld [vmem:[%s7038_s1 + $0x484] ss:$8 sps:$4 sm:$0xff]  }
 0x297   : > { %2852 = vmatpush1.bf16.msra.mxu0 %v6153_v12  ;;  %v6244_v12 = vld [vmem:[%s7038_s1 + $0x480] ss:$8 sps:$4 sm:$0xff]  }
 0x298   : > { %2853 = vmatprep.subr.bf16.mxu0 %v6158_v13  ;;  %v6249_v13 = vld [vmem:[%s7038_s1 + $0x494] ss:$8 sps:$4 sm:$0xff]  }
 0x29b   : > { %2854 = vmatpush1.bf16.msra.mxu0 %v6156_v14  ;;  %v6247_v14 = vld [vmem:[%s7038_s1 + $0x490] ss:$8 sps:$4 sm:$0xff]  }
 0x29c   : > { %2855 = vmatprep.subr.bf16.mxu0 %v6161_v15  ;;  %v6252_v15 = vld [vmem:[%s7038_s1 + $0x4a4] ss:$8 sps:$4 sm:$0xff]  }
 0x29f   : > { %2856 = vmatpush1.bf16.msra.mxu0 %v6159_v16  ;;  %v6250_v16 = vld [vmem:[%s7038_s1 + $0x4a0] ss:$8 sps:$4 sm:$0xff]  }
 0x2a0   : > { %2857 = vmatprep.subr.bf16.mxu0 %v6164_v6  ;;  %v6255_v6 = vld [vmem:[%s7038_s1 + $0x4b4] ss:$8 sps:$4 sm:$0xff]  }
 0x2a3   : > { %2858 = vmatpush1.bf16.msra.mxu0 %v6162_v17  ;;  %v6253_v17 = vld [vmem:[%s7038_s1 + $0x4b0] ss:$8 sps:$4 sm:$0xff]  }
 0x2a4   : > { %2859 = vmatprep.subr.bf16.mxu0 %v6167_v8  ;;  %v6258_v8 = vld [vmem:[%s7038_s1 + $0x4c4] ss:$8 sps:$4 sm:$0xff]  }
 0x2a7   : > { %2860 = vmatpush1.bf16.msra.mxu0 %v6165_v9  ;;  %v6256_v9 = vld [vmem:[%s7038_s1 + $0x4c0] ss:$8 sps:$4 sm:$0xff]  }
 0x2a8   : > { %2870 = vmatprep.subr.bf16.mxu0 %v6172_v10  ;;  %v6261_v10 = vld [vmem:[%s7038_s1 + $0x4d4] ss:$8 sps:$4 sm:$0xff]  }
 0x2aa   : > { %2862 = vmatmul.mubr.bf16.vlgmr.msra.gmra.mrb[0].mxu0 %v5345_v20  ;;  %v6264_v20 = vld [vmem:[%s7038_s1 + $0x4e4] ss:$8 sps:$4 sm:$0xff]  }
 0x2ab   : > { %2871 = vmatpush1.bf16.msra.mxu0 %v6170_v21  ;;  %2902 = vmatprep.mubr.bf16.mxu0 %v5348_v22  ;;  %v6262_v21 = vld [vmem:[%s7038_s1 + $0x4e0] ss:$8 sps:$4 sm:$0xff]   ;;  %v6267_v22 = vld [vmem:[%s7038_s1 + $0x4f4] ss:$8 sps:$4 sm:$0xff]  }
 0x2ac   : > { %2872 = vmatprep.subr.bf16.mxu0 %v6175_v23  ;;  %v6265_v23 = vld [vmem:[%s7038_s1 + $0x4f0] ss:$8 sps:$4 sm:$0xff]  }
 0x2af   : > { %2873 = vmatpush1.bf16.msra.mxu0 %v6173_v26  ;;  %v6272_v26 = vld [vmem:[%s7038_s1 + $0x504] ss:$8 sps:$4 sm:$0xff]  }
 0x2b0   : > { %2874 = vmatprep.subr.bf16.mxu0 %v6178_v27  ;;  %v7282_v27 = vld [vmem:[#allocation2 + $0x28] sm:$0xff] }
 0x2b3   : > { %2875 = vmatpush1.bf16.msra.mxu0 %v6176_v28  ;;  %v5349_v28 = vcombine.low %v7244_v52, %v7244_v52  ;;  %v6309_v52 = vld [vmem:[%s7038_s1 + $0x5d0] ss:$8 sps:$4 sm:$0xff]  }
 0x2b4   : > { %2876 = vmatprep.subr.bf16.mxu0 %v6181_v29  ;;  %v6270_v29 = vld [vmem:[%s7038_s1 + $0x500] ss:$8 sps:$4 sm:$0xff]  }
 0x2b7   : > { %2877 = vmatpush1.bf16.msra.mxu0 %v6179_v31  ;;  %v5352_v31 = vcombine.high %v7282_v27, %v7282_v27 }
 0x2b8   : > { %2878 = vmatprep.subr.bf16.mxu0 %v6184_v32  ;;  %v6275_v32 = vld [vmem:[%s7038_s1 + $0x514] ss:$8 sps:$4 sm:$0xff]  }
 0x2bb   : > { %2879 = vmatpush1.bf16.msra.mxu0 %v6182_v33  ;;  %v6273_v33 = vld [vmem:[%s7038_s1 + $0x510] ss:$8 sps:$4 sm:$0xff]  }
 0x2bc   : > { %2880 = vmatprep.subr.bf16.mxu0 %v6187_v34  ;;  %v6278_v34 = vld [vmem:[%s7038_s1 + $0x524] ss:$8 sps:$4 sm:$0xff]  }
 0x2bf   : > { %2881 = vmatpush1.bf16.msra.mxu0 %v6185_v35  ;;  %v6276_v35 = vld [vmem:[%s7038_s1 + $0x520] ss:$8 sps:$4 sm:$0xff]  }
 0x2c0   : > { %2882 = vmatprep.subr.bf16.mxu0 %v6190_v36  ;;  %v6281_v36 = vld [vmem:[%s7038_s1 + $0x534] ss:$8 sps:$4 sm:$0xff]  }
 0x2c3   : > { %2883 = vmatpush1.bf16.msra.mxu0 %v6188_v37  ;;  %v6279_v37 = vld [vmem:[%s7038_s1 + $0x530] ss:$8 sps:$4 sm:$0xff]  }
 0x2c4   : > { %2884 = vmatprep.subr.bf16.mxu0 %v6193_v5  ;;  %v6284_v5 = vld [vmem:[%s7038_s1 + $0x544] ss:$8 sps:$4 sm:$0xff]  }
 0x2c7   : > { %2885 = vmatpush1.bf16.msra.mxu0 %v6191_v19  ;;  %v6282_v19 = vld [vmem:[%s7038_s1 + $0x540] ss:$8 sps:$4 sm:$0xff]  }
 0x2c8   : > { %2886 = vmatprep.subr.bf16.mxu0 %v6196_v38  ;;  %v6287_v38 = vld [vmem:[%s7038_s1 + $0x554] ss:$8 sps:$4 sm:$0xff]  }
 0x2cb   : > { %2887 = vmatpush1.bf16.msra.mxu0 %v6194_v24  ;;  %v6285_v24 = vld [vmem:[%s7038_s1 + $0x550] ss:$8 sps:$4 sm:$0xff]  }
 0x2cc   : > { %2888 = vmatprep.subr.bf16.mxu0 %v6199_v25  ;;  %v6290_v25 = vld [vmem:[%s7038_s1 + $0x564] ss:$8 sps:$4 sm:$0xff]  }
 0x2cf   : > { %2889 = vmatpush1.bf16.msra.mxu0 %v6197_v39  ;;  %v6288_v39 = vld [vmem:[%s7038_s1 + $0x560] ss:$8 sps:$4 sm:$0xff]  }
 0x2d0   : > { %2890 = vmatprep.subr.bf16.mxu0 %v6202_v30  ;;  %v6293_v30 = vld [vmem:[%s7038_s1 + $0x574] ss:$8 sps:$4 sm:$0xff]  }
 0x2d3   : > { %2891 = vmatpush1.bf16.msra.mxu0 %v6200_v40  ;;  %v6291_v40 = vld [vmem:[%s7038_s1 + $0x570] ss:$8 sps:$4 sm:$0xff]  }
 0x2d4   : > { %2892 = vmatprep.subr.bf16.mxu0 %v6205_v41  ;;  %v6296_v41 = vld [vmem:[%s7038_s1 + $0x584] ss:$8 sps:$4 sm:$0xff]  }
 0x2d7   : > { %2893 = vmatpush1.bf16.msra.mxu0 %v6203_v42  ;;  %v6294_v42 = vld [vmem:[%s7038_s1 + $0x580] ss:$8 sps:$4 sm:$0xff]  }
 0x2d8   : > { %2894 = vmatprep.subr.bf16.mxu0 %v6208_v43  ;;  %v6299_v43 = vld [vmem:[%s7038_s1 + $0x594] ss:$8 sps:$4 sm:$0xff]  }
 0x2db   : > { %2895 = vmatpush1.bf16.msra.mxu0 %v6206_v44  ;;  %v6297_v44 = vld [vmem:[%s7038_s1 + $0x590] ss:$8 sps:$4 sm:$0xff]  }
 0x2dc   : > { %2896 = vmatprep.subr.bf16.mxu0 %v6211_v45  ;;  %v6302_v45 = vld [vmem:[%s7038_s1 + $0x5a4] ss:$8 sps:$4 sm:$0xff]  }
 0x2df   : > { %2897 = vmatpush1.bf16.msra.mxu0 %v6209_v46  ;;  %v6300_v46 = vld [vmem:[%s7038_s1 + $0x5a0] ss:$8 sps:$4 sm:$0xff]  }
 0x2e0   : > { %2898 = vmatprep.subr.bf16.mxu0 %v6214_v47  ;;  %v6305_v47 = vld [vmem:[%s7038_s1 + $0x5b4] ss:$8 sps:$4 sm:$0xff]  }
 0x2e3   : > { %2899 = vmatpush1.bf16.msra.mxu0 %v6212_v48  ;;  %v6303_v48 = vld [vmem:[%s7038_s1 + $0x5b0] ss:$8 sps:$4 sm:$0xff]  }
 0x2e4   : > { %2900 = vmatprep.subr.bf16.mxu0 %v6217_v49  ;;  %v6308_v49 = vld [vmem:[%s7038_s1 + $0x5c4] ss:$8 sps:$4 sm:$0xff]  }
 0x2e7   : > { %2901 = vmatpush1.bf16.msra.mxu0 %v6215_v50  ;;  %v6306_v50 = vld [vmem:[%s7038_s1 + $0x5c0] ss:$8 sps:$4 sm:$0xff]  }
 0x2e8   : > { %2911 = vmatprep.subr.bf16.mxu0 %v6222_v51  ;;  %v6311_v51 = vld [vmem:[%s7038_s1 + $0x5d4] ss:$8 sps:$4 sm:$0xff]  }
 0x2ea   : > { %2903 = vmatmul.mubr.bf16.vlgmr.msra.gmra.mrb[0].mxu0 %v5347_v53  ;;  %v6314_v53 = vld [vmem:[%s7038_s1 + $0x5e4] ss:$8 sps:$4 sm:$0xff]  }
 0x2eb   : > { %2912 = vmatpush1.bf16.msra.mxu0 %v6220_v54  ;;  %2943 = vmatprep.mubr.bf16.mxu0 %v5350_v55  ;;  %v6312_v54 = vld [vmem:[%s7038_s1 + $0x5e0] ss:$8 sps:$4 sm:$0xff]   ;;  %v6317_v55 = vld [vmem:[%s7038_s1 + $0x5f4] ss:$8 sps:$4 sm:$0xff]  }
 0x2ec   : > { %2913 = vmatprep.subr.bf16.mxu0 %v6225_v56  ;;  %v6315_v56 = vld [vmem:[%s7038_s1 + $0x5f0] ss:$8 sps:$4 sm:$0xff]  }
 0x2ef   : > { %2914 = vmatpush1.bf16.msra.mxu0 %v6223_v57  ;;  %v6322_v57 = vld [vmem:[%s7038_s1 + $0x604] ss:$8 sps:$4 sm:$0xff]  }
 0x2f0   : > { %2915 = vmatprep.subr.bf16.mxu0 %v6228_v58  ;;  %v7320_v58 = vld [vmem:[#allocation2 + $0x30] sm:$0xff] }
 0x2f3   : > { %2916 = vmatpush1.bf16.msra.mxu0 %v6226_v59  ;;  %v5351_v59 = vcombine.low %v7282_v27, %v7282_v27  ;;  %v6332_v27 = vld [vmem:[%s7038_s1 + $0x640] ss:$8 sps:$4 sm:$0xff]  }
 0x2f4   : > { %2917 = vmatprep.subr.bf16.mxu0 %v6231_v60  ;;  %v6320_v60 = vld [vmem:[%s7038_s1 + $0x600] ss:$8 sps:$4 sm:$0xff]  }
 0x2f7   : > { %2918 = vmatpush1.bf16.msra.mxu0 %v6229_v61  ;;  %v5354_v61 = vcombine.high %v7320_v58, %v7320_v58 }
 0x2f8   : > { %2919 = vmatprep.subr.bf16.mxu0 %v6234_v62  ;;  %v6325_v62 = vld [vmem:[%s7038_s1 + $0x614] ss:$8 sps:$4 sm:$0xff]  }
 0x2fb   : > { %2920 = vmatpush1.bf16.msra.mxu0 %v6232_v63  ;;  %v3095_v63 = vld [vmem:[%s7047_s15] sm:$0xff] }
 0x2fc   : > { %2921 = vmatprep.subr.bf16.mxu0 %v6237_v0  ;;  %v3103_v0 = vld [vmem:[%s7047_s15 + $0x40] sm:$0xff] }
 0x2ff   : > { %2922 = vmatpush1.bf16.msra.mxu0 %v6235_v1  ;;  %v3111_v1 = vld [vmem:[%s7047_s15 + $0x80] sm:$0xff] }
 0x300   : > { %2923 = vmatprep.subr.bf16.mxu0 %v6240_v2  ;;  %v6323_v2 = vld [vmem:[%s7038_s1 + $0x610] ss:$8 sps:$4 sm:$0xff]  }
 0x303   : > { %2924 = vmatpush1.bf16.msra.mxu0 %v6238_v3  ;;  %v5614_v3 = vcombine.high %v3095_v63, %v3103_v0 }
 0x304   : > { %2925 = vmatprep.subr.bf16.mxu0 %v6243_v4  ;;  %v5613_v4 = vcombine.low %v3095_v63, %v3103_v0  ;;  %v3271_v63 = vld [vmem:[%s7047_s15 + $0x580] sm:$0xff] }
 0x305   : > { %4631 = vmatprep.subr.bf16.mxu1 %v5614_v3  ;;  %v3279_v0 = vld [vmem:[%s7047_s15 + $0x5c0] sm:$0xff] }
 0x306   : > { %4632 = vmatpush1.bf16.msra.mxu1 %v5613_v4  ;;  %v5790_v3 = vcombine.high %v3271_v63, %v3279_v0  ;;  %v6358_v4 = vld [vmem:[%s7038_s1 + $0x6c4] ss:$8 sps:$4 sm:$0xff]  }
 0x307   : > { %2926 = vmatpush1.bf16.msra.mxu0 %v6241_v7  ;;  %v3119_v7 = vld [vmem:[%s7047_s15 + $0xc0] sm:$0xff] }
 0x308   : > { %2927 = vmatprep.subr.bf16.mxu0 %v6246_v11  ;;  %v6328_v11 = vld [vmem:[%s7038_s1 + $0x624] ss:$8 sps:$4 sm:$0xff]  }
 0x30b   : > { %2928 = vmatpush1.bf16.msra.mxu0 %v6244_v12  ;;  %v5630_v12 = vcombine.high %v3111_v1, %v3119_v7 }
 0x30c   : > { %2929 = vmatprep.subr.bf16.mxu0 %v6249_v13  ;;  %v3127_v13 = vld [vmem:[%s7047_s15 + $0x100] sm:$0xff] }
 0x30d   : > { %4633 = vmatprep.subr.bf16.mxu1 %v5630_v12  ;;  %v5789_v12 = vcombine.low %v3271_v63, %v3279_v0 }
 0x30f   : > { %2930 = vmatpush1.bf16.msra.mxu0 %v6247_v14  ;;  %v3135_v14 = vld [vmem:[%s7047_s15 + $0x140] sm:$0xff] }
 0x310   : > { %2931 = vmatprep.subr.bf16.mxu0 %v6252_v15  ;;  %v5629_v15 = vcombine.low %v3111_v1, %v3119_v7  ;;  %v3287_v7 = vld [vmem:[%s7047_s15 + $0x600] sm:$0xff] }
 0x312   : > { %4634 = vmatpush1.bf16.msra.mxu1 %v5629_v15  ;;  %v6361_v15 = vld [vmem:[%s7038_s1 + $0x6d4] ss:$8 sps:$4 sm:$0xff]  }
 0x313   : > { %2932 = vmatpush1.bf16.msra.mxu0 %v6250_v16  ;;  %v6326_v16 = vld [vmem:[%s7038_s1 + $0x620] ss:$8 sps:$4 sm:$0xff]  }
 0x314   : > { %2933 = vmatprep.subr.bf16.mxu0 %v6255_v6  ;;  %v5646_v6 = vcombine.high %v3127_v13, %v3135_v14 }
 0x316   : > { %4635 = vmatprep.subr.bf16.mxu1 %v5646_v6  ;;  %v3311_v6 = vld [vmem:[%s7047_s15 + $0x6c0] sm:$0xff] }
 0x317   : > { %2934 = vmatpush1.bf16.msra.mxu0 %v6253_v17  ;;  %v6331_v17 = vld [vmem:[%s7038_s1 + $0x634] ss:$8 sps:$4 sm:$0xff]  }
 0x318   : > { %2935 = vmatprep.subr.bf16.mxu0 %v6258_v8  ;;  %v3143_v8 = vld [vmem:[%s7047_s15 + $0x180] sm:$0xff] }
 0x31b   : > { %2936 = vmatpush1.bf16.msra.mxu0 %v6256_v9  ;;  %v3151_v9 = vld [vmem:[%s7047_s15 + $0x1c0] sm:$0xff] }
 0x31c   : > { %2937 = vmatprep.subr.bf16.mxu0 %v6261_v10  ;;  %v5645_v10 = vcombine.low %v3127_v13, %v3135_v14  ;;  %v6356_v13 = vld [vmem:[%s7038_s1 + $0x6c0] ss:$8 sps:$4 sm:$0xff]  }
 0x31e   : > { %4636 = vmatpush1.bf16.msra.mxu1 %v5645_v10  ;;  %v6364_v10 = vld [vmem:[%s7038_s1 + $0x6e4] ss:$8 sps:$4 sm:$0xff]  }
 0x31f   : > { %2938 = vmatpush1.bf16.msra.mxu0 %v6259_v18  ;;  %v6329_v18 = vld [vmem:[%s7038_s1 + $0x630] ss:$8 sps:$4 sm:$0xff]  }
 0x320   : > { %2939 = vmatprep.subr.bf16.mxu0 %v6264_v20  ;;  %v5662_v20 = vcombine.high %v3143_v8, %v3151_v9 }
 0x322   : > { %4637 = vmatprep.subr.bf16.mxu1 %v5662_v20  ;;  %v6362_v20 = vld [vmem:[%s7038_s1 + $0x6e0] ss:$8 sps:$4 sm:$0xff]  }
 0x323   : > { %2940 = vmatpush1.bf16.msra.mxu0 %v6262_v21  ;;  %v6334_v21 = vld [vmem:[%s7038_s1 + $0x644] ss:$8 sps:$4 sm:$0xff]  }
 0x324   : > { %2941 = vmatprep.subr.bf16.mxu0 %v6267_v22  ;;  %v3159_v22 = vld [vmem:[%s7047_s15 + $0x200] sm:$0xff] }
 0x327   : > { %2942 = vmatpush1.bf16.msra.mxu0 %v6265_v23  ;;  %v3167_v23 = vld [vmem:[%s7047_s15 + $0x240] sm:$0xff] }
 0x328   : > { %2952 = vmatprep.subr.bf16.mxu0 %v6272_v26  ;;  %v5661_v26 = vcombine.low %v3143_v8, %v3151_v9  ;;  %v6359_v8 = vld [vmem:[%s7038_s1 + $0x6d0] ss:$8 sps:$4 sm:$0xff]  }
 0x32a   : > { %2944 = vmatmul.mubr.bf16.vlgmr.msra.gmra.mrb[0].mxu0 %v5349_v28  ;;  %v5678_v28 = vcombine.high %v3159_v22, %v3167_v23  ;;  %4638 = vmatpush1.bf16.msra.mxu1 %v5661_v26  ;;  %v7386_v26 = vld [vmem:[#allocation2 + $0x38] sm:$0xff] }
 0x32b   : > { %2953 = vmatpush1.bf16.msra.mxu0 %v6270_v29  ;;  %2984 = vmatprep.mubr.bf16.mxu0 %v5352_v31  ;;  %v6337_v29 = vld [vmem:[%s7038_s1 + $0x654] ss:$8 sps:$4 sm:$0xff]   ;;  %v3175_v31 = vld [vmem:[%s7047_s15 + $0x280] sm:$0xff] }
 0x32c   : > { %2954 = vmatprep.subr.bf16.mxu0 %v6275_v32  ;;  %v3183_v32 = vld [vmem:[%s7047_s15 + $0x2c0] sm:$0xff]  ;;  %4639 = vmatprep.subr.bf16.mxu1 %v5678_v28 }
 0x32d   : > { %v6370_v28 = vld [vmem:[%s7038_s1 + $0x700] ss:$8 sps:$4 sm:$0xff]  }
 0x32f   : > { %2955 = vmatpush1.bf16.msra.mxu0 %v6273_v33  ;;  %v5677_v33 = vcombine.low %v3159_v22, %v3167_v23  ;;  %v6365_v22 = vld [vmem:[%s7038_s1 + $0x6f0] ss:$8 sps:$4 sm:$0xff]   ;;  %v6372_v23 = vld [vmem:[%s7038_s1 + $0x704] ss:$8 sps:$4 sm:$0xff]  }
 0x330   : > { %2956 = vmatprep.subr.bf16.mxu0 %v6278_v34  ;;  %v6335_v34 = vld [vmem:[%s7038_s1 + $0x650] ss:$8 sps:$4 sm:$0xff]  }
 0x331   : > { %4640 = vmatpush1.bf16.msra.mxu1 %v5677_v33  ;;  %v6378_v33 = vld [vmem:[%s7038_s1 + $0x724] ss:$8 sps:$4 sm:$0xff]  }
 0x333   : > { %2957 = vmatpush1.bf16.msra.mxu0 %v6276_v35  ;;  %v5694_v35 = vcombine.high %v3175_v31, %v3183_v32 }
 0x334   : > { %2958 = vmatprep.subr.bf16.mxu0 %v6281_v36  ;;  %v6340_v36 = vld [vmem:[%s7038_s1 + $0x664] ss:$8 sps:$4 sm:$0xff]  }
 0x335   : > { %4641 = vmatprep.subr.bf16.mxu1 %v5694_v35  ;;  %v6379_v35 = vld [vmem:[%s7038_s1 + $0x730] ss:$8 sps:$4 sm:$0xff]  }
 0x337   : > { %2959 = vmatpush1.bf16.msra.mxu0 %v6279_v37  ;;  %v3191_v37 = vld [vmem:[%s7047_s15 + $0x300] sm:$0xff] }
 0x338   : > { %2960 = vmatprep.subr.bf16.mxu0 %v6284_v5  ;;  %v3199_v5 = vld [vmem:[%s7047_s15 + $0x340] sm:$0xff] }
 0x33b   : > { %2961 = vmatpush1.bf16.msra.mxu0 %v6282_v19  ;;  %v5693_v19 = vcombine.low %v3175_v31, %v3183_v32  ;;  %v6375_v31 = vld [vmem:[%s7038_s1 + $0x714] ss:$8 sps:$4 sm:$0xff]   ;;  %v6373_v32 = vld [vmem:[%s7038_s1 + $0x710] ss:$8 sps:$4 sm:$0xff]  }
 0x33c   : > { %2962 = vmatprep.subr.bf16.mxu0 %v6287_v38  ;;  %v6338_v38 = vld [vmem:[%s7038_s1 + $0x660] ss:$8 sps:$4 sm:$0xff]  }
 0x33d   : > { %4642 = vmatpush1.bf16.msra.mxu1 %v5693_v19  ;;  %v6385_v19 = vld [vmem:[%s7038_s1 + $0x750] ss:$8 sps:$4 sm:$0xff]  }
 0x33f   : > { %2963 = vmatpush1.bf16.msra.mxu0 %v6285_v24  ;;  %v5710_v24 = vcombine.high %v3191_v37, %v3199_v5 }
 0x340   : > { %2964 = vmatprep.subr.bf16.mxu0 %v6290_v25  ;;  %v6343_v25 = vld [vmem:[%s7038_s1 + $0x674] ss:$8 sps:$4 sm:$0xff]  }
 0x341   : > { %4643 = vmatprep.subr.bf16.mxu1 %v5710_v24  ;;  %v6388_v24 = vld [vmem:[%s7038_s1 + $0x760] ss:$8 sps:$4 sm:$0xff]  }
 0x343   : > { %2965 = vmatpush1.bf16.msra.mxu0 %v6288_v39  ;;  %v3207_v39 = vld [vmem:[%s7047_s15 + $0x380] sm:$0xff] }
 0x344   : > { %2966 = vmatprep.subr.bf16.mxu0 %v6293_v30  ;;  %v3215_v30 = vld [vmem:[%s7047_s15 + $0x3c0] sm:$0xff] }
 0x347   : > { %2967 = vmatpush1.bf16.msra.mxu0 %v6291_v40  ;;  %v5709_v40 = vcombine.low %v3191_v37, %v3199_v5  ;;  %v6382_v37 = vld [vmem:[%s7038_s1 + $0x740] ss:$8 sps:$4 sm:$0xff]   ;;  %v6387_v5 = vld [vmem:[%s7038_s1 + $0x754] ss:$8 sps:$4 sm:$0xff]  }
 0x348   : > { %2968 = vmatprep.subr.bf16.mxu0 %v6296_v41  ;;  %v6341_v41 = vld [vmem:[%s7038_s1 + $0x670] ss:$8 sps:$4 sm:$0xff]  }
 0x349   : > { %4644 = vmatpush1.bf16.msra.mxu1 %v5709_v40  ;;  %v6394_v40 = vld [vmem:[%s7038_s1 + $0x780] ss:$8 sps:$4 sm:$0xff]  }
 0x34b   : > { %2969 = vmatpush1.bf16.msra.mxu0 %v6294_v42  ;;  %v5726_v42 = vcombine.high %v3207_v39, %v3215_v30 }
 0x34c   : > { %2970 = vmatprep.subr.bf16.mxu0 %v6299_v43  ;;  %v6346_v43 = vld [vmem:[%s7038_s1 + $0x684] ss:$8 sps:$4 sm:$0xff]  }
 0x34d   : > { %4645 = vmatprep.subr.bf16.mxu1 %v5726_v42  ;;  %v6397_v42 = vld [vmem:[%s7038_s1 + $0x790] ss:$8 sps:$4 sm:$0xff]  }
 0x34f   : > { %2971 = vmatpush1.bf16.msra.mxu0 %v6297_v44  ;;  %v3223_v44 = vld [vmem:[%s7047_s15 + $0x400] sm:$0xff] }
 0x350   : > { %2972 = vmatprep.subr.bf16.mxu0 %v6302_v45  ;;  %v3231_v45 = vld [vmem:[%s7047_s15 + $0x440] sm:$0xff] }
 0x353   : > { %2973 = vmatpush1.bf16.msra.mxu0 %v6300_v46  ;;  %v5725_v46 = vcombine.low %v3207_v39, %v3215_v30  ;;  %v6391_v39 = vld [vmem:[%s7038_s1 + $0x770] ss:$8 sps:$4 sm:$0xff]   ;;  %v6396_v30 = vld [vmem:[%s7038_s1 + $0x784] ss:$8 sps:$4 sm:$0xff]  }
 0x354   : > { %2974 = vmatprep.subr.bf16.mxu0 %v6305_v47  ;;  %v6344_v47 = vld [vmem:[%s7038_s1 + $0x680] ss:$8 sps:$4 sm:$0xff]  }
 0x355   : > { %4646 = vmatpush1.bf16.msra.mxu1 %v5725_v46  ;;  %v6403_v46 = vld [vmem:[%s7038_s1 + $0x7b0] ss:$8 sps:$4 sm:$0xff]  }
 0x357   : > { %2975 = vmatpush1.bf16.msra.mxu0 %v6303_v48  ;;  %v5742_v48 = vcombine.high %v3223_v44, %v3231_v45 }
 0x358   : > { %2976 = vmatprep.subr.bf16.mxu0 %v6308_v49  ;;  %v6349_v49 = vld [vmem:[%s7038_s1 + $0x694] ss:$8 sps:$4 sm:$0xff]  }
 0x359   : > { %4647 = vmatprep.subr.bf16.mxu1 %v5742_v48  ;;  %v6406_v48 = vld [vmem:[%s7038_s1 + $0x7c0] ss:$8 sps:$4 sm:$0xff]  }
 0x35b   : > { %2977 = vmatpush1.bf16.msra.mxu0 %v6306_v50  ;;  %v3239_v50 = vld [vmem:[%s7047_s15 + $0x480] sm:$0xff] }
 0x35c   : > { %2978 = vmatprep.subr.bf16.mxu0 %v6311_v51  ;;  %v3247_v51 = vld [vmem:[%s7047_s15 + $0x4c0] sm:$0xff] }
 0x35f   : > { %2979 = vmatpush1.bf16.msra.mxu0 %v6309_v52  ;;  %v5741_v52 = vcombine.low %v3223_v44, %v3231_v45  ;;  %v6400_v44 = vld [vmem:[%s7038_s1 + $0x7a0] ss:$8 sps:$4 sm:$0xff]   ;;  %v6405_v45 = vld [vmem:[%s7038_s1 + $0x7b4] ss:$8 sps:$4 sm:$0xff]  }
 0x360   : > { %2980 = vmatprep.subr.bf16.mxu0 %v6314_v53  ;;  %v6347_v53 = vld [vmem:[%s7038_s1 + $0x690] ss:$8 sps:$4 sm:$0xff]  }
 0x361   : > { %4648 = vmatpush1.bf16.msra.mxu1 %v5741_v52  ;;  %v6412_v52 = vld [vmem:[%s7038_s1 + $0x7e0] ss:$8 sps:$4 sm:$0xff]  }
 0x363   : > { %2981 = vmatpush1.bf16.msra.mxu0 %v6312_v54  ;;  %v5758_v54 = vcombine.high %v3239_v50, %v3247_v51 }
 0x364   : > { %2982 = vmatprep.subr.bf16.mxu0 %v6317_v55  ;;  %v6352_v55 = vld [vmem:[%s7038_s1 + $0x6a4] ss:$8 sps:$4 sm:$0xff]  }
 0x365   : > { %4649 = vmatprep.subr.bf16.mxu1 %v5758_v54  ;;  %v6415_v54 = vld [vmem:[%s7038_s1 + $0x7f0] ss:$8 sps:$4 sm:$0xff]  }
 0x367   : > { %2983 = vmatpush1.bf16.msra.mxu0 %v6315_v56  ;;  %v3255_v56 = vld [vmem:[%s7047_s15 + $0x500] sm:$0xff] }
 0x368   : > { %2993 = vmatprep.subr.bf16.mxu0 %v6322_v57  ;;  %v3263_v57 = vld [vmem:[%s7047_s15 + $0x540] sm:$0xff] }
 0x369   : > { %v5773_v1 = vcombine.low %v3255_v56, %v3263_v57 }
 0x36a   : > { %2985 = vmatmul.mubr.bf16.vlgmr.msra.gmra.mrb[0].mxu0 %v5351_v59  ;;  %v5757_v59 = vcombine.low %v3239_v50, %v3247_v51  ;;  %v6409_v50 = vld [vmem:[%s7038_s1 + $0x7d0] ss:$8 sps:$4 sm:$0xff]   ;;  %v6414_v51 = vld [vmem:[%s7038_s1 + $0x7e4] ss:$8 sps:$4 sm:$0xff]  }
 0x36b   : > { %2994 = vmatpush1.bf16.msra.mxu0 %v6320_v60  ;;  %3025 = vmatprep.mubr.bf16.mxu0 %v5354_v61  ;;  %v6350_v60 = vld [vmem:[%s7038_s1 + $0x6a0] ss:$8 sps:$4 sm:$0xff]   ;;  %v5774_v61 = vcombine.high %v3255_v56, %v3263_v57 }
 0x36c   : > { %2995 = vmatprep.subr.bf16.mxu0 %v6325_v62  ;;  %v6355_v62 = vld [vmem:[%s7038_s1 + $0x6b4] ss:$8 sps:$4 sm:$0xff]   ;;  %4650 = vmatpush1.bf16.msra.mxu1 %v5757_v59  ;;  %v3319_v56 = vld [vmem:[%s7047_s15 + $0x700] sm:$0xff] }
 0x36d   : > { %4651 = vmatprep.subr.bf16.mxu1 %v5774_v61  ;;  %v3327_v57 = vld [vmem:[%s7047_s15 + $0x740] sm:$0xff] }
 0x36e   : > { %v5838_v59 = vcombine.high %v3319_v56, %v3327_v57  ;;  %v3335_v61 = vld [vmem:[%s7047_s15 + $0x780] sm:$0xff] }
 0x36f   : > { %2996 = vmatpush1.bf16.msra.mxu0 %v6323_v2  ;;  %v6353_v2 = vld [vmem:[%s7038_s1 + $0x6b0] ss:$8 sps:$4 sm:$0xff]  }
 0x370   : > { %2997 = vmatprep.subr.bf16.mxu0 %v6328_v11  ;;  %v3295_v11 = vld [vmem:[%s7047_s15 + $0x640] sm:$0xff]  ;;  %4652 = vmatpush1.bf16.msra.mxu1 %v5773_v1  ;;  %v3096_v1 = vld [vmem:[%s7047_s15 + $0x8] sm:$0xff] }
 0x371   : > { %4653 = vmatprep.subr.bf16.mxu1 %v5790_v3  ;;  %v5806_v14 = vcombine.high %v3287_v7, %v3295_v11 }
 0x373   : > { %2998 = vmatpush1.bf16.msra.mxu0 %v6326_v16  ;;  %v3303_v16 = vld [vmem:[%s7047_s15 + $0x680] sm:$0xff] }
 0x374   : > { %2999 = vmatprep.subr.bf16.mxu0 %v6331_v17  ;;  %4654 = vmatpush1.bf16.msra.mxu1 %v5789_v12  ;;  %v5805_v17 = vcombine.low %v3287_v7, %v3295_v11  ;;  %v5822_v9 = vcombine.high %v3303_v16, %v3311_v6  ;;  %v1401_v7 = vlaneseq }
 0x375   : > { %4655 = vmatprep.subr.bf16.mxu1 %v5806_v14 }
 0x376   : > { %v7431_v11 = vshrl.u32 %v1401_v7, 7  ;;  %v3304_v7 = vld [vmem:[%s7047_s15 + $0x688] sm:$0xff] }
 0x377   : > { %3000 = vmatpush1.bf16.msra.mxu0 %v6329_v18  ;;  %v5821_v18 = vcombine.low %v3303_v16, %v3311_v6 }
 0x378   : > { %3001 = vmatprep.subr.bf16.mxu0 %v6334_v21  ;;  %4656 = vmatpush1.bf16.msra.mxu1 %v5805_v17  ;;  %v6367_v21 = vld [vmem:[%s7038_s1 + $0x6f4] ss:$8 sps:$4 sm:$0xff]   ;;  %v7434_v12 = vsub.s32 0, %v7431_v11  ;;  %v7439_v14 = vsub.s32 1, %v7431_v11 }
 0x379   : > { %4657 = vmatprep.subr.bf16.mxu1 %v5822_v9 }
 0x37b   : > { %3002 = vmatpush1.bf16.msra.mxu0 %v6332_v27  ;;  %v5353_v27 = vcombine.low %v7320_v58, %v7320_v58  ;;  %v6376_v58 = vld [vmem:[%s7038_s1 + $0x720] ss:$8 sps:$4 sm:$0xff]  }
 0x37c   : > { %3003 = vmatprep.subr.bf16.mxu0 %v6337_v29  ;;  %4658 = vmatpush1.bf16.msra.mxu1 %v5821_v18  ;;  %v5356_v29 = vcombine.high %v7386_v26, %v7386_v26 }
 0x37d   : > { %4659 = vmatprep.subr.bf16.mxu1 %v5838_v59 }
 0x37f   : > { %3004 = vmatpush1.bf16.msra.mxu0 %v6335_v34  ;;  %v6381_v34 = vld [vmem:[%s7038_s1 + $0x734] ss:$8 sps:$4 sm:$0xff]  }
 0x380   : > { %3005 = vmatprep.subr.bf16.mxu0 %v6340_v36  ;;  %v6384_v36 = vld [vmem:[%s7038_s1 + $0x744] ss:$8 sps:$4 sm:$0xff]  }
 0x383   : > { %3006 = vmatpush1.bf16.msra.mxu0 %v6338_v38  ;;  %v6390_v38 = vld [vmem:[%s7038_s1 + $0x764] ss:$8 sps:$4 sm:$0xff]  }
 0x384   : > { %3007 = vmatprep.subr.bf16.mxu0 %v6343_v25  ;;  %v6393_v25 = vld [vmem:[%s7038_s1 + $0x774] ss:$8 sps:$4 sm:$0xff]  }
 0x387   : > { %3008 = vmatpush1.bf16.msra.mxu0 %v6341_v41  ;;  %v6399_v41 = vld [vmem:[%s7038_s1 + $0x794] ss:$8 sps:$4 sm:$0xff]  }
 0x388   : > { %3009 = vmatprep.subr.bf16.mxu0 %v6346_v43  ;;  %v6402_v43 = vld [vmem:[%s7038_s1 + $0x7a4] ss:$8 sps:$4 sm:$0xff]  }
 0x38b   : > { %3010 = vmatpush1.bf16.msra.mxu0 %v6344_v47  ;;  %v6408_v47 = vld [vmem:[%s7038_s1 + $0x7c4] ss:$8 sps:$4 sm:$0xff]  }
 0x38c   : > { %3011 = vmatprep.subr.bf16.mxu0 %v6349_v49  ;;  %v6411_v49 = vld [vmem:[%s7038_s1 + $0x7d4] ss:$8 sps:$4 sm:$0xff]  }
 0x38f   : > { %3012 = vmatpush1.bf16.msra.mxu0 %v6347_v53  ;;  %v6417_v53 = vld [vmem:[%s7038_s1 + $0x7f4] ss:$8 sps:$4 sm:$0xff]  }
 0x390   : > { %3013 = vmatprep.subr.bf16.mxu0 %v6352_v55  ;;  %v5355_v55 = vcombine.low %v7386_v26, %v7386_v26 }
 0x393   : > { %3014 = vmatpush1.bf16.msra.mxu0 %v6350_v60  ;;  %v5837_v60 = vcombine.low %v3319_v56, %v3327_v57  ;;  %v3256_v56 = vld [vmem:[%s7047_s15 + $0x508] sm:$0xff] }
 0x394   : > { %3015 = vmatprep.subr.bf16.mxu0 %v6355_v62  ;;  %v3343_v62 = vld [vmem:[%s7047_s15 + $0x7c0] sm:$0xff]  ;;  %v3264_v57 = vld [vmem:[%s7047_s15 + $0x548] sm:$0xff] }
 0x395   : > { %4660 = vmatpush1.bf16.msra.mxu1 %v5837_v60  ;;  %v5854_v63 = vcombine.high %v3335_v61, %v3343_v62  ;;  %v5853_v0 = vcombine.low %v3335_v61, %v3343_v62  ;;  %v5776_v60 = vcombine.high %v3256_v56, %v3264_v57  ;;  %v3272_v61 = vld [vmem:[%s7047_s15 + $0x588] sm:$0xff] }
 0x396   : > { %v3280_v62 = vld [vmem:[%s7047_s15 + $0x5c8] sm:$0xff] }
 0x397   : > { %3016 = vmatpush1.bf16.msra.mxu0 %v6353_v2  ;;  %4661 = vmatprep.subr.bf16.mxu1 %v5854_v63  ;;  %v3104_v2 = vld [vmem:[%s7047_s15 + $0x48] sm:$0xff]  ;;  %v5775_v63 = vcombine.low %v3256_v56, %v3264_v57  ;;  %v3241_v57 = vld [vmem:[%s7047_s15 + $0x490] sm:$0xff] }
 0x398   : > { %3017 = vmatprep.subr.bf16.mxu0 %v6358_v4  ;;  %v5616_v3 = vcombine.high %v3096_v1, %v3104_v2  ;;  %v5615_v4 = vcombine.low %v3096_v1, %v3104_v2  ;;  %v3288_v1 = vld [vmem:[%s7047_s15 + $0x608] sm:$0xff] }
 0x399   : > { %4662 = vmatpush1.bf16.msra.mxu1 %v5853_v0  ;;  %v5792_v0 = vcombine.high %v3272_v61, %v3280_v62  ;;  %v3296_v2 = vld [vmem:[%s7047_s15 + $0x648] sm:$0xff] }
 0x39a   : > { %4672 = vmatprep.subr.bf16.mxu1 %v5616_v3  ;;  %v5791_v3 = vcombine.low %v3272_v61, %v3280_v62  ;;  %v3257_v62 = vld [vmem:[%s7047_s15 + $0x510] sm:$0xff] }
 0x39b   : > { %3018 = vmatpush1.bf16.msra.mxu0 %v6356_v13  ;;  %v1399_v13 = vld [vmem:[%s364_s14] sm:$0x3] }
 0x39c   : > { %3019 = vmatprep.subr.bf16.mxu0 %v6361_v15  ;;  %v1404_v15 = vrot.slane %v1399_v13, %v7434_v12  ;;  %v1408_v16 = vrot.slane %v1399_v13, %v7439_v14  ;;  %v3312_v13 = vld [vmem:[%s7047_s15 + $0x6c8] sm:$0xff] }
 0x39f   : > { %3020 = vmatpush1.bf16.msra.mxu0 %v6359_v8 }
 0x3a0   : > { %3021 = vmatprep.subr.bf16.mxu0 %v6364_v10 }
 0x3a3   : > { %3022 = vmatpush1.bf16.msra.mxu0 %v6362_v20 }
 0x3a4   : > { %3023 = vmatprep.subr.bf16.mxu0 %v6367_v21 }
 0x3a7   : > { %3024 = vmatpush1.bf16.msra.mxu0 %v6365_v22  ;;  %v3112_v22 = vld [vmem:[%s7047_s15 + $0x88] sm:$0xff] }
 0x3a8   : > { %3034 = vmatprep.subr.bf16.mxu0 %v6372_v23  ;;  %v3120_v23 = vld [vmem:[%s7047_s15 + $0xc8] sm:$0xff] }
 0x3aa   : > { %3026 = vmatmul.mubr.bf16.vlgmr.msra.gmra.mrb[0].mxu0 %v5353_v27 }
 0x3ab   : > { %3035 = vmatpush1.bf16.msra.mxu0 %v6370_v28  ;;  %3066 = vmatprep.mubr.bf16.mxu0 %v5356_v29  ;;  %v5632_v28 = vcombine.high %v3112_v22, %v3120_v23  ;;  %v3128_v29 = vld [vmem:[%s7047_s15 + $0x108] sm:$0xff] }
 0x3ac   : > { %3036 = vmatprep.subr.bf16.mxu0 %v6375_v31  ;;  %v3136_v31 = vld [vmem:[%s7047_s15 + $0x148] sm:$0xff] }
 0x3af   : > { %3037 = vmatpush1.bf16.msra.mxu0 %v6373_v32  ;;  %v5631_v32 = vcombine.low %v3112_v22, %v3120_v23  ;;  %v3097_v22 = vld [vmem:[%s7047_s15 + $0x10] sm:$0xff] }
 0x3b0   : > { %3038 = vmatprep.subr.bf16.mxu0 %v6378_v33  ;;  %v5648_v33 = vcombine.high %v3128_v29, %v3136_v31  ;;  %v3105_v23 = vld [vmem:[%s7047_s15 + $0x50] sm:$0xff] }
 0x3b3   : > { %3039 = vmatpush1.bf16.msra.mxu0 %v6376_v58  ;;  %v3144_v58 = vld [vmem:[%s7047_s15 + $0x188] sm:$0xff] }
 0x3b4   : > { %3040 = vmatprep.subr.bf16.mxu0 %v6381_v34  ;;  %v3152_v34 = vld [vmem:[%s7047_s15 + $0x1c8] sm:$0xff] }
 0x3b7   : > { %3041 = vmatpush1.bf16.msra.mxu0 %v6379_v35  ;;  %v5647_v35 = vcombine.low %v3128_v29, %v3136_v31  ;;  %v5618_v29 = vcombine.high %v3097_v22, %v3105_v23  ;;  %v3113_v31 = vld [vmem:[%s7047_s15 + $0x90] sm:$0xff] }
 0x3b8   : > { %3042 = vmatprep.subr.bf16.mxu0 %v6384_v36  ;;  %v5664_v36 = vcombine.high %v3144_v58, %v3152_v34 }
 0x3bb   : > { %3043 = vmatpush1.bf16.msra.mxu0 %v6382_v37  ;;  %v3160_v37 = vld [vmem:[%s7047_s15 + $0x208] sm:$0xff] }
 0x3bc   : > { %3044 = vmatprep.subr.bf16.mxu0 %v6387_v5  ;;  %v3168_v5 = vld [vmem:[%s7047_s15 + $0x248] sm:$0xff] }
 0x3bf   : > { %3045 = vmatpush1.bf16.msra.mxu0 %v6385_v19  ;;  %v5663_v19 = vcombine.low %v3144_v58, %v3152_v34  ;;  %v3129_v34 = vld [vmem:[%s7047_s15 + $0x110] sm:$0xff] }
 0x3c0   : > { %3046 = vmatprep.subr.bf16.mxu0 %v6390_v38  ;;  %v5680_v38 = vcombine.high %v3160_v37, %v3168_v5 }
 0x3c3   : > { %3047 = vmatpush1.bf16.msra.mxu0 %v6388_v24  ;;  %v3176_v24 = vld [vmem:[%s7047_s15 + $0x288] sm:$0xff] }
 0x3c4   : > { %3048 = vmatprep.subr.bf16.mxu0 %v6393_v25  ;;  %v3184_v25 = vld [vmem:[%s7047_s15 + $0x2c8] sm:$0xff] }
 0x3c7   : > { %3049 = vmatpush1.bf16.msra.mxu0 %v6391_v39  ;;  %v5679_v39 = vcombine.low %v3160_v37, %v3168_v5  ;;  %v3145_v5 = vld [vmem:[%s7047_s15 + $0x190] sm:$0xff] }
 0x3c8   : > { %3050 = vmatprep.subr.bf16.mxu0 %v6396_v30  ;;  %v5696_v30 = vcombine.high %v3176_v24, %v3184_v25 }
 0x3cb   : > { %3051 = vmatpush1.bf16.msra.mxu0 %v6394_v40  ;;  %v3192_v40 = vld [vmem:[%s7047_s15 + $0x308] sm:$0xff] }
 0x3cc   : > { %3052 = vmatprep.subr.bf16.mxu0 %v6399_v41  ;;  %v3200_v41 = vld [vmem:[%s7047_s15 + $0x348] sm:$0xff] }
 0x3cf   : > { %3053 = vmatpush1.bf16.msra.mxu0 %v6397_v42  ;;  %v5695_v42 = vcombine.low %v3176_v24, %v3184_v25  ;;  %v3161_v25 = vld [vmem:[%s7047_s15 + $0x210] sm:$0xff] }
 0x3d0   : > { %3054 = vmatprep.subr.bf16.mxu0 %v6402_v43  ;;  %v5712_v43 = vcombine.high %v3192_v40, %v3200_v41 }
 0x3d3   : > { %3055 = vmatpush1.bf16.msra.mxu0 %v6400_v44  ;;  %v3208_v44 = vld [vmem:[%s7047_s15 + $0x388] sm:$0xff] }
 0x3d4   : > { %3056 = vmatprep.subr.bf16.mxu0 %v6405_v45  ;;  %v3216_v45 = vld [vmem:[%s7047_s15 + $0x3c8] sm:$0xff] }
 0x3d7   : > { %3057 = vmatpush1.bf16.msra.mxu0 %v6403_v46  ;;  %v5711_v46 = vcombine.low %v3192_v40, %v3200_v41  ;;  %v3177_v41 = vld [vmem:[%s7047_s15 + $0x290] sm:$0xff] }
 0x3d8   : > { %3058 = vmatprep.subr.bf16.mxu0 %v6408_v47  ;;  %v5728_v47 = vcombine.high %v3208_v44, %v3216_v45 }
 0x3db   : > { %3059 = vmatpush1.bf16.msra.mxu0 %v6406_v48  ;;  %v3224_v48 = vld [vmem:[%s7047_s15 + $0x408] sm:$0xff] }
 0x3dc   : > { %3060 = vmatprep.subr.bf16.mxu0 %v6411_v49  ;;  %v3232_v49 = vld [vmem:[%s7047_s15 + $0x448] sm:$0xff] }
 0x3df   : > { %3061 = vmatpush1.bf16.msra.mxu0 %v6409_v50  ;;  %v5727_v50 = vcombine.low %v3208_v44, %v3216_v45  ;;  %v3193_v45 = vld [vmem:[%s7047_s15 + $0x310] sm:$0xff] }
 0x3e0   : > { %3062 = vmatprep.subr.bf16.mxu0 %v6414_v51  ;;  %v5744_v51 = vcombine.high %v3224_v48, %v3232_v49 }
 0x3e3   : > { %3063 = vmatpush1.bf16.msra.mxu0 %v6412_v52  ;;  %v3240_v52 = vld [vmem:[%s7047_s15 + $0x488] sm:$0xff] }
 0x3e4   : > { %3064 = vmatprep.subr.bf16.mxu0 %v6417_v53  ;;  %v3248_v53 = vld [vmem:[%s7047_s15 + $0x4c8] sm:$0xff] }
 0x3e5   : > { %v5759_v59 = vcombine.low %v3240_v52, %v3248_v53 }
 0x3e7   : > { %3065 = vmatpush1.bf16.msra.mxu0 %v6415_v54  ;;  %v5743_v54 = vcombine.low %v3224_v48, %v3232_v49  ;;  %v3209_v49 = vld [vmem:[%s7047_s15 + $0x390] sm:$0xff] }
 0x3ea   : > { %3067 = vmatmul.mubr.bf16.vlgmr.msra.gmra.mrb[0].mxu0 %v5355_v55  ;;  %v5760_v55 = vcombine.high %v3240_v52, %v3248_v53  ;;  %v3225_v53 = vld [vmem:[%s7047_s15 + $0x410] sm:$0xff] }
 0x4bd   : > { %v3068_v6 = vpop.f32.mrb[0].mxu0 }
 0x4be   : > { %v5886_v17 = vadd.f32 %v3068_v6, %v1404_v15  ;;  %v3070_v8 = vpop.f32.mrb[1].mxu0  ;;  %v5807_v15 = vcombine.low %v3288_v1, %v3296_v2  ;;  %v3320_v6 = vld [vmem:[%s7047_s15 + $0x708] sm:$0xff] }
 0x4bf   : > { %v5887_v9 = vadd.f32 %v3070_v8, %v1408_v16  ;;  %v3072_v10 = vpop.f32.mrb[2].mxu0  ;;  %v5824_v16 = vcombine.high %v3304_v7, %v3312_v13  ;;  %v5823_v8 = vcombine.low %v3304_v7, %v3312_v13  ;;  %v3289_v13 = vld [vmem:[%s7047_s15 + $0x610] sm:$0xff] }
 0x4c0   : > { %v3075_v18 = vmax.f32 %v5886_v17, 0.0  ;;  %v3073_v20 = vpop.f32.mrb[3].mxu0  ;;  %v3328_v17 = vld [vmem:[%s7047_s15 + $0x748] sm:$0xff] }
 0x4c1   : > { %v3076_v21 = vmax.f32 %v5887_v9, 0.0  ;;  %v5840_v9 = vcombine.high %v3320_v6, %v3328_v17  ;;  %v3336_v10 = vld [vmem:[%s7047_s15 + $0x788] sm:$0xff]  ;;  %v5839_v20 = vcombine.low %v3320_v6, %v3328_v17  ;;  %v3305_v17 = vld [vmem:[%s7047_s15 + $0x690] sm:$0xff] }
 0x4c2   : > { %v7447_v27 = vpack.c.bf16 %v3075_v18, %v3075_v18  ;;  %v3344_v18 = vld [vmem:[%s7047_s15 + $0x7c8] sm:$0xff] }
 0x4c3   : > { %v7445_v26 = vpack.c.bf16 %v3076_v21, %v3076_v21  ;;  %v5856_v21 = vcombine.high %v3336_v10, %v3344_v18 }
 0x4c5   : > { %4663 = vmatprep.mubr.bf16.mxu1 %v7445_v26 }
 0x4c6   : > { %4664 = vmatmul.mubr.bf16.vlgmr.msra.gmra.mrb[0].mxu1 %v7447_v27 }
 0x4c7   : > { %4673 = vmatpush1.bf16.msra.mxu1 %v5615_v4  ;;  %4704 = vmatprep.mubr.bf16.mxu1 %v7445_v26  ;;  %v5808_v4 = vcombine.high %v3288_v1, %v3296_v2  ;;  %v3273_v2 = vld [vmem:[%s7047_s15 + $0x590] sm:$0xff] }
 0x4c8   : > { %4674 = vmatprep.subr.bf16.mxu1 %v5632_v28  ;;  %v5855_v28 = vcombine.low %v3336_v10, %v3344_v18  ;;  %v3321_v18 = vld [vmem:[%s7047_s15 + $0x710] sm:$0xff] }
 0x4cb   : > { %4675 = vmatpush1.bf16.msra.mxu1 %v5631_v32  ;;  %v3121_v32 = vld [vmem:[%s7047_s15 + $0xd0] sm:$0xff] }
 0x4cc   : > { %4676 = vmatprep.subr.bf16.mxu1 %v5648_v33  ;;  %v5617_v33 = vcombine.low %v3097_v22, %v3105_v23  ;;  %v5634_v58 = vcombine.high %v3113_v31, %v3121_v32  ;;  %v3337_v23 = vld [vmem:[%s7047_s15 + $0x790] sm:$0xff] }
 0x4cf   : > { %4677 = vmatpush1.bf16.msra.mxu1 %v5647_v35  ;;  %v3137_v35 = vld [vmem:[%s7047_s15 + $0x150] sm:$0xff] }
 0x4d0   : > { %4678 = vmatprep.subr.bf16.mxu1 %v5664_v36  ;;  %v5633_v36 = vcombine.low %v3113_v31, %v3121_v32  ;;  %v5650_v37 = vcombine.high %v3129_v34, %v3137_v35  ;;  %v3098_v32 = vld [vmem:[%s7047_s15 + $0x18] sm:$0xff] }
 0x4d3   : > { %4679 = vmatpush1.bf16.msra.mxu1 %v5663_v19  ;;  %v3153_v19 = vld [vmem:[%s7047_s15 + $0x1d0] sm:$0xff] }
 0x4d4   : > { %4680 = vmatprep.subr.bf16.mxu1 %v5680_v38  ;;  %v5649_v38 = vcombine.low %v3129_v34, %v3137_v35  ;;  %v5666_v24 = vcombine.high %v3145_v5, %v3153_v19  ;;  %v3114_v35 = vld [vmem:[%s7047_s15 + $0x98] sm:$0xff] }
 0x4d7   : > { %4681 = vmatpush1.bf16.msra.mxu1 %v5679_v39  ;;  %v3169_v39 = vld [vmem:[%s7047_s15 + $0x250] sm:$0xff] }
 0x4d8   : > { %4682 = vmatprep.subr.bf16.mxu1 %v5696_v30  ;;  %v5665_v30 = vcombine.low %v3145_v5, %v3153_v19  ;;  %v5682_v40 = vcombine.high %v3161_v25, %v3169_v39  ;;  %v3130_v19 = vld [vmem:[%s7047_s15 + $0x118] sm:$0xff] }
 0x4db   : > { %4683 = vmatpush1.bf16.msra.mxu1 %v5695_v42  ;;  %v3185_v42 = vld [vmem:[%s7047_s15 + $0x2d0] sm:$0xff] }
 0x4dc   : > { %4684 = vmatprep.subr.bf16.mxu1 %v5712_v43  ;;  %v5681_v43 = vcombine.low %v3161_v25, %v3169_v39  ;;  %v5698_v44 = vcombine.high %v3177_v41, %v3185_v42  ;;  %v3146_v39 = vld [vmem:[%s7047_s15 + $0x198] sm:$0xff] }
 0x4df   : > { %4685 = vmatpush1.bf16.msra.mxu1 %v5711_v46  ;;  %v3201_v46 = vld [vmem:[%s7047_s15 + $0x350] sm:$0xff] }
 0x4e0   : > { %4686 = vmatprep.subr.bf16.mxu1 %v5728_v47  ;;  %v5697_v47 = vcombine.low %v3177_v41, %v3185_v42  ;;  %v5714_v48 = vcombine.high %v3193_v45, %v3201_v46  ;;  %v3162_v42 = vld [vmem:[%s7047_s15 + $0x218] sm:$0xff] }
 0x4e3   : > { %4687 = vmatpush1.bf16.msra.mxu1 %v5727_v50  ;;  %v3217_v50 = vld [vmem:[%s7047_s15 + $0x3d0] sm:$0xff] }
 0x4e4   : > { %4688 = vmatprep.subr.bf16.mxu1 %v5744_v51  ;;  %v5713_v51 = vcombine.low %v3193_v45, %v3201_v46  ;;  %v5730_v52 = vcombine.high %v3209_v49, %v3217_v50  ;;  %v3178_v46 = vld [vmem:[%s7047_s15 + $0x298] sm:$0xff] }
 0x4e7   : > { %4689 = vmatpush1.bf16.msra.mxu1 %v5743_v54  ;;  %v3233_v54 = vld [vmem:[%s7047_s15 + $0x450] sm:$0xff] }
 0x4e8   : > { %4690 = vmatprep.subr.bf16.mxu1 %v5760_v55  ;;  %v5729_v55 = vcombine.low %v3209_v49, %v3217_v50  ;;  %v5746_v56 = vcombine.high %v3225_v53, %v3233_v54  ;;  %v3194_v50 = vld [vmem:[%s7047_s15 + $0x318] sm:$0xff] }
 0x4eb   : > { %4691 = vmatpush1.bf16.msra.mxu1 %v5759_v59  ;;  %v3249_v59 = vld [vmem:[%s7047_s15 + $0x4d0] sm:$0xff] }
 0x4ec   : > { %4692 = vmatprep.subr.bf16.mxu1 %v5776_v60  ;;  %v5745_v60 = vcombine.low %v3225_v53, %v3233_v54  ;;  %v5762_v61 = vcombine.high %v3241_v57, %v3249_v59  ;;  %v3210_v54 = vld [vmem:[%s7047_s15 + $0x398] sm:$0xff] }
 0x4ef   : > { %4693 = vmatpush1.bf16.msra.mxu1 %v5775_v63  ;;  %v3265_v63 = vld [vmem:[%s7047_s15 + $0x550] sm:$0xff] }
 0x4f0   : > { %4694 = vmatprep.subr.bf16.mxu1 %v5792_v0  ;;  %v5761_v0 = vcombine.low %v3241_v57, %v3249_v59  ;;  %v5778_v1 = vcombine.high %v3257_v62, %v3265_v63  ;;  %v3226_v59 = vld [vmem:[%s7047_s15 + $0x418] sm:$0xff] }
 0x4f3   : > { %4695 = vmatpush1.bf16.msra.mxu1 %v5791_v3  ;;  %v3281_v3 = vld [vmem:[%s7047_s15 + $0x5d0] sm:$0xff] }
 0x4f4   : > { %4696 = vmatprep.subr.bf16.mxu1 %v5808_v4  ;;  %v5777_v4 = vcombine.low %v3257_v62, %v3265_v63  ;;  %v5794_v7 = vcombine.high %v3273_v2, %v3281_v3  ;;  %v3242_v63 = vld [vmem:[%s7047_s15 + $0x498] sm:$0xff] }
 0x4f7   : > { %4697 = vmatpush1.bf16.msra.mxu1 %v5807_v15  ;;  %v3297_v15 = vld [vmem:[%s7047_s15 + $0x650] sm:$0xff] }
 0x4f8   : > { %4698 = vmatprep.subr.bf16.mxu1 %v5824_v16  ;;  %v5793_v16 = vcombine.low %v3273_v2, %v3281_v3  ;;  %v5810_v6 = vcombine.high %v3289_v13, %v3297_v15  ;;  %v3258_v3 = vld [vmem:[%s7047_s15 + $0x518] sm:$0xff] }
 0x4fb   : > { %4699 = vmatpush1.bf16.msra.mxu1 %v5823_v8  ;;  %v3313_v8 = vld [vmem:[%s7047_s15 + $0x6d0] sm:$0xff] }
 0x4fc   : > { %4700 = vmatprep.subr.bf16.mxu1 %v5840_v9  ;;  %v5809_v9 = vcombine.low %v3289_v13, %v3297_v15  ;;  %v5826_v10 = vcombine.high %v3305_v17, %v3313_v8  ;;  %v3274_v15 = vld [vmem:[%s7047_s15 + $0x598] sm:$0xff] }
 0x4ff   : > { %4701 = vmatpush1.bf16.msra.mxu1 %v5839_v20  ;;  %v3329_v20 = vld [vmem:[%s7047_s15 + $0x750] sm:$0xff] }
 0x500   : > { %4702 = vmatprep.subr.bf16.mxu1 %v5856_v21  ;;  %v5825_v21 = vcombine.low %v3305_v17, %v3313_v8  ;;  %v5842_v22 = vcombine.high %v3321_v18, %v3329_v20  ;;  %v3290_v8 = vld [vmem:[%s7047_s15 + $0x618] sm:$0xff] }
 0x503   : > { %4703 = vmatpush1.bf16.msra.mxu1 %v5855_v28  ;;  %v3345_v28 = vld [vmem:[%s7047_s15 + $0x7d0] sm:$0xff] }
 0x504   : > { %4713 = vmatprep.subr.bf16.mxu1 %v5618_v29  ;;  %v5841_v29 = vcombine.low %v3321_v18, %v3329_v20  ;;  %v5858_v31 = vcombine.high %v3337_v23, %v3345_v28  ;;  %v3306_v20 = vld [vmem:[%s7047_s15 + $0x698] sm:$0xff] }
 0x506   : > { %4705 = vmatmul.mubr.bf16.vlgmr.msra.gmra.mrb[4].mxu1 %v7447_v27 }
 0x507   : > { %4714 = vmatpush1.bf16.msra.mxu1 %v5617_v33  ;;  %4745 = vmatprep.mubr.bf16.mxu1 %v7445_v26  ;;  %v3106_v33 = vld [vmem:[%s7047_s15 + $0x58] sm:$0xff] }
 0x508   : > { %4715 = vmatprep.subr.bf16.mxu1 %v5634_v58  ;;  %v5857_v58 = vcombine.low %v3337_v23, %v3345_v28  ;;  %v5620_v34 = vcombine.high %v3098_v32, %v3106_v33  ;;  %v3322_v28 = vld [vmem:[%s7047_s15 + $0x718] sm:$0xff] }
 0x50b   : > { %4716 = vmatpush1.bf16.msra.mxu1 %v5633_v36  ;;  %v3122_v36 = vld [vmem:[%s7047_s15 + $0xd8] sm:$0xff] }
 0x50c   : > { %4717 = vmatprep.subr.bf16.mxu1 %v5650_v37  ;;  %v5619_v37 = vcombine.low %v3098_v32, %v3106_v33  ;;  %v5636_v5 = vcombine.high %v3114_v35, %v3122_v36  ;;  %v3338_v33 = vld [vmem:[%s7047_s15 + $0x798] sm:$0xff] }
 0x50f   : > { %4718 = vmatpush1.bf16.msra.mxu1 %v5649_v38  ;;  %v3138_v38 = vld [vmem:[%s7047_s15 + $0x158] sm:$0xff] }
 0x510   : > { %4719 = vmatprep.subr.bf16.mxu1 %v5666_v24  ;;  %v5635_v24 = vcombine.low %v3114_v35, %v3122_v36  ;;  %v5652_v25 = vcombine.high %v3130_v19, %v3138_v38  ;;  %v3099_v36 = vld [vmem:[%s7047_s15 + $0x20] sm:$0xff] }
 0x513   : > { %4720 = vmatpush1.bf16.msra.mxu1 %v5665_v30  ;;  %v3154_v30 = vld [vmem:[%s7047_s15 + $0x1d8] sm:$0xff] }
 0x514   : > { %4721 = vmatprep.subr.bf16.mxu1 %v5682_v40  ;;  %v5651_v40 = vcombine.low %v3130_v19, %v3138_v38  ;;  %v5668_v41 = vcombine.high %v3146_v39, %v3154_v30  ;;  %v3115_v38 = vld [vmem:[%s7047_s15 + $0xa0] sm:$0xff] }
 0x517   : > { %4722 = vmatpush1.bf16.msra.mxu1 %v5681_v43  ;;  %v3170_v43 = vld [vmem:[%s7047_s15 + $0x258] sm:$0xff] }
 0x518   : > { %4723 = vmatprep.subr.bf16.mxu1 %v5698_v44  ;;  %v5667_v44 = vcombine.low %v3146_v39, %v3154_v30  ;;  %v5684_v45 = vcombine.high %v3162_v42, %v3170_v43  ;;  %v3131_v30 = vld [vmem:[%s7047_s15 + $0x120] sm:$0xff] }
 0x51b   : > { %4724 = vmatpush1.bf16.msra.mxu1 %v5697_v47  ;;  %v3186_v47 = vld [vmem:[%s7047_s15 + $0x2d8] sm:$0xff] }
 0x51c   : > { %4725 = vmatprep.subr.bf16.mxu1 %v5714_v48  ;;  %v5683_v48 = vcombine.low %v3162_v42, %v3170_v43  ;;  %v5700_v49 = vcombine.high %v3178_v46, %v3186_v47  ;;  %v3147_v43 = vld [vmem:[%s7047_s15 + $0x1a0] sm:$0xff] }
 0x51f   : > { %4726 = vmatpush1.bf16.msra.mxu1 %v5713_v51  ;;  %v3202_v51 = vld [vmem:[%s7047_s15 + $0x358] sm:$0xff] }
 0x520   : > { %4727 = vmatprep.subr.bf16.mxu1 %v5730_v52  ;;  %v5699_v52 = vcombine.low %v3178_v46, %v3186_v47  ;;  %v5716_v53 = vcombine.high %v3194_v50, %v3202_v51  ;;  %v3163_v47 = vld [vmem:[%s7047_s15 + $0x220] sm:$0xff] }
 0x523   : > { %4728 = vmatpush1.bf16.msra.mxu1 %v5729_v55  ;;  %v3218_v55 = vld [vmem:[%s7047_s15 + $0x3d8] sm:$0xff] }
 0x524   : > { %4729 = vmatprep.subr.bf16.mxu1 %v5746_v56  ;;  %v5715_v56 = vcombine.low %v3194_v50, %v3202_v51  ;;  %v5732_v57 = vcombine.high %v3210_v54, %v3218_v55  ;;  %v3179_v51 = vld [vmem:[%s7047_s15 + $0x2a0] sm:$0xff] }
 0x527   : > { %4730 = vmatpush1.bf16.msra.mxu1 %v5745_v60  ;;  %v3234_v60 = vld [vmem:[%s7047_s15 + $0x458] sm:$0xff] }
 0x528   : > { %4731 = vmatprep.subr.bf16.mxu1 %v5762_v61  ;;  %v5731_v61 = vcombine.low %v3210_v54, %v3218_v55  ;;  %v5748_v62 = vcombine.high %v3226_v59, %v3234_v60  ;;  %v3195_v55 = vld [vmem:[%s7047_s15 + $0x320] sm:$0xff] }
 0x52b   : > { %4732 = vmatpush1.bf16.msra.mxu1 %v5761_v0  ;;  %v3250_v0 = vld [vmem:[%s7047_s15 + $0x4d8] sm:$0xff] }
 0x52c   : > { %4733 = vmatprep.subr.bf16.mxu1 %v5778_v1  ;;  %v5747_v1 = vcombine.low %v3226_v59, %v3234_v60  ;;  %v5764_v2 = vcombine.high %v3242_v63, %v3250_v0  ;;  %v3078_v60 = vld [vmem:[#allocation3 + $0x8] sm:$0xff] }
 0x52f   : > { %4734 = vmatpush1.bf16.msra.mxu1 %v5777_v4  ;;  %v3266_v4 = vld [vmem:[%s7047_s15 + $0x558] sm:$0xff] }
 0x530   : > { %4735 = vmatprep.subr.bf16.mxu1 %v5794_v7  ;;  %v5763_v7 = vcombine.low %v3242_v63, %v3250_v0  ;;  %v5780_v13 = vcombine.high %v3258_v3, %v3266_v4  ;;  %v3211_v63 = vld [vmem:[%s7047_s15 + $0x3a0] sm:$0xff] }
 0x531   : > { %v3219_v0 = vld [vmem:[%s7047_s15 + $0x3e0] sm:$0xff] }
 0x533   : > { %4736 = vmatpush1.bf16.msra.mxu1 %v5793_v16  ;;  %v3282_v16 = vld [vmem:[%s7047_s15 + $0x5d8] sm:$0xff] }
 0x534   : > { %4737 = vmatprep.subr.bf16.mxu1 %v5810_v6  ;;  %v5779_v6 = vcombine.low %v3258_v3, %v3266_v4  ;;  %v5796_v17 = vcombine.high %v3274_v15, %v3282_v16 }
 0x537   : > { %4738 = vmatpush1.bf16.msra.mxu1 %v5809_v9  ;;  %v3298_v9 = vld [vmem:[%s7047_s15 + $0x658] sm:$0xff] }
 0x538   : > { %4739 = vmatprep.subr.bf16.mxu1 %v5826_v10  ;;  %v5795_v10 = vcombine.low %v3274_v15, %v3282_v16  ;;  %v5812_v18 = vcombine.high %v3290_v8, %v3298_v9  ;;  %v5734_v15 = vcombine.high %v3211_v63, %v3219_v0  ;;  %v3227_v16 = vld [vmem:[%s7047_s15 + $0x420] sm:$0xff] }
 0x53b   : > { %4740 = vmatpush1.bf16.msra.mxu1 %v5825_v21  ;;  %v3314_v21 = vld [vmem:[%s7047_s15 + $0x6d8] sm:$0xff] }
 0x53c   : > { %4741 = vmatprep.subr.bf16.mxu1 %v5842_v22  ;;  %v5811_v22 = vcombine.low %v3290_v8, %v3298_v9  ;;  %v5828_v23 = vcombine.high %v3306_v20, %v3314_v21  ;;  %v3243_v9 = vld [vmem:[%s7047_s15 + $0x4a0] sm:$0xff] }
 0x53f   : > { %4742 = vmatpush1.bf16.msra.mxu1 %v5841_v29  ;;  %v3330_v29 = vld [vmem:[%s7047_s15 + $0x758] sm:$0xff] }
 0x540   : > { %4743 = vmatprep.subr.bf16.mxu1 %v5858_v31  ;;  %v5827_v31 = vcombine.low %v3306_v20, %v3314_v21  ;;  %v5844_v32 = vcombine.high %v3322_v28, %v3330_v29  ;;  %v3259_v21 = vld [vmem:[%s7047_s15 + $0x520] sm:$0xff] }
 0x543   : > { %4744 = vmatpush1.bf16.msra.mxu1 %v5857_v58  ;;  %v3346_v58 = vld [vmem:[%s7047_s15 + $0x7d8] sm:$0xff] }
 0x544   : > { %4754 = vmatprep.subr.bf16.mxu1 %v5620_v34  ;;  %v5843_v34 = vcombine.low %v3322_v28, %v3330_v29  ;;  %v5860_v35 = vcombine.high %v3338_v33, %v3346_v58  ;;  %v3275_v29 = vld [vmem:[%s7047_s15 + $0x5a0] sm:$0xff] }
 0x546   : > { %4746 = vmatmul.mubr.bf16.vlgmr.msra.gmra.mrb[8].mxu1 %v7447_v27 }
 0x547   : > { %4755 = vmatpush1.bf16.msra.mxu1 %v5619_v37  ;;  %4786 = vmatprep.mubr.bf16.mxu1 %v7445_v26  ;;  %v3107_v37 = vld [vmem:[%s7047_s15 + $0x60] sm:$0xff] }
 0x548   : > { %4756 = vmatprep.subr.bf16.mxu1 %v5636_v5  ;;  %v5859_v5 = vcombine.low %v3338_v33, %v3346_v58  ;;  %v5622_v19 = vcombine.high %v3099_v36, %v3107_v37  ;;  %v3291_v58 = vld [vmem:[%s7047_s15 + $0x620] sm:$0xff] }
 0x54b   : > { %4757 = vmatpush1.bf16.msra.mxu1 %v5635_v24  ;;  %v3123_v24 = vld [vmem:[%s7047_s15 + $0xe0] sm:$0xff] }
 0x54c   : > { %4758 = vmatprep.subr.bf16.mxu1 %v5652_v25  ;;  %v5621_v25 = vcombine.low %v3099_v36, %v3107_v37  ;;  %v5638_v39 = vcombine.high %v3115_v38, %v3123_v24  ;;  %v3307_v37 = vld [vmem:[%s7047_s15 + $0x6a0] sm:$0xff] }
 0x54f   : > { %4759 = vmatpush1.bf16.msra.mxu1 %v5651_v40  ;;  %v3139_v40 = vld [vmem:[%s7047_s15 + $0x160] sm:$0xff] }
 0x550   : > { %4760 = vmatprep.subr.bf16.mxu1 %v5668_v41  ;;  %v5637_v41 = vcombine.low %v3115_v38, %v3123_v24  ;;  %v5654_v42 = vcombine.high %v3131_v30, %v3139_v40  ;;  %v3323_v24 = vld [vmem:[%s7047_s15 + $0x720] sm:$0xff] }
 0x553   : > { %4761 = vmatpush1.bf16.msra.mxu1 %v5667_v44  ;;  %v3155_v44 = vld [vmem:[%s7047_s15 + $0x1e0] sm:$0xff] }
 0x554   : > { %4762 = vmatprep.subr.bf16.mxu1 %v5684_v45  ;;  %v5653_v45 = vcombine.low %v3131_v30, %v3139_v40  ;;  %v5670_v46 = vcombine.high %v3147_v43, %v3155_v44  ;;  %v3339_v40 = vld [vmem:[%s7047_s15 + $0x7a0] sm:$0xff] }
 0x557   : > { %4763 = vmatpush1.bf16.msra.mxu1 %v5683_v48  ;;  %v3171_v48 = vld [vmem:[%s7047_s15 + $0x260] sm:$0xff] }
 0x558   : > { %4764 = vmatprep.subr.bf16.mxu1 %v5700_v49  ;;  %v5669_v49 = vcombine.low %v3147_v43, %v3155_v44  ;;  %v5686_v50 = vcombine.high %v3163_v47, %v3171_v48  ;;  %v3100_v44 = vld [vmem:[%s7047_s15 + $0x28] sm:$0xff] }
 0x55b   : > { %4765 = vmatpush1.bf16.msra.mxu1 %v5699_v52  ;;  %v3187_v52 = vld [vmem:[%s7047_s15 + $0x2e0] sm:$0xff] }
 0x55c   : > { %4766 = vmatprep.subr.bf16.mxu1 %v5716_v53  ;;  %v5685_v53 = vcombine.low %v3163_v47, %v3171_v48  ;;  %v5702_v54 = vcombine.high %v3179_v51, %v3187_v52  ;;  %v5701_v59 = vcombine.low %v3179_v51, %v3187_v52  ;;  %v3116_v48 = vld [vmem:[%s7047_s15 + $0xa8] sm:$0xff] }
 0x55d   : > { %v3132_v52 = vld [vmem:[%s7047_s15 + $0x128] sm:$0xff] }
 0x55f   : > { %4767 = vmatpush1.bf16.msra.mxu1 %v5715_v56  ;;  %v3203_v56 = vld [vmem:[%s7047_s15 + $0x360] sm:$0xff] }
 0x560   : > { %4768 = vmatprep.subr.bf16.mxu1 %v5732_v57  ;;  %v3077_v57 = vld [vmem:[#allocation3] sm:$0xff] }
 0x563   : > { %4769 = vmatpush1.bf16.msra.mxu1 %v5731_v61  ;;  %v5718_v61 = vcombine.high %v3195_v55, %v3203_v56 }
 0x564   : > { %4770 = vmatprep.subr.bf16.mxu1 %v5748_v62 }
 0x567   : > { %4771 = vmatpush1.bf16.msra.mxu1 %v5747_v1 }
 0x568   : > { %4772 = vmatprep.subr.bf16.mxu1 %v5764_v2 }
 0x56b   : > { %4773 = vmatpush1.bf16.msra.mxu1 %v5763_v7  ;;  %v5717_v7 = vcombine.low %v3195_v55, %v3203_v56  ;;  %v3148_v56 = vld [vmem:[%s7047_s15 + $0x1a8] sm:$0xff] }
 0x56c   : > { %4774 = vmatprep.subr.bf16.mxu1 %v5780_v13 }
 0x56f   : > { %4775 = vmatpush1.bf16.msra.mxu1 %v5779_v6  ;;  %v3235_v6 = vld [vmem:[%s7047_s15 + $0x460] sm:$0xff] }
 0x570   : > { %4776 = vmatprep.subr.bf16.mxu1 %v5796_v17  ;;  %v5733_v17 = vcombine.low %v3211_v63, %v3219_v0  ;;  %v5750_v8 = vcombine.high %v3227_v16, %v3235_v6 }
 0x573   : > { %4777 = vmatpush1.bf16.msra.mxu1 %v5795_v10  ;;  %v3251_v10 = vld [vmem:[%s7047_s15 + $0x4e0] sm:$0xff] }
 0x574   : > { %4778 = vmatprep.subr.bf16.mxu1 %v5812_v18  ;;  %v5749_v18 = vcombine.low %v3227_v16, %v3235_v6  ;;  %v5766_v20 = vcombine.high %v3243_v9, %v3251_v10  ;;  %v3080_v6 = vld [vmem:[#allocation3 + $0x18] sm:$0xff] }
 0x577   : > { %4779 = vmatpush1.bf16.msra.mxu1 %v5811_v22  ;;  %v3267_v22 = vld [vmem:[%s7047_s15 + $0x560] sm:$0xff] }
 0x578   : > { %4780 = vmatprep.subr.bf16.mxu1 %v5828_v23  ;;  %v5765_v23 = vcombine.low %v3243_v9, %v3251_v10  ;;  %v5782_v28 = vcombine.high %v3259_v21, %v3267_v22  ;;  %v3212_v9 = vld [vmem:[%s7047_s15 + $0x3a8] sm:$0xff] }
 0x579   : > { %v3220_v10 = vld [vmem:[%s7047_s15 + $0x3e8] sm:$0xff] }
 0x57b   : > { %4781 = vmatpush1.bf16.msra.mxu1 %v5827_v31  ;;  %v3283_v31 = vld [vmem:[%s7047_s15 + $0x5e0] sm:$0xff] }
 0x57c   : > { %4782 = vmatprep.subr.bf16.mxu1 %v5844_v32  ;;  %v5781_v32 = vcombine.low %v3259_v21, %v3267_v22  ;;  %v5798_v33 = vcombine.high %v3275_v29, %v3283_v31 }
 0x57f   : > { %4783 = vmatpush1.bf16.msra.mxu1 %v5843_v34  ;;  %v3299_v34 = vld [vmem:[%s7047_s15 + $0x660] sm:$0xff] }
 0x580   : > { %4784 = vmatprep.subr.bf16.mxu1 %v5860_v35  ;;  %v5797_v35 = vcombine.low %v3275_v29, %v3283_v31  ;;  %v5814_v36 = vcombine.high %v3291_v58, %v3299_v34  ;;  %v5736_v29 = vcombine.high %v3212_v9, %v3220_v10  ;;  %v3228_v31 = vld [vmem:[%s7047_s15 + $0x428] sm:$0xff] }
 0x583   : > { %4785 = vmatpush1.bf16.msra.mxu1 %v5859_v5  ;;  %v3315_v5 = vld [vmem:[%s7047_s15 + $0x6e0] sm:$0xff] }
 0x584   : > { %4795 = vmatprep.subr.bf16.mxu1 %v5622_v19  ;;  %v5813_v19 = vcombine.low %v3291_v58, %v3299_v34  ;;  %v5830_v38 = vcombine.high %v3307_v37, %v3315_v5  ;;  %v3244_v34 = vld [vmem:[%s7047_s15 + $0x4a8] sm:$0xff] }
 0x586   : > { %4787 = vmatmul.mubr.bf16.vlgmr.msra.gmra.mrb[12].mxu1 %v7447_v27 }
 0x587   : > { %4796 = vmatpush1.bf16.msra.mxu1 %v5621_v25  ;;  %4827 = vmatprep.mubr.bf16.mxu1 %v7445_v26  ;;  %v3331_v25 = vld [vmem:[%s7047_s15 + $0x760] sm:$0xff] }
 0x588   : > { %4797 = vmatprep.subr.bf16.mxu1 %v5638_v39  ;;  %v5829_v39 = vcombine.low %v3307_v37, %v3315_v5  ;;  %v5846_v30 = vcombine.high %v3323_v24, %v3331_v25  ;;  %v3260_v5 = vld [vmem:[%s7047_s15 + $0x528] sm:$0xff] }
 0x58b   : > { %4798 = vmatpush1.bf16.msra.mxu1 %v5637_v41  ;;  %v3347_v41 = vld [vmem:[%s7047_s15 + $0x7e0] sm:$0xff] }
 0x58c   : > { %4799 = vmatprep.subr.bf16.mxu1 %v5654_v42  ;;  %v5845_v42 = vcombine.low %v3323_v24, %v3331_v25  ;;  %v5862_v43 = vcombine.high %v3339_v40, %v3347_v41  ;;  %v3276_v25 = vld [vmem:[%s7047_s15 + $0x5a8] sm:$0xff] }
 0x58f   : > { %4800 = vmatpush1.bf16.msra.mxu1 %v5653_v45  ;;  %v3108_v45 = vld [vmem:[%s7047_s15 + $0x68] sm:$0xff] }
 0x590   : > { %4801 = vmatprep.subr.bf16.mxu1 %v5670_v46  ;;  %v5861_v46 = vcombine.low %v3339_v40, %v3347_v41  ;;  %v5624_v47 = vcombine.high %v3100_v44, %v3108_v45  ;;  %v3292_v41 = vld [vmem:[%s7047_s15 + $0x628] sm:$0xff] }
 0x593   : > { %4802 = vmatpush1.bf16.msra.mxu1 %v5669_v49  ;;  %v3124_v49 = vld [vmem:[%s7047_s15 + $0xe8] sm:$0xff] }
 0x594   : > { %4803 = vmatprep.subr.bf16.mxu1 %v5686_v50  ;;  %v5623_v50 = vcombine.low %v3100_v44, %v3108_v45  ;;  %v5640_v51 = vcombine.high %v3116_v48, %v3124_v49  ;;  %v3308_v45 = vld [vmem:[%s7047_s15 + $0x6a8] sm:$0xff] }
 0x597   : > { %4804 = vmatpush1.bf16.msra.mxu1 %v5685_v53  ;;  %v3140_v53 = vld [vmem:[%s7047_s15 + $0x168] sm:$0xff] }
 0x598   : > { %4805 = vmatprep.subr.bf16.mxu1 %v5702_v54  ;;  %v5639_v54 = vcombine.low %v3116_v48, %v3124_v49  ;;  %v5656_v55 = vcombine.high %v3132_v52, %v3140_v53  ;;  %v3324_v49 = vld [vmem:[%s7047_s15 + $0x728] sm:$0xff] }
 0x599   : > { %v4665_v62 = vpop.f32.mrb[0].mxu1 }
 0x59a   : > { %v4959_v1 = vadd.f32 %v4665_v62, %v3077_v57  ;;  %v4667_v2 = vpop.f32.mrb[1].mxu1  ;;  %v3156_v57 = vld [vmem:[%s7047_s15 + $0x1e8] sm:$0xff] }
 0x59b   : > { %v4960_v3 = vadd.f32 %v4667_v2, %v3078_v60  ;;  %4806 = vmatpush1.bf16.msra.mxu1 %v5701_v59  ;;  %v4669_v4 = vpop.f32.mrb[2].mxu1  ;;  %v5655_v59 = vcombine.low %v3132_v52, %v3140_v53  ;;  %v5672_v60 = vcombine.high %v3148_v56, %v3156_v57  ;;  %v3172_v62 = vld [vmem:[%s7047_s15 + $0x268] sm:$0xff]  ;;  %v5671_v63 = vcombine.low %v3148_v56, %v3156_v57  ;;  %v3101_v57 = vld [vmem:[%s7047_s15 + $0x30] sm:$0xff] }
 0x59c   : > { %4975 = vst [vmem:[#allocation3] sm:$0xff] %v4959_v1  ;;  %v4670_v13 = vpop.f32.mrb[3].mxu1  ;;  %4807 = vmatprep.subr.bf16.mxu1 %v5718_v61  ;;  %v3164_v61 = vld [vmem:[%s7047_s15 + $0x228] sm:$0xff] }
 0x59d   : > { %4976 = vst [vmem:[#allocation3 + $0x8] sm:$0xff] %v4960_v3  ;;  %v5688_v0 = vcombine.high %v3164_v61, %v3172_v62  ;;  %v3180_v1 = vld [vmem:[%s7047_s15 + $0x2a8] sm:$0xff]  ;;  %v5687_v3 = vcombine.low %v3164_v61, %v3172_v62  ;;  %v3117_v62 = vld [vmem:[%s7047_s15 + $0xb0] sm:$0xff] }
 0x59e   : > { %v3188_v2 = vld [vmem:[%s7047_s15 + $0x2e8] sm:$0xff] }
 0x59f   : > { %4808 = vmatpush1.bf16.msra.mxu1 %v5717_v7  ;;  %v5704_v4 = vcombine.high %v3180_v1, %v3188_v2  ;;  %v3196_v7 = vld [vmem:[%s7047_s15 + $0x328] sm:$0xff]  ;;  %v5703_v16 = vcombine.low %v3180_v1, %v3188_v2  ;;  %v3133_v2 = vld [vmem:[%s7047_s15 + $0x130] sm:$0xff] }
 0x5a0   : > { %4809 = vmatprep.subr.bf16.mxu1 %v5734_v15  ;;  %v3204_v13 = vld [vmem:[%s7047_s15 + $0x368] sm:$0xff]  ;;  %v3079_v15 = vld [vmem:[#allocation3 + $0x10] sm:$0xff] }
 0x5a1   : > { %v3340_v53 = vld [vmem:[%s7047_s15 + $0x7a8] sm:$0xff] }
 0x5a3   : > { %4810 = vmatpush1.bf16.msra.mxu1 %v5733_v17  ;;  %v5720_v17 = vcombine.high %v3196_v7, %v3204_v13 }
 0x5a4   : > { %4811 = vmatprep.subr.bf16.mxu1 %v5750_v8 }
 0x5a7   : > { %4812 = vmatpush1.bf16.msra.mxu1 %v5749_v18 }
 0x5a8   : > { %4813 = vmatprep.subr.bf16.mxu1 %v5766_v20 }
 0x5ab   : > { %4814 = vmatpush1.bf16.msra.mxu1 %v5765_v23  ;;  %v5719_v23 = vcombine.low %v3196_v7, %v3204_v13  ;;  %v3149_v13 = vld [vmem:[%s7047_s15 + $0x1b0] sm:$0xff] }
 0x5ac   : > { %4815 = vmatprep.subr.bf16.mxu1 %v5782_v28 }
 0x5af   : > { %4816 = vmatpush1.bf16.msra.mxu1 %v5781_v32  ;;  %v3236_v32 = vld [vmem:[%s7047_s15 + $0x468] sm:$0xff] }
 0x5b0   : > { %4817 = vmatprep.subr.bf16.mxu1 %v5798_v33  ;;  %v5735_v33 = vcombine.low %v3212_v9, %v3220_v10  ;;  %v5752_v58 = vcombine.high %v3228_v31, %v3236_v32 }
 0x5b3   : > { %4818 = vmatpush1.bf16.msra.mxu1 %v5797_v35  ;;  %v3252_v35 = vld [vmem:[%s7047_s15 + $0x4e8] sm:$0xff] }
 0x5b4   : > { %4819 = vmatprep.subr.bf16.mxu1 %v5814_v36  ;;  %v5751_v36 = vcombine.low %v3228_v31, %v3236_v32  ;;  %v5768_v37 = vcombine.high %v3244_v34, %v3252_v35  ;;  %v3082_v32 = vld [vmem:[#allocation3 + $0x28] sm:$0xff] }
 0x5b7   : > { %4820 = vmatpush1.bf16.msra.mxu1 %v5813_v19  ;;  %v3268_v19 = vld [vmem:[%s7047_s15 + $0x568] sm:$0xff] }
 0x5b8   : > { %4821 = vmatprep.subr.bf16.mxu1 %v5830_v38  ;;  %v5767_v38 = vcombine.low %v3244_v34, %v3252_v35  ;;  %v5784_v24 = vcombine.high %v3260_v5, %v3268_v19  ;;  %v3213_v34 = vld [vmem:[%s7047_s15 + $0x3b0] sm:$0xff] }
 0x5b9   : > { %v3221_v35 = vld [vmem:[%s7047_s15 + $0x3f0] sm:$0xff] }
 0x5bb   : > { %4822 = vmatpush1.bf16.msra.mxu1 %v5829_v39  ;;  %v3284_v39 = vld [vmem:[%s7047_s15 + $0x5e8] sm:$0xff] }
 0x5bc   : > { %4823 = vmatprep.subr.bf16.mxu1 %v5846_v30  ;;  %v5783_v30 = vcombine.low %v3260_v5, %v3268_v19  ;;  %v5800_v40 = vcombine.high %v3276_v25, %v3284_v39 }
 0x5bf   : > { %4824 = vmatpush1.bf16.msra.mxu1 %v5845_v42  ;;  %v3300_v42 = vld [vmem:[%s7047_s15 + $0x668] sm:$0xff] }
 0x5c0   : > { %4825 = vmatprep.subr.bf16.mxu1 %v5862_v43  ;;  %v5799_v43 = vcombine.low %v3276_v25, %v3284_v39  ;;  %v5816_v44 = vcombine.high %v3292_v41, %v3300_v42  ;;  %v5738_v25 = vcombine.high %v3213_v34, %v3221_v35  ;;  %v3229_v39 = vld [vmem:[%s7047_s15 + $0x430] sm:$0xff] }
 0x5c3   : > { %4826 = vmatpush1.bf16.msra.mxu1 %v5861_v46  ;;  %v3316_v46 = vld [vmem:[%s7047_s15 + $0x6e8] sm:$0xff] }
 0x5c4   : > { %4836 = vmatprep.subr.bf16.mxu1 %v5624_v47  ;;  %v5815_v47 = vcombine.low %v3292_v41, %v3300_v42  ;;  %v5832_v48 = vcombine.high %v3308_v45, %v3316_v46  ;;  %v3245_v42 = vld [vmem:[%s7047_s15 + $0x4b0] sm:$0xff] }
 0x5c6   : > { %4828 = vmatmul.mubr.bf16.vlgmr.msra.gmra.mrb[16].mxu1 %v7447_v27 }
 0x5c7   : > { %4837 = vmatpush1.bf16.msra.mxu1 %v5623_v50  ;;  %4868 = vmatprep.mubr.bf16.mxu1 %v7445_v26  ;;  %v3332_v50 = vld [vmem:[%s7047_s15 + $0x768] sm:$0xff] }
 0x5c8   : > { %4838 = vmatprep.subr.bf16.mxu1 %v5640_v51  ;;  %v5831_v51 = vcombine.low %v3308_v45, %v3316_v46  ;;  %v5848_v52 = vcombine.high %v3324_v49, %v3332_v50  ;;  %v3261_v46 = vld [vmem:[%s7047_s15 + $0x530] sm:$0xff] }
 0x5cb   : > { %4839 = vmatpush1.bf16.msra.mxu1 %v5639_v54  ;;  %v3348_v54 = vld [vmem:[%s7047_s15 + $0x7e8] sm:$0xff] }
 0x5cc   : > { %4840 = vmatprep.subr.bf16.mxu1 %v5656_v55  ;;  %v5847_v55 = vcombine.low %v3324_v49, %v3332_v50  ;;  %v5864_v56 = vcombine.high %v3340_v53, %v3348_v54  ;;  %v3277_v50 = vld [vmem:[%s7047_s15 + $0x5b0] sm:$0xff] }
 0x5cf   : > { %4841 = vmatpush1.bf16.msra.mxu1 %v5655_v59  ;;  %v3109_v59 = vld [vmem:[%s7047_s15 + $0x70] sm:$0xff] }
 0x5d0   : > { %4842 = vmatprep.subr.bf16.mxu1 %v5672_v60  ;;  %v5863_v60 = vcombine.low %v3340_v53, %v3348_v54  ;;  %v5626_v61 = vcombine.high %v3101_v57, %v3109_v59  ;;  %v3293_v54 = vld [vmem:[%s7047_s15 + $0x630] sm:$0xff] }
 0x5d3   : > { %4843 = vmatpush1.bf16.msra.mxu1 %v5671_v63  ;;  %v3125_v63 = vld [vmem:[%s7047_s15 + $0xf0] sm:$0xff] }
 0x5d4   : > { %4844 = vmatprep.subr.bf16.mxu1 %v5688_v0  ;;  %v5625_v0 = vcombine.low %v3101_v57, %v3109_v59  ;;  %v5642_v1 = vcombine.high %v3117_v62, %v3125_v63  ;;  %v3309_v59 = vld [vmem:[%s7047_s15 + $0x6b0] sm:$0xff] }
 0x5d7   : > { %4845 = vmatpush1.bf16.msra.mxu1 %v5687_v3  ;;  %v3141_v3 = vld [vmem:[%s7047_s15 + $0x170] sm:$0xff] }
 0x5d8   : > { %4846 = vmatprep.subr.bf16.mxu1 %v5704_v4  ;;  %v5641_v4 = vcombine.low %v3117_v62, %v3125_v63  ;;  %v5658_v7 = vcombine.high %v3133_v2, %v3141_v3  ;;  %v3325_v63 = vld [vmem:[%s7047_s15 + $0x730] sm:$0xff] }
 0x5d9   : > { %v4706_v8 = vpop.f32.mrb[4].mxu1 }
 0x5da   : > { %v4961_v18 = vadd.f32 %v4706_v8, %v3079_v15  ;;  %v4708_v20 = vpop.f32.mrb[5].mxu1  ;;  %v3157_v15 = vld [vmem:[%s7047_s15 + $0x1f0] sm:$0xff] }
 0x5db   : > { %v4962_v21 = vadd.f32 %v4708_v20, %v3080_v6  ;;  %v4710_v22 = vpop.f32.mrb[6].mxu1  ;;  %4847 = vmatpush1.bf16.msra.mxu1 %v5703_v16  ;;  %v5657_v16 = vcombine.low %v3133_v2, %v3141_v3  ;;  %v5674_v6 = vcombine.high %v3149_v13, %v3157_v15  ;;  %v3173_v8 = vld [vmem:[%s7047_s15 + $0x270] sm:$0xff]  ;;  %v5673_v9 = vcombine.low %v3149_v13, %v3157_v15  ;;  %v3102_v15 = vld [vmem:[%s7047_s15 + $0x38] sm:$0xff] }
 0x5dc   : > { %4977 = vst [vmem:[#allocation3 + $0x10] sm:$0xff] %v4961_v18  ;;  %v4711_v28 = vpop.f32.mrb[7].mxu1  ;;  %4848 = vmatprep.subr.bf16.mxu1 %v5720_v17  ;;  %v3165_v17 = vld [vmem:[%s7047_s15 + $0x230] sm:$0xff] }
 0x5dd   : > { %4978 = vst [vmem:[#allocation3 + $0x18] sm:$0xff] %v4962_v21  ;;  %v5690_v10 = vcombine.high %v3165_v17, %v3173_v8  ;;  %v3181_v18 = vld [vmem:[%s7047_s15 + $0x2b0] sm:$0xff]  ;;  %v5689_v21 = vcombine.low %v3165_v17, %v3173_v8  ;;  %v3118_v8 = vld [vmem:[%s7047_s15 + $0xb8] sm:$0xff] }
 0x5de   : > { %v3189_v20 = vld [vmem:[%s7047_s15 + $0x2f0] sm:$0xff] }
 0x5df   : > { %4849 = vmatpush1.bf16.msra.mxu1 %v5719_v23  ;;  %v5706_v22 = vcombine.high %v3181_v18, %v3189_v20  ;;  %v3197_v23 = vld [vmem:[%s7047_s15 + $0x330] sm:$0xff]  ;;  %v5705_v31 = vcombine.low %v3181_v18, %v3189_v20  ;;  %v3134_v20 = vld [vmem:[%s7047_s15 + $0x138] sm:$0xff] }
 0x5e0   : > { %4850 = vmatprep.subr.bf16.mxu1 %v5736_v29  ;;  %v3205_v28 = vld [vmem:[%s7047_s15 + $0x370] sm:$0xff]  ;;  %v3081_v29 = vld [vmem:[#allocation3 + $0x20] sm:$0xff] }
 0x5e1   : > { %v3341_v3 = vld [vmem:[%s7047_s15 + $0x7b0] sm:$0xff] }
 0x5e3   : > { %4851 = vmatpush1.bf16.msra.mxu1 %v5735_v33  ;;  %v5722_v33 = vcombine.high %v3197_v23, %v3205_v28 }
 0x5e4   : > { %4852 = vmatprep.subr.bf16.mxu1 %v5752_v58 }
 0x5e7   : > { %4853 = vmatpush1.bf16.msra.mxu1 %v5751_v36 }
 0x5e8   : > { %4854 = vmatprep.subr.bf16.mxu1 %v5768_v37 }
 0x5eb   : > { %4855 = vmatpush1.bf16.msra.mxu1 %v5767_v38  ;;  %v5721_v38 = vcombine.low %v3197_v23, %v3205_v28  ;;  %v3150_v28 = vld [vmem:[%s7047_s15 + $0x1b8] sm:$0xff] }
 0x5ec   : > { %4856 = vmatprep.subr.bf16.mxu1 %v5784_v24 }
 0x5ef   : > { %4857 = vmatpush1.bf16.msra.mxu1 %v5783_v30  ;;  %v3237_v30 = vld [vmem:[%s7047_s15 + $0x470] sm:$0xff] }
 0x5f0   : > { %4858 = vmatprep.subr.bf16.mxu1 %v5800_v40  ;;  %v5737_v40 = vcombine.low %v3213_v34, %v3221_v35  ;;  %v5754_v41 = vcombine.high %v3229_v39, %v3237_v30 }
 0x5f3   : > { %4859 = vmatpush1.bf16.msra.mxu1 %v5799_v43  ;;  %v3253_v43 = vld [vmem:[%s7047_s15 + $0x4f0] sm:$0xff] }
 0x5f4   : > { %4860 = vmatprep.subr.bf16.mxu1 %v5816_v44  ;;  %v5753_v44 = vcombine.low %v3229_v39, %v3237_v30  ;;  %v5770_v45 = vcombine.high %v3245_v42, %v3253_v43  ;;  %v3084_v39 = vld [vmem:[#allocation3 + $0x38] sm:$0xff] }
 0x5f7   : > { %4861 = vmatpush1.bf16.msra.mxu1 %v5815_v47  ;;  %v3269_v47 = vld [vmem:[%s7047_s15 + $0x570] sm:$0xff] }
 0x5f8   : > { %4862 = vmatprep.subr.bf16.mxu1 %v5832_v48  ;;  %v5769_v48 = vcombine.low %v3245_v42, %v3253_v43  ;;  %v5786_v49 = vcombine.high %v3261_v46, %v3269_v47  ;;  %v3222_v42 = vld [vmem:[%s7047_s15 + $0x3f8] sm:$0xff] }
 0x5fb   : > { %4863 = vmatpush1.bf16.msra.mxu1 %v5831_v51  ;;  %v3285_v51 = vld [vmem:[%s7047_s15 + $0x5f0] sm:$0xff] }
 0x5fc   : > { %4864 = vmatprep.subr.bf16.mxu1 %v5848_v52  ;;  %v5785_v52 = vcombine.low %v3261_v46, %v3269_v47  ;;  %v5802_v53 = vcombine.high %v3277_v50, %v3285_v51 }
 0x5ff   : > { %4865 = vmatpush1.bf16.msra.mxu1 %v5847_v55  ;;  %v3301_v55 = vld [vmem:[%s7047_s15 + $0x670] sm:$0xff] }
 0x600   : > { %4866 = vmatprep.subr.bf16.mxu1 %v5864_v56  ;;  %v5801_v56 = vcombine.low %v3277_v50, %v3285_v51  ;;  %v5818_v57 = vcombine.high %v3293_v54, %v3301_v55  ;;  %v3230_v50 = vld [vmem:[%s7047_s15 + $0x438] sm:$0xff] }
 0x601   : > { %v3238_v51 = vld [vmem:[%s7047_s15 + $0x478] sm:$0xff] }
 0x603   : > { %4867 = vmatpush1.bf16.msra.mxu1 %v5863_v60  ;;  %v3317_v60 = vld [vmem:[%s7047_s15 + $0x6f0] sm:$0xff] }
 0x604   : > { %4877 = vmatprep.subr.bf16.mxu1 %v5626_v61  ;;  %v5817_v61 = vcombine.low %v3293_v54, %v3301_v55  ;;  %v5834_v62 = vcombine.high %v3309_v59, %v3317_v60  ;;  %v3246_v54 = vld [vmem:[%s7047_s15 + $0x4b8] sm:$0xff] }
 0x605   : > { %v3254_v55 = vld [vmem:[%s7047_s15 + $0x4f8] sm:$0xff] }
 0x606   : > { %4869 = vmatmul.mubr.bf16.vlgmr.msra.gmra.mrb[20].mxu1 %v7447_v27 }
 0x607   : > { %4878 = vmatpush1.bf16.msra.mxu1 %v5625_v0  ;;  %4909 = vmatprep.mubr.bf16.mxu1 %v7445_v26  ;;  %v3333_v0 = vld [vmem:[%s7047_s15 + $0x770] sm:$0xff] }
 0x608   : > { %4879 = vmatprep.subr.bf16.mxu1 %v5642_v1  ;;  %v5833_v1 = vcombine.low %v3309_v59, %v3317_v60  ;;  %v5850_v2 = vcombine.high %v3325_v63, %v3333_v0  ;;  %v3262_v59 = vld [vmem:[%s7047_s15 + $0x538] sm:$0xff] }
 0x609   : > { %v3270_v60 = vld [vmem:[%s7047_s15 + $0x578] sm:$0xff] }
 0x60b   : > { %4880 = vmatpush1.bf16.msra.mxu1 %v5641_v4  ;;  %v3349_v4 = vld [vmem:[%s7047_s15 + $0x7f0] sm:$0xff] }
 0x60c   : > { %4881 = vmatprep.subr.bf16.mxu1 %v5658_v7  ;;  %v5849_v7 = vcombine.low %v3325_v63, %v3333_v0  ;;  %v5866_v13 = vcombine.high %v3341_v3, %v3349_v4  ;;  %v3278_v63 = vld [vmem:[%s7047_s15 + $0x5b8] sm:$0xff] }
 0x60d   : > { %v3286_v0 = vld [vmem:[%s7047_s15 + $0x5f8] sm:$0xff] }
 0x60f   : > { %4882 = vmatpush1.bf16.msra.mxu1 %v5657_v16  ;;  %v3110_v16 = vld [vmem:[%s7047_s15 + $0x78] sm:$0xff] }
 0x610   : > { %4883 = vmatprep.subr.bf16.mxu1 %v5674_v6  ;;  %v5865_v6 = vcombine.low %v3341_v3, %v3349_v4  ;;  %v5628_v17 = vcombine.high %v3102_v15, %v3110_v16  ;;  %v3294_v3 = vld [vmem:[%s7047_s15 + $0x638] sm:$0xff] }
 0x611   : > { %v3302_v4 = vld [vmem:[%s7047_s15 + $0x678] sm:$0xff] }
 0x613   : > { %4884 = vmatpush1.bf16.msra.mxu1 %v5673_v9  ;;  %v3126_v9 = vld [vmem:[%s7047_s15 + $0xf8] sm:$0xff] }
 0x614   : > { %4885 = vmatprep.subr.bf16.mxu1 %v5690_v10  ;;  %v5627_v10 = vcombine.low %v3102_v15, %v3110_v16  ;;  %v5644_v18 = vcombine.high %v3118_v8, %v3126_v9  ;;  %v3310_v15 = vld [vmem:[%s7047_s15 + $0x6b8] sm:$0xff] }
 0x615   : > { %v3318_v16 = vld [vmem:[%s7047_s15 + $0x6f8] sm:$0xff] }
 0x617   : > { %4886 = vmatpush1.bf16.msra.mxu1 %v5689_v21  ;;  %v3142_v21 = vld [vmem:[%s7047_s15 + $0x178] sm:$0xff] }
 0x618   : > { %4887 = vmatprep.subr.bf16.mxu1 %v5706_v22  ;;  %v5643_v22 = vcombine.low %v3118_v8, %v3126_v9  ;;  %v5660_v23 = vcombine.high %v3134_v20, %v3142_v21  ;;  %v3326_v8 = vld [vmem:[%s7047_s15 + $0x738] sm:$0xff] }
 0x619   : > { %v4747_v58 = vpop.f32.mrb[8].mxu1  ;;  %v3334_v9 = vld [vmem:[%s7047_s15 + $0x778] sm:$0xff] }
 0x61a   : > { %v4963_v36 = vadd.f32 %v4747_v58, %v3081_v29  ;;  %v4749_v37 = vpop.f32.mrb[9].mxu1  ;;  %v3158_v29 = vld [vmem:[%s7047_s15 + $0x1f8] sm:$0xff] }
 0x61b   : > { %v4964_v5 = vadd.f32 %v4749_v37, %v3082_v32  ;;  %v4751_v19 = vpop.f32.mrb[10].mxu1  ;;  %4888 = vmatpush1.bf16.msra.mxu1 %v5705_v31  ;;  %v5659_v31 = vcombine.low %v3134_v20, %v3142_v21  ;;  %v5676_v32 = vcombine.high %v3150_v28, %v3158_v29  ;;  %v3174_v58 = vld [vmem:[%s7047_s15 + $0x278] sm:$0xff]  ;;  %v5675_v34 = vcombine.low %v3150_v28, %v3158_v29  ;;  %v3085_v29 = vld [vmem:[#allocation3 + $0x40] sm:$0xff] }
 0x61c   : > { %4979 = vst [vmem:[#allocation3 + $0x20] sm:$0xff] %v4963_v36  ;;  %v4752_v24 = vpop.f32.mrb[11].mxu1  ;;  %4889 = vmatprep.subr.bf16.mxu1 %v5722_v33  ;;  %v3166_v33 = vld [vmem:[%s7047_s15 + $0x238] sm:$0xff] }
 0x61d   : > { %4980 = vst [vmem:[#allocation3 + $0x28] sm:$0xff] %v4964_v5  ;;  %v5692_v35 = vcombine.high %v3166_v33, %v3174_v58  ;;  %v3190_v36 = vld [vmem:[%s7047_s15 + $0x2f8] sm:$0xff]  ;;  %v5691_v37 = vcombine.low %v3166_v33, %v3174_v58 }
 0x61e   : > { %v3198_v19 = vld [vmem:[%s7047_s15 + $0x338] sm:$0xff] }
 0x61f   : > { %4890 = vmatpush1.bf16.msra.mxu1 %v5721_v38  ;;  %v3206_v38 = vld [vmem:[%s7047_s15 + $0x378] sm:$0xff] }
 0x620   : > { %4891 = vmatprep.subr.bf16.mxu1 %v5738_v25  ;;  %v3083_v24 = vld [vmem:[#allocation3 + $0x30] sm:$0xff]  ;;  %v5724_v30 = vcombine.high %v3198_v19, %v3206_v38  ;;  %v5723_v47 = vcombine.low %v3198_v19, %v3206_v38 }
 0x621   : > { %v3342_v20 = vld [vmem:[%s7047_s15 + $0x7b8] sm:$0xff] }
 0x622   : > { %v3350_v21 = vld [vmem:[%s7047_s15 + $0x7f8] sm:$0xff] }
 0x623   : > { %4892 = vmatpush1.bf16.msra.mxu1 %v5737_v40  ;;  %v5867_v28 = vcombine.low %v3342_v20, %v3350_v21 }
 0x624   : > { %4893 = vmatprep.subr.bf16.mxu1 %v5754_v41  ;;  %v3214_v41 = vld [vmem:[%s7047_s15 + $0x3b8] sm:$0xff] }
 0x627   : > { %4894 = vmatpush1.bf16.msra.mxu1 %v5753_v44 }
 0x628   : > { %4895 = vmatprep.subr.bf16.mxu1 %v5770_v45 }
 0x62b   : > { %4896 = vmatpush1.bf16.msra.mxu1 %v5769_v48 }
 0x62c   : > { %4897 = vmatprep.subr.bf16.mxu1 %v5786_v49  ;;  %v5740_v49 = vcombine.high %v3214_v41, %v3222_v42 }
 0x62f   : > { %4898 = vmatpush1.bf16.msra.mxu1 %v5785_v52  ;;  %v5739_v52 = vcombine.low %v3214_v41, %v3222_v42 }
 0x630   : > { %4899 = vmatprep.subr.bf16.mxu1 %v5802_v53  ;;  %v5756_v53 = vcombine.high %v3230_v50, %v3238_v51 }
 0x633   : > { %4900 = vmatpush1.bf16.msra.mxu1 %v5801_v56  ;;  %v5755_v56 = vcombine.low %v3230_v50, %v3238_v51 }
 0x634   : > { %4901 = vmatprep.subr.bf16.mxu1 %v5818_v57  ;;  %v5772_v57 = vcombine.high %v3246_v54, %v3254_v55 }
 0x637   : > { %4902 = vmatpush1.bf16.msra.mxu1 %v5817_v61  ;;  %v5771_v61 = vcombine.low %v3246_v54, %v3254_v55  ;;  %v4995_v54 = vld [vmem:[#allocation3] sm:$0xff] (!%p5869_p4) }
 0x638   : > { %4903 = vmatprep.subr.bf16.mxu1 %v5834_v62  ;;  %v5788_v62 = vcombine.high %v3262_v59, %v3270_v60  ;;  %v5011_v55 = vld [vmem:[#allocation15] sm:$0xff] (!%p5869_p4) }
 0x63b   : > { %4904 = vmatpush1.bf16.msra.mxu1 %v5833_v1  ;;  %v5787_v1 = vcombine.low %v3262_v59, %v3270_v60  ;;  %v5029_v59 = vsub.s32 (!%p5869_p4), 3, %v7431_v11  ;;  %v5033_v60 = vsub.s32 (!%p5869_p4), 4, %v7431_v11 }
 0x63c   : > { %4905 = vmatprep.subr.bf16.mxu1 %v5850_v2  ;;  %v5804_v2 = vcombine.high %v3278_v63, %v3286_v0 }
 0x63f   : > { %4906 = vmatpush1.bf16.msra.mxu1 %v5849_v7  ;;  %v5803_v7 = vcombine.low %v3278_v63, %v3286_v0  ;;  %v4997_v63 = vld [vmem:[#allocation3 + $0x10] sm:$0xff] (!%p5869_p4)  ;;  %v4998_v0 = vld [vmem:[#allocation3 + $0x18] sm:$0xff] (!%p5869_p4) }
 0x640   : > { %4907 = vmatprep.subr.bf16.mxu1 %v5866_v13  ;;  %v5820_v13 = vcombine.high %v3294_v3, %v3302_v4 }
 0x643   : > { %4908 = vmatpush1.bf16.msra.mxu1 %v5865_v6  ;;  %v5819_v6 = vcombine.low %v3294_v3, %v3302_v4  ;;  %v5041_v3 = vsub.s32 (!%p5869_p4), 6, %v7431_v11 }
 0x644   : > { %4918 = vmatprep.subr.bf16.mxu1 %v5628_v17  ;;  %v5836_v17 = vcombine.high %v3310_v15, %v3318_v16 }
 0x646   : > { %4910 = vmatmul.mubr.bf16.vlgmr.msra.gmra.mrb[24].mxu1 %v7447_v27 }
 0x647   : > { %4919 = vmatpush1.bf16.msra.mxu1 %v5627_v10  ;;  %4950 = vmatprep.mubr.bf16.mxu1 %v7445_v26  ;;  %v3182_v26 = vld [vmem:[%s7047_s15 + $0x2b8] sm:$0xff]  ;;  %v5835_v10 = vcombine.low %v3310_v15, %v3318_v16  ;;  %v5000_v15 = vld [vmem:[#allocation3 + $0x28] sm:$0xff] (!%p5869_p4) }
 0x648   : > { %4920 = vmatprep.subr.bf16.mxu1 %v5644_v18  ;;  %v5708_v5 = vcombine.high %v3182_v26, %v3190_v36  ;;  %v5707_v25 = vcombine.low %v3182_v26, %v3190_v36  ;;  %v5852_v18 = vcombine.high %v3326_v8, %v3334_v9  ;;  %v3087_v36 = vld [vmem:[#allocation3 + $0x50] sm:$0xff] }
 0x64b   : > { %4921 = vmatpush1.bf16.msra.mxu1 %v5643_v22  ;;  %v5851_v22 = vcombine.low %v3326_v8, %v3334_v9 }
 0x64c   : > { %4922 = vmatprep.subr.bf16.mxu1 %v5660_v23  ;;  %v5868_v23 = vcombine.high %v3342_v20, %v3350_v21  ;;  %v5012_v20 = vld [vmem:[#allocation15 + $0x8] sm:$0xff] (!%p5869_p4) }
 0x64f   : > { %4923 = vmatpush1.bf16.msra.mxu1 %v5659_v31  ;;  %v3086_v31 = vld [vmem:[#allocation3 + $0x48] sm:$0xff] }
 0x650   : > { %4924 = vmatprep.subr.bf16.mxu1 %v5676_v32 }
 0x653   : > { %4925 = vmatpush1.bf16.msra.mxu1 %v5675_v34 }
 0x654   : > { %4926 = vmatprep.subr.bf16.mxu1 %v5692_v35 }
 0x657   : > { %4927 = vmatpush1.bf16.msra.mxu1 %v5691_v37  ;;  %v3088_v37 = vld [vmem:[#allocation3 + $0x58] sm:$0xff] }
 0x658   : > { %4928 = vmatprep.subr.bf16.mxu1 %v5708_v5 }
 0x659   : > { %v4788_v40 = vpop.f32.mrb[12].mxu1 }
 0x65a   : > { %v4965_v43 = vadd.f32 %v4788_v40, %v3083_v24  ;;  %v4790_v44 = vpop.f32.mrb[13].mxu1 }
 0x65b   : > { %v4966_v45 = vadd.f32 %v4790_v44, %v3084_v39  ;;  %v4792_v46 = vpop.f32.mrb[14].mxu1  ;;  %4929 = vmatpush1.bf16.msra.mxu1 %v5707_v25 }
 0x65c   : > { %4981 = vst [vmem:[#allocation3 + $0x30] sm:$0xff] %v4965_v43  ;;  %v4793_v48 = vpop.f32.mrb[15].mxu1  ;;  %4930 = vmatprep.subr.bf16.mxu1 %v5724_v30  ;;  %v3090_v30 = vld [vmem:[#allocation3 + $0x68] sm:$0xff]  ;;  %v3091_v46 = vld [vmem:[#allocation3 + $0x70] sm:$0xff] }
 0x65d   : > { %4982 = vst [vmem:[#allocation3 + $0x38] sm:$0xff] %v4966_v45 }
 0x65f   : > { %4931 = vmatpush1.bf16.msra.mxu1 %v5723_v47  ;;  %v3092_v47 = vld [vmem:[#allocation3 + $0x78] sm:$0xff] }
 0x660   : > { %4932 = vmatprep.subr.bf16.mxu1 %v5740_v49 }
 0x663   : > { %4933 = vmatpush1.bf16.msra.mxu1 %v5739_v52  ;;  %v5001_v16 = vld [vmem:[#allocation3 + $0x30] sm:$0xff] (!%p5869_p4) }
 0x664   : > { %4934 = vmatprep.subr.bf16.mxu1 %v5756_v53 }
 0x667   : > { %4935 = vmatpush1.bf16.msra.mxu1 %v5755_v56  ;;  %v4996_v56 = vld [vmem:[#allocation3 + $0x8] sm:$0xff] (!%p5869_p4) }
 0x668   : > { %4936 = vmatprep.subr.bf16.mxu1 %v5772_v57  ;;  %v5025_v57 = vsub.s32 (!%p5869_p4), 2, %v7431_v11 }
 0x66a   : > { %v5026_v4 = vrot.slane (!%p5869_p4), %v5011_v55, %v5025_v57 }
 0x66b   : > { %4937 = vmatpush1.bf16.msra.mxu1 %v5771_v61  ;;  %v5018_v61 = vrot.slane (!%p5869_p4), %v5011_v55, %v7434_v12 }
 0x66c   : > { %4938 = vmatprep.subr.bf16.mxu1 %v5788_v62  ;;  %v5022_v62 = vrot.slane (!%p5869_p4), %v5011_v55, %v7439_v14  ;;  %v5097_v21 = vadd.f32 (!%p5869_p4), %v5026_v4, %v4997_v63 }
 0x66e   : > { %v5096_v8 = vadd.f32 (!%p5869_p4), %v5022_v62, %v4996_v56  ;;  %5113 = vst [vmem:[#allocation16 + $0x10] sm:$0xff] (!%p5869_p4), %v5097_v21 }
 0x66f   : > { %4939 = vmatpush1.bf16.msra.mxu1 %v5787_v1  ;;  %v4999_v1 = vld [vmem:[#allocation3 + $0x20] sm:$0xff] (!%p5869_p4) }
 0x670   : > { %4940 = vmatprep.subr.bf16.mxu1 %v5804_v2  ;;  %v5037_v2 = vsub.s32 (!%p5869_p4), 5, %v7431_v11  ;;  %5112 = vst [vmem:[#allocation16 + $0x8] sm:$0xff] (!%p5869_p4), %v5096_v8 }
 0x672   : > { %v5038_v9 = vrot.slane (!%p5869_p4), %v5011_v55, %v5037_v2 }
 0x673   : > { %4941 = vmatpush1.bf16.msra.mxu1 %v5803_v7  ;;  %v5030_v7 = vrot.slane (!%p5869_p4), %v5011_v55, %v5029_v59 }
 0x674   : > { %4942 = vmatprep.subr.bf16.mxu1 %v5820_v13  ;;  %v5034_v13 = vrot.slane (!%p5869_p4), %v5011_v55, %v5033_v60 }
 0x677   : > { %4943 = vmatpush1.bf16.msra.mxu1 %v5819_v6  ;;  %v5045_v6 = vsub.s32 (!%p5869_p4), 7, %v7431_v11  ;;  %v5054_v11 = vrot.slane (!%p5869_p4), %v5012_v20, %v7439_v14 }
 0x678   : > { %4944 = vmatprep.subr.bf16.mxu1 %v5836_v17  ;;  %v5095_v17 = vadd.f32 (!%p5869_p4), %v5018_v61, %v4995_v54 }
 0x67a   : > { %5111 = vst [vmem:[#allocation16] sm:$0xff] (!%p5869_p4), %v5095_v17 }
 0x67b   : > { %4945 = vmatpush1.bf16.msra.mxu1 %v5835_v10  ;;  %v5042_v10 = vrot.slane (!%p5869_p4), %v5011_v55, %v5041_v3 }
 0x67c   : > { %4946 = vmatprep.subr.bf16.mxu1 %v5852_v18  ;;  %v5002_v18 = vld [vmem:[#allocation3 + $0x38] sm:$0xff] (!%p5869_p4) }
 0x67f   : > { %4947 = vmatpush1.bf16.msra.mxu1 %v5851_v22  ;;  %v5098_v22 = vadd.f32 (!%p5869_p4), %v5030_v7, %v4998_v0 }
 0x680   : > { %4948 = vmatprep.subr.bf16.mxu1 %v5868_v23  ;;  %v5099_v23 = vadd.f32 (!%p5869_p4), %v5034_v13, %v4999_v1 }
 0x681   : > { %5114 = vst [vmem:[#allocation16 + $0x18] sm:$0xff] (!%p5869_p4), %v5098_v22 }
 0x682   : > { %5115 = vst [vmem:[#allocation16 + $0x20] sm:$0xff] (!%p5869_p4), %v5099_v23 }
 0x683   : > { %4949 = vmatpush1.bf16.msra.mxu1 %v5867_v28  ;;  %v5046_v28 = vrot.slane (!%p5869_p4), %v5011_v55, %v5045_v6 }
 0x686   : > { %4951 = vmatmul.mubr.bf16.vlgmr.msra.gmra.mrb[28].mxu1 %v7447_v27  ;;  %v3089_v27 = vld [vmem:[#allocation3 + $0x60] sm:$0xff] }
 0x699   : > { %v4829_v32 = vpop.f32.mrb[16].mxu1 }
 0x69a   : > { %v4967_v33 = vadd.f32 %v4829_v32, %v3085_v29  ;;  %v4831_v58 = vpop.f32.mrb[17].mxu1  ;;  %v5100_v32 = vadd.f32 (!%p5869_p4), %v5038_v9, %v5000_v15 }
 0x69b   : > { %v4968_v34 = vadd.f32 %v4831_v58, %v3086_v31  ;;  %v4833_v35 = vpop.f32.mrb[18].mxu1  ;;  %v5050_v58 = vrot.slane (!%p5869_p4), %v5012_v20, %v7434_v12  ;;  %v5074_v12 = vrot.slane (!%p5869_p4), %v5012_v20, %v5041_v3 }
 0x69c   : > { %4983 = vst [vmem:[#allocation3 + $0x40] sm:$0xff] %v4967_v33  ;;  %v4834_v26 = vpop.f32.mrb[19].mxu1  ;;  %v5101_v33 = vadd.f32 (!%p5869_p4), %v5042_v10, %v5001_v16  ;;  %5116 = vst [vmem:[#allocation16 + $0x28] sm:$0xff] (!%p5869_p4), %v5100_v32 }
 0x69d   : > { %4984 = vst [vmem:[#allocation3 + $0x48] sm:$0xff] %v4968_v34 }
 0x69e   : > { %5117 = vst [vmem:[#allocation16 + $0x30] sm:$0xff] (!%p5869_p4), %v5101_v33 }
 0x6a3   : > { %v5003_v29 = vld [vmem:[#allocation3 + $0x40] sm:$0xff] (!%p5869_p4) }
 0x6a4   : > { %v5004_v31 = vld [vmem:[#allocation3 + $0x48] sm:$0xff] (!%p5869_p4) }
 0x6d9   : > { %v4870_v5 = vpop.f32.mrb[20].mxu1 }
 0x6da   : > { %v4969_v19 = vadd.f32 %v4870_v5, %v3087_v36  ;;  %v4872_v38 = vpop.f32.mrb[21].mxu1  ;;  %v5102_v36 = vadd.f32 (!%p5869_p4), %v5046_v28, %v5002_v18  ;;  %v5062_v5 = vrot.slane (!%p5869_p4), %v5012_v20, %v5029_v59 }
 0x6db   : > { %v4970_v24 = vadd.f32 %v4872_v38, %v3088_v37  ;;  %v4874_v25 = vpop.f32.mrb[22].mxu1  ;;  %v5058_v37 = vrot.slane (!%p5869_p4), %v5012_v20, %v5025_v57 }
 0x6dc   : > { %4985 = vst [vmem:[#allocation3 + $0x50] sm:$0xff] %v4969_v19  ;;  %v4875_v39 = vpop.f32.mrb[23].mxu1  ;;  %v5066_v19 = vrot.slane (!%p5869_p4), %v5012_v20, %v5033_v60  ;;  %v5103_v25 = vadd.f32 (!%p5869_p4), %v5050_v58, %v5003_v29  ;;  %5118 = vst [vmem:[#allocation16 + $0x38] sm:$0xff] (!%p5869_p4), %v5102_v36 }
 0x6dd   : > { %4986 = vst [vmem:[#allocation3 + $0x58] sm:$0xff] %v4970_v24  ;;  %v5104_v39 = vadd.f32 (!%p5869_p4), %v5054_v11, %v5004_v31 }
 0x6de   : > { %5119 = vst [vmem:[#allocation16 + $0x40] sm:$0xff] (!%p5869_p4), %v5103_v25 }
 0x6df   : > { %5120 = vst [vmem:[#allocation16 + $0x48] sm:$0xff] (!%p5869_p4), %v5104_v39 }
 0x6e3   : > { %v5005_v34 = vld [vmem:[#allocation3 + $0x50] sm:$0xff] (!%p5869_p4) }
 0x6e4   : > { %v5006_v35 = vld [vmem:[#allocation3 + $0x58] sm:$0xff] (!%p5869_p4)  ;;  %v5105_v14 = vadd.f32 (!%p5869_p4), %v5058_v37, %v5005_v34 }
 0x6e6   : > { %5121 = vst [vmem:[#allocation16 + $0x50] sm:$0xff] (!%p5869_p4), %v5105_v14 }
 0x719   : > { %v4911_v40 = vpop.f32.mrb[24].mxu1 }
 0x71a   : > { %v4971_v41 = vadd.f32 %v4911_v40, %v3089_v27  ;;  %v4913_v42 = vpop.f32.mrb[25].mxu1  ;;  %v5070_v27 = vrot.slane (!%p5869_p4), %v5012_v20, %v5037_v2  ;;  %v5106_v40 = vadd.f32 (!%p5869_p4), %v5062_v5, %v5006_v35 }
 0x71b   : > { %v4972_v43 = vadd.f32 %v4913_v42, %v3090_v30  ;;  %v4915_v44 = vpop.f32.mrb[26].mxu1  ;;  %v5078_v42 = vrot.slane (!%p5869_p4), %v5012_v20, %v5045_v6 }
 0x71c   : > { %4987 = vst [vmem:[#allocation3 + $0x60] sm:$0xff] %v4971_v41  ;;  %v4916_v45 = vpop.f32.mrb[27].mxu1  ;;  %5122 = vst [vmem:[#allocation16 + $0x58] sm:$0xff] (!%p5869_p4), %v5106_v40 }
 0x71d   : > { %4988 = vst [vmem:[#allocation3 + $0x68] sm:$0xff] %v4972_v43 }
 0x723   : > { %v5007_v26 = vld [vmem:[#allocation3 + $0x60] sm:$0xff] (!%p5869_p4) }
 0x724   : > { %v5008_v38 = vld [vmem:[#allocation3 + $0x68] sm:$0xff] (!%p5869_p4)  ;;  %v5107_v41 = vadd.f32 (!%p5869_p4), %v5066_v19, %v5007_v26 }
 0x725   : > { %v5108_v43 = vadd.f32 (!%p5869_p4), %v5070_v27, %v5008_v38 }
 0x726   : > { %5123 = vst [vmem:[#allocation16 + $0x60] sm:$0xff] (!%p5869_p4), %v5107_v41 }
 0x727   : > { %5124 = vst [vmem:[#allocation16 + $0x68] sm:$0xff] (!%p5869_p4), %v5108_v43 }
 0x757   : > { %4994 = sbr.rel (%p5869_p4) target bundleno = 1896 (0x768), region = 84 }
 0x759   : > { %v4952_v48 = vpop.f32.mrb[28].mxu1 }
 0x75a   : > { %v4973_v49 = vadd.f32 %v4952_v48, %v3091_v46  ;;  %v4954_v50 = vpop.f32.mrb[29].mxu1 }
 0x75b   : > { %v4974_v51 = vadd.f32 %v4954_v50, %v3092_v47  ;;  %v4956_v52 = vpop.f32.mrb[30].mxu1 }
 0x75c   : > { %4989 = vst [vmem:[#allocation3 + $0x70] sm:$0xff] %v4973_v49  ;;  %v4957_v53 = vpop.f32.mrb[31].mxu1 }
 0x75d   : > { %4990 = vst [vmem:[#allocation3 + $0x78] sm:$0xff] %v4974_v51 }
 0x763   : > { %v5009_v24 = vld [vmem:[#allocation3 + $0x70] sm:$0xff] }
 0x764   : > { %v5010_v30 = vld [vmem:[#allocation3 + $0x78] sm:$0xff]  ;;  %v5109_v44 = vadd.f32 %v5074_v12, %v5009_v24 }
 0x765   : > { %v5110_v45 = vadd.f32 %v5078_v42, %v5010_v30 }
 0x766   : > { %5125 = vst [vmem:[#allocation16 + $0x70] sm:$0xff] %v5109_v44 }
 0x767   : > { %5126 = vst [vmem:[#allocation16 + $0x78] sm:$0xff] %v5110_v45 }
 0x768 PF: > { %p5974_p8 = scmp.eq.s32.totalorder %s6778_s28, 3  ;;  %s6718_s29 = smov [#allocation16]  }
 0x769   : > { %s5134_s6 = sshll.u32 %s6718_s29, 4  ;;  %s5135_s6 = int_to_ptr.vmem [resolvable:$true] %s5134_s6 }
 0x76a   : > { %s6622_s12 = scalar_lea.vmem %s5135_s6, 2048  ;;  %p6629_p13 = scmp.lt.s32.totalorder %s5135_s6, %s5135_s6 }
 0x76b   : > { %p6623_p5 = scmp.ne.s32.totalorder %s5135_s6, %s6622_s12  ;;  %p6630_p6 = scmp.lt.s32.totalorder %s6622_s12, %s6622_s12 }
 0x76d   : > { %p6624_p9 = pnand %p6623_p5, %p5974_p8  ;;  %p6631_p0 = por %p6630_p6, %p6629_p13 }
 0x76f   : > { %p6625_p12 = pneg %p6624_p9 }
 0x771   : > { %p6632_p3 = pnand %p6631_p0, %p6625_p12 }
 0x773   : > { %6635 = shalt.err (!%p6632_p3)
}
 0x774   : > { %s7787_s11 = sld [smem:[#allocation28_spill]] }
 0x77a   : > { %s6636_s7 = scalar_lea.hbm %s7787_s11, 2048 }
 0x77b   : > { %p6637_p7 = scmp.ne.s32.totalorder %s7787_s11, %s6636_s7  ;;  %p6642_p10 = scmp.lt.u32.totalorder %s6636_s7, %s7787_s11 }
 0x77d   : > { %p6638_p11 = pnand %p6637_p7, %p5974_p8 }
 0x77f   : > { %p6639_p2 = pneg %p6638_p11 }
 0x781   : > { %p6644_p1 = pnand %p6642_p10, %p6639_p2 }
 0x783   : > { %6647 = shalt.err (!%p6644_p1)
}
 0x784   : > { %5939 = dma.vmem_to_hbm [thread:$0]  (%p5974_p8), %s5135_s6, 2048, %s7787_s11, [#allocation6]  }
 0x785   : > { %6685 = dma.done.wait (%p5974_p8), [#allocation6], 2048  }
 0x786   : > { %6687 = vsyncadd (%p5974_p8), [#allocation6], 4294965248 }
 0x787 PF: > { %s7788_s27 = sld [smem:[#allocation23_spill]]  ;;  %s7789_s23 = sld [smem:[#allocation24_spill]] }
 0x788   : > { %s7790_s24 = smov %s6694_s25  ;;  %s7791_s25 = smov %s6698_s26 }
 0x78d   : > { %p23_p4 = scmp.ge.s32.totalorder %s7788_s27, 6   ;;  %s7792_s26 = smov %s7789_s23 }
 0x78f   :  { %25 = sbr.rel (!%p23_p4) target bundleno = 13 (0xd), region = 134 }
 0x796   :  { %5147 = vsyncpa [#allocation5], 1 }
 0x797   :  { %5149 = vsyncpa [#allocation5 + $0x1], 1 }
 0x798   :  { %5150 = vsyncpa [#allocation8], 1 }
 0x799   :  { %5151 = vsyncpa [#allocation11], 1 }
 0x79a   :  { %5153 = vsyncpa [#allocation11 + $0x1], 1 }
 0x79b   :  { %5154 = vsyncpa [#allocation14], 1 }
 0x79c   :  { %5156 = vsyncpa [#allocation14 + $0x1], 1 }
 0x79d   :  { %5157 = vsyncpa [#allocation6], 1 }
 0x79e   :  { %5159 = vsyncpa [#allocation6 + $0x1], 1 }

</bundles_post_ra>
